<compile_context>
chip_gen: v7x
topology: tpu7x:2x2x1
jax: 0.10.0
libtpu: 0.0.40
codegen_flags: <defaults>
</compile_context>

<pallas_src>
import jax
import jax.numpy as jnp
from jax.experimental import pallas as pl
from jax.experimental.pallas import tpu as pltpu

B = 2
C_IN, C_OUT = 2, 16
H = W = 28
HP = WP = 14                       # spatial size after 2x2 pool
KH = KW = 3

LANES = WP * C_OUT                 # 224: conv/pool lane index = w1*16 + c_out
ROW_PAD = 8                        # batch rows padded 2 -> 8 (one sublane tile)
N_ROWS = HP * ROW_PAD              # 112: pooled row index = h1*8 + b
L_COLS = 64                        # (W+2)*C_IN = 60, padded to 64 (per kh block)
K_CONV = KH * L_COLS               # 192: fused-kh contraction depth
FC_IN = C_OUT * HP * WP            # 3136
HIDDEN = 512

NK = 2                             # K-tiles streamed for the fc1 weight
H1_PER_STEP = HP // NK             # 7 pooled rows (h1) handled per grid step
TK = H1_PER_STEP * LANES           # 1568 fc1-weight rows per grid step


# --------------------------- fused forward kernel ---------------------------
def fused_kernel(lhs_ref, a_ref, bc_ref, w1_ref, b1_ref, w2t_ref, b2_ref,
                 o_ref, act_ref, acc_ref):
    # lhs_ref : (2, 112, 192) bf16  shifted input rows per h2; rows = h1*8 + b,
    #                               cols = kh*64 + (padded col)*2 + c_in
    # a_ref   : (2, 192, 224) bf16  fused-kh conv band matrices per w2;
    #                               cols = w1*16 + c_out
    # bc_ref  : (1, 224) f32        conv bias broadcast over the (w1, c) lanes
    # w1_ref  : (1568, 512) bf16    current K-tile of the pre-permuted fc1 weight
    # b1_ref  : (1, 512) f32   w2t_ref: (512, 1) f32   b2_ref: (1, 1) f32 in SMEM
    # o_ref   : (8, 1) f32          rows 0..B-1 valid
    # act_ref : (112, 224) VMEM f32 pooled activations
    # acc_ref : (8, 512)  VMEM f32  fc1 accumulator
    k = pl.program_id(0)

    # ---- step 0: conv(3x3, pad=1) + bias + ReLU + 2x2 max-pool, kept in VMEM ----
    @pl.when(k == 0)
    def _conv_pool():
        bias = bc_ref[...]                                        # (1, 224) f32
        pooled = jnp.zeros((N_ROWS, LANES), jnp.float32)          # ReLU => >= 0
        for h2 in range(2):
            lhs_h2 = lhs_ref[h2]                                  # (112, 192) bf16
            for w2 in range(2):
                cacc = jnp.dot(lhs_h2, a_ref[w2],                 # fused kh, K=192
                               preferred_element_type=jnp.float32)
                pooled = jnp.maximum(pooled, jnp.maximum(cacc + bias, 0.0))
        act_ref[...] = pooled
        acc_ref[...] = jnp.zeros_like(acc_ref)

    # ---- every step: partial fc1 matmul over this K-tile (7 h1 groups) ----
    acc = acc_ref[...]
    for j in range(H1_PER_STEP):
        row0 = pl.multiple_of((k * H1_PER_STEP + j) * ROW_PAD, ROW_PAD)
        x_j = act_ref[pl.ds(row0, ROW_PAD), :].astype(jnp.bfloat16)  # (8, 224)
        w_j = w1_ref[pl.ds(j * LANES, LANES), :]                     # (224, 512)
        acc = acc + jnp.dot(x_j, w_j, preferred_element_type=jnp.float32)
    acc_ref[...] = acc

    # ---- last step: bias + ReLU + fc2 (MXU dot) + SiLU ----
    @pl.when(k == pl.num_programs(0) - 1)
    def _head():
        hid = jnp.maximum(acc_ref[...] + b1_ref[...], 0.0)        # (8, 512) f32
        z = jnp.dot(hid, w2t_ref[...],                            # (8, 1)
                    preferred_element_type=jnp.float32) + b2_ref[0, 0]
        o_ref[...] = z * (1.0 / (1.0 + jnp.exp(-z)))              # SiLU


# ------------------------- weight / input preparation -------------------------
def prepare_params(p):
    """One-time conversion of PyTorch-layout params into the kernel layout."""
    # conv weight (C_OUT, C_IN, KH, KW) -> (KH, KW, C_IN, C_OUT)
    wc = jnp.transpose(p["conv_w"], (2, 3, 1, 0))
    i = jnp.arange(L_COLS)
    wi, ci = i // C_IN, i % C_IN                 # padded-input column, in-channel
    j = jnp.arange(LANES)
    w1i, co = j // C_OUT, j % C_OUT              # pooled column, out-channel
    a_blocks = []
    for w2 in range(2):
        per_kh = []
        for kh in range(KH):
            kw = wi[:, None] - (2 * w1i + w2)[None, :]            # (64, 224)
            valid = (kw >= 0) & (kw < KW)
            g = wc[kh][jnp.clip(kw, 0, KW - 1), ci[:, None], co[None, :]]
            per_kh.append(jnp.where(valid, g, 0.0))
        a_blocks.append(jnp.concatenate(per_kh, axis=0))          # (192, 224)
    a = jnp.stack(a_blocks).astype(jnp.bfloat16)                  # (2, 192, 224)
    bc_row = p["conv_b"][co][None, :]                             # (1, 224) f32
    # fc1 weight (512, 3136) with torch K = c*196 + h1*14 + w1 -> rows (h1, w1, c)
    w1p = jnp.transpose(p["fc1_w"].reshape(HIDDEN, C_OUT, HP, WP),
                        (2, 3, 1, 0)).reshape(FC_IN, HIDDEN)
    return dict(a=a, bc=bc_row,
                w1=w1p.astype(jnp.bfloat16),                      # bf16 HBM stream
                b1=p["fc1_b"][None, :],
                w2t=jnp.transpose(p["fc2_w"]),                    # (512, 1)
                b2=p["fc2_b"].reshape(1, 1))


def _build_conv_lhs(x_nchw):
    """(B, 2, 28, 28) NCHW -> lhs[h2] of shape (112, 192) bf16.

    Rows = h1*8 + b; cols = kh*64 + (padded col)*2 + c_in (kh blocks fused)."""
    x = jnp.transpose(x_nchw, (0, 2, 3, 1))                       # NHWC
    xp = jnp.pad(x, ((0, 0), (1, 1), (1, 1), (0, 0)))             # (B, 30, 30, 2)
    xr = xp.reshape(B, H + 2, (W + 2) * C_IN)                     # (B, 30, 60)
    slabs = []
    for h2 in range(2):
        per_kh = []
        for kh in range(KH):
            s = h2 + kh
            g = xr[:, s:s + 2 * HP - 1:2, :]                      # (B, 14, 60)
            g = jnp.transpose(g, (1, 0, 2))                       # (14, B, 60)
            g = jnp.pad(g, ((0, 0), (0, ROW_PAD - B),
                            (0, L_COLS - (W + 2) * C_IN)))        # (14, 8, 64)
            per_kh.append(g)
        slab = jnp.concatenate(per_kh, axis=-1)                   # (14, 8, 192)
        slabs.append(slab.reshape(N_ROWS, K_CONV))                # (112, 192)
    return jnp.stack(slabs).astype(jnp.bfloat16)                  # (2, 112, 192)


def siamese_cnn_forward(x_nchw, kp):
    lhs = _build_conv_lhs(x_nchw)
    out = pl.pallas_call(
        fused_kernel,
        out_shape=jax.ShapeDtypeStruct((ROW_PAD, 1), jnp.float32),
        grid_spec=pltpu.PrefetchScalarGridSpec(
            num_scalar_prefetch=0,
            grid=(NK,),
            in_specs=[
                pl.BlockSpec((2, N_ROWS, K_CONV), lambda k: (0, 0, 0)),
                pl.BlockSpec((2, K_CONV, LANES), lambda k: (0, 0, 0)),
                pl.BlockSpec((1, LANES), lambda k: (0, 0)),
                pl.BlockSpec((TK, HIDDEN), lambda k: (k, 0)),       # streamed fc1 w
                pl.BlockSpec((1, HIDDEN), lambda k: (0, 0)),
                pl.BlockSpec((HIDDEN, 1), lambda k: (0, 0)),        # fc2 weight^T
                pl.BlockSpec(memory_space=pltpu.MemorySpace.SMEM),  # fc2 bias
            ],
            out_specs=pl.BlockSpec((ROW_PAD, 1), lambda k: (0, 0)),
            scratch_shapes=[
                pltpu.VMEM((N_ROWS, LANES), jnp.float32),   # pooled activations
                pltpu.VMEM((ROW_PAD, HIDDEN), jnp.float32), # fc1 accumulator
            ],
        ),
        compiler_params=pltpu.CompilerParams(
            dimension_semantics=("arbitrary",),       # K reduction axis
            vmem_limit_bytes=16 * 1024 * 1024,        # actual use ~4 MB (bf16 w1)
        ),
    )(lhs, kp["a"], kp["bc"], kp["w1"], kp["b1"], kp["w2t"], kp["b2"])
    return out[:B]


# ------------------------------ test scaffolding ------------------------------
def init_params(key):
    """PyTorch-layout synthetic params, U(-1/sqrt(fan_in), 1/sqrt(fan_in))."""
    ks = jax.random.split(key, 6)

    def u(k, shape, fan_in):
        bound = 1.0 / float(fan_in) ** 0.5
        return jax.random.uniform(k, shape, jnp.float32, -bound, bound)

    return dict(
        conv_w=u(ks[0], (C_OUT, C_IN, KH, KW), C_IN * KH * KW),
        conv_b=u(ks[1], (C_OUT,), C_IN * KH * KW),
        fc1_w=u(ks[2], (HIDDEN, FC_IN), FC_IN),
        fc1_b=u(ks[3], (HIDDEN,), FC_IN),
        fc2_w=u(ks[4], (1, HIDDEN), HIDDEN),
        fc2_b=u(ks[5], (1,), HIDDEN),
    )


def reference_forward(x_nchw, p):
    """Pure-JAX reference of the PyTorch module (f32, highest precision)."""
    y = jax.lax.conv_general_dilated(
        x_nchw, p["conv_w"], window_strides=(1, 1), padding=((1, 1), (1, 1)),
        dimension_numbers=("NCHW", "OIHW", "NCHW"),
        precision=jax.lax.Precision.HIGHEST)
    y = jnp.maximum(y + p["conv_b"][None, :, None, None], 0.0)
    y = jax.lax.reduce_window(y, -jnp.inf, jax.lax.max,
                              (1, 1, 2, 2), (1, 1, 2, 2), "VALID")
    flat = y.reshape(x_nchw.shape[0], -1)
    h = jnp.maximum(jnp.dot(flat, p["fc1_w"].T,
                            precision=jax.lax.Precision.HIGHEST) + p["fc1_b"], 0.0)
    z = jnp.dot(h, p["fc2_w"].T,
                precision=jax.lax.Precision.HIGHEST) + p["fc2_b"]
    return z * (1.0 / (1.0 + jnp.exp(-z)))


if __name__ == "__main__":
    key = jax.random.PRNGKey(0)
    pkey, xkey = jax.random.split(key)
    torch_params = init_params(pkey)
    kparams = prepare_params(torch_params)          # one-time weight re-layout
    x = jax.random.normal(xkey, (B, C_IN, H, W), jnp.float32)   # NCHW like PyTorch

    fwd = jax.jit(siamese_cnn_forward)
    out = jax.block_until_ready(fwd(x, kparams))

    assert out.shape == (B, 1), out.shape
    assert bool(jnp.all(jnp.isfinite(out)))
    ref = reference_forward(x, torch_params)
    assert bool(jnp.allclose(out, ref, atol=2e-2, rtol=2e-2)), (out, ref)
    print("KERNEL_OK")
</pallas_src>

<mosaic_0001>
module attributes {stable_mosaic.version = 11 : i64} {
  func.func @fused_kernel(%arg0: i32, %arg1: memref<2x112x192xbf16, #tpu.memory_space<vmem>>, %arg2: memref<2x192x224xbf16, #tpu.memory_space<vmem>>, %arg3: memref<1x224xf32, #tpu.memory_space<vmem>>, %arg4: memref<1568x512xbf16, #tpu.memory_space<vmem>>, %arg5: memref<1x512xf32, #tpu.memory_space<vmem>>, %arg6: memref<512x1xf32, #tpu.memory_space<vmem>>, %arg7: memref<1x1xf32, #tpu.memory_space<smem>>, %arg8: memref<8x1xf32, #tpu.memory_space<vmem>>, %arg9: memref<112x224xf32, #tpu.memory_space<vmem>>, %arg10: memref<8x512xf32, #tpu.memory_space<vmem>>) attributes {dimension_semantics = [#tpu.dimension_semantics<arbitrary>], iteration_bounds = array<i64: 2>, scalar_prefetch = 0 : i64, scratch_operands = 2 : i64, tpu.core_type = #tpu.core_type<tc>, window_params = [{pipeline_mode = #tpu.pipeline_mode<synchronous>, transform_indices = @transform_0, window_bounds = array<i64: 2, 112, 192>}, {pipeline_mode = #tpu.pipeline_mode<synchronous>, transform_indices = @transform_1, window_bounds = array<i64: 2, 192, 224>}, {pipeline_mode = #tpu.pipeline_mode<synchronous>, transform_indices = @transform_2, window_bounds = array<i64: 1, 224>}, {transform_indices = @transform_3, window_bounds = array<i64: 1568, 512>}, {pipeline_mode = #tpu.pipeline_mode<synchronous>, transform_indices = @transform_4, window_bounds = array<i64: 1, 512>}, {pipeline_mode = #tpu.pipeline_mode<synchronous>, transform_indices = @transform_5, window_bounds = array<i64: 512, 1>}, {transform_indices = @transform_6, window_bounds = array<i64: 1, 1>}, {pipeline_mode = #tpu.pipeline_mode<synchronous>, transform_indices = @transform_7, window_bounds = array<i64: 8, 1>}]} {
    %c0_i32 = arith.constant 0 : i32
    %0 = arith.cmpi eq, %arg0, %c0_i32 : i32
    %1 = arith.extui %0 : i1 to i32
    %c0_i32_0 = arith.constant 0 : i32
    %2 = arith.cmpi ne, %1, %c0_i32_0 : i32
    scf.if %2 {
      %c0_40 = arith.constant 0 : index
      %c0_41 = arith.constant 0 : index
      %78 = vector.load %arg3[%c0_40, %c0_41] : memref<1x224xf32, #tpu.memory_space<vmem>>, vector<1x224xf32>
      %cst_42 = arith.constant 0.000000e+00 : f32
      %79 = vector.broadcast %cst_42 : f32 to vector<112x224xf32>
      %c0_43 = arith.constant 0 : index
      %c0_44 = arith.constant 0 : index
      %c0_45 = arith.constant 0 : index
      %80 = vector.load %arg1[%c0_43, %c0_44, %c0_45] : memref<2x112x192xbf16, #tpu.memory_space<vmem>>, vector<1x112x192xbf16>
      %81 = vector.shape_cast %80 : vector<1x112x192xbf16> to vector<112x192xbf16>
      %c0_46 = arith.constant 0 : index
      %c0_47 = arith.constant 0 : index
      %c0_48 = arith.constant 0 : index
      %82 = vector.load %arg2[%c0_46, %c0_47, %c0_48] : memref<2x192x224xbf16, #tpu.memory_space<vmem>>, vector<1x192x224xbf16>
      %83 = vector.shape_cast %82 : vector<1x192x224xbf16> to vector<192x224xbf16>
      %cst_49 = arith.constant dense<0.000000e+00> : vector<112x224xf32>
      %84 = tpu.matmul %81, %83, %cst_49 {dimension_numbers = #tpu.dot_dimension_numbers<[1], [0], [0], [1], [0, 0, 1, 1], [], []>} : vector<112x192xbf16>, vector<192x224xbf16>, vector<112x224xf32> -> vector<112x224xf32>
      %85 = vector.broadcast %78 : vector<1x224xf32> to vector<112x224xf32>
      %86 = arith.addf %84, %85 : vector<112x224xf32>
      %cst_50 = arith.constant 0.000000e+00 : f32
      %87 = vector.broadcast %cst_50 : f32 to vector<112x224xf32>
      %88 = arith.maximumf %86, %87 : vector<112x224xf32>
      %89 = arith.maximumf %79, %88 : vector<112x224xf32>
      %c1 = arith.constant 1 : index
      %c0_51 = arith.constant 0 : index
      %c0_52 = arith.constant 0 : index
      %90 = vector.load %arg2[%c1, %c0_51, %c0_52] : memref<2x192x224xbf16, #tpu.memory_space<vmem>>, vector<1x192x224xbf16>
      %91 = vector.shape_cast %90 : vector<1x192x224xbf16> to vector<192x224xbf16>
      %cst_53 = arith.constant dense<0.000000e+00> : vector<112x224xf32>
      %92 = tpu.matmul %81, %91, %cst_53 {dimension_numbers = #tpu.dot_dimension_numbers<[1], [0], [0], [1], [0, 0, 1, 1], [], []>} : vector<112x192xbf16>, vector<192x224xbf16>, vector<112x224xf32> -> vector<112x224xf32>
      %93 = vector.broadcast %78 : vector<1x224xf32> to vector<112x224xf32>
      %94 = arith.addf %92, %93 : vector<112x224xf32>
      %cst_54 = arith.constant 0.000000e+00 : f32
      %95 = vector.broadcast %cst_54 : f32 to vector<112x224xf32>
      %96 = arith.maximumf %94, %95 : vector<112x224xf32>
      %97 = arith.maximumf %89, %96 : vector<112x224xf32>
      %c1_55 = arith.constant 1 : index
      %c0_56 = arith.constant 0 : index
      %c0_57 = arith.constant 0 : index
      %98 = vector.load %arg1[%c1_55, %c0_56, %c0_57] : memref<2x112x192xbf16, #tpu.memory_space<vmem>>, vector<1x112x192xbf16>
      %99 = vector.shape_cast %98 : vector<1x112x192xbf16> to vector<112x192xbf16>
      %c0_58 = arith.constant 0 : index
      %c0_59 = arith.constant 0 : index
      %c0_60 = arith.constant 0 : index
      %100 = vector.load %arg2[%c0_58, %c0_59, %c0_60] : memref<2x192x224xbf16, #tpu.memory_space<vmem>>, vector<1x192x224xbf16>
      %101 = vector.shape_cast %100 : vector<1x192x224xbf16> to vector<192x224xbf16>
      %cst_61 = arith.constant dense<0.000000e+00> : vector<112x224xf32>
      %102 = tpu.matmul %99, %101, %cst_61 {dimension_numbers = #tpu.dot_dimension_numbers<[1], [0], [0], [1], [0, 0, 1, 1], [], []>} : vector<112x192xbf16>, vector<192x224xbf16>, vector<112x224xf32> -> vector<112x224xf32>
      %103 = vector.broadcast %78 : vector<1x224xf32> to vector<112x224xf32>
      %104 = arith.addf %102, %103 : vector<112x224xf32>
      %cst_62 = arith.constant 0.000000e+00 : f32
      %105 = vector.broadcast %cst_62 : f32 to vector<112x224xf32>
      %106 = arith.maximumf %104, %105 : vector<112x224xf32>
      %107 = arith.maximumf %97, %106 : vector<112x224xf32>
      %c1_63 = arith.constant 1 : index
      %c0_64 = arith.constant 0 : index
      %c0_65 = arith.constant 0 : index
      %108 = vector.load %arg2[%c1_63, %c0_64, %c0_65] : memref<2x192x224xbf16, #tpu.memory_space<vmem>>, vector<1x192x224xbf16>
      %109 = vector.shape_cast %108 : vector<1x192x224xbf16> to vector<192x224xbf16>
      %cst_66 = arith.constant dense<0.000000e+00> : vector<112x224xf32>
      %110 = tpu.matmul %99, %109, %cst_66 {dimension_numbers = #tpu.dot_dimension_numbers<[1], [0], [0], [1], [0, 0, 1, 1], [], []>} : vector<112x192xbf16>, vector<192x224xbf16>, vector<112x224xf32> -> vector<112x224xf32>
      %111 = vector.broadcast %78 : vector<1x224xf32> to vector<112x224xf32>
      %112 = arith.addf %110, %111 : vector<112x224xf32>
      %cst_67 = arith.constant 0.000000e+00 : f32
      %113 = vector.broadcast %cst_67 : f32 to vector<112x224xf32>
      %114 = arith.maximumf %112, %113 : vector<112x224xf32>
      %115 = arith.maximumf %107, %114 : vector<112x224xf32>
      %c0_68 = arith.constant 0 : index
      %c0_69 = arith.constant 0 : index
      %116 = vector.load %arg9[%c0_68, %c0_69] : memref<112x224xf32, #tpu.memory_space<vmem>>, vector<112x224xf32>
      tpu.vector_store %arg9[%c0_68, %c0_69], %115 {strides = array<i32>} : memref<112x224xf32, #tpu.memory_space<vmem>>, vector<112x224xf32>,
      %cst_70 = arith.constant 0.000000e+00 : f32
      %117 = vector.broadcast %cst_70 : f32 to vector<8x512xf32>
      %c0_71 = arith.constant 0 : index
      %c0_72 = arith.constant 0 : index
      %118 = vector.load %arg10[%c0_71, %c0_72] : memref<8x512xf32, #tpu.memory_space<vmem>>, vector<8x512xf32>
      tpu.vector_store %arg10[%c0_71, %c0_72], %117 {strides = array<i32>} : memref<8x512xf32, #tpu.memory_space<vmem>>, vector<8x512xf32>,
    } else {
    }
    %c0 = arith.constant 0 : index
    %c0_1 = arith.constant 0 : index
    %3 = vector.load %arg10[%c0, %c0_1] : memref<8x512xf32, #tpu.memory_space<vmem>>, vector<8x512xf32>
    %c7_i32 = arith.constant 7 : i32
    %4 = arith.muli %arg0, %c7_i32 : i32
    %c0_i32_2 = arith.constant 0 : i32
    %5 = arith.addi %4, %c0_i32_2 : i32
    %c8_i32 = arith.constant 8 : i32
    %6 = arith.muli %5, %c8_i32 : i32
    %7 = tpu.assume_multiple %6, 8 : i32
    %8 = arith.index_cast %7 : i32 to index
    %c0_3 = arith.constant 0 : index
    %9 = vector.load %arg9[%8, %c0_3] : memref<112x224xf32, #tpu.memory_space<vmem>>, vector<8x224xf32>
    %10 = arith.truncf %9 : vector<8x224xf32> to vector<8x224xbf16>
    %c0_4 = arith.constant 0 : index
    %c0_5 = arith.constant 0 : index
    %11 = vector.load %arg4[%c0_4, %c0_5] : memref<1568x512xbf16, #tpu.memory_space<vmem>>, vector<224x512xbf16>
    %cst = arith.constant dense<0.000000e+00> : vector<8x512xf32>
    %12 = tpu.matmul %10, %11, %cst {dimension_numbers = #tpu.dot_dimension_numbers<[1], [0], [0], [1], [0, 0, 1, 1], [], []>} : vector<8x224xbf16>, vector<224x512xbf16>, vector<8x512xf32> -> vector<8x512xf32>
    %13 = arith.addf %3, %12 : vector<8x512xf32>
    %c7_i32_6 = arith.constant 7 : i32
    %14 = arith.muli %arg0, %c7_i32_6 : i32
    %c1_i32 = arith.constant 1 : i32
    %15 = arith.addi %14, %c1_i32 : i32
    %c8_i32_7 = arith.constant 8 : i32
    %16 = arith.muli %15, %c8_i32_7 : i32
    %17 = tpu.assume_multiple %16, 8 : i32
    %18 = arith.index_cast %17 : i32 to index
    %c0_8 = arith.constant 0 : index
    %19 = vector.load %arg9[%18, %c0_8] : memref<112x224xf32, #tpu.memory_space<vmem>>, vector<8x224xf32>
    %20 = arith.truncf %19 : vector<8x224xf32> to vector<8x224xbf16>
    %c224 = arith.constant 224 : index
    %c0_9 = arith.constant 0 : index
    %21 = vector.load %arg4[%c224, %c0_9] : memref<1568x512xbf16, #tpu.memory_space<vmem>>, vector<224x512xbf16>
    %cst_10 = arith.constant dense<0.000000e+00> : vector<8x512xf32>
    %22 = tpu.matmul %20, %21, %cst_10 {dimension_numbers = #tpu.dot_dimension_numbers<[1], [0], [0], [1], [0, 0, 1, 1], [], []>} : vector<8x224xbf16>, vector<224x512xbf16>, vector<8x512xf32> -> vector<8x512xf32>
    %23 = arith.addf %13, %22 : vector<8x512xf32>
    %c7_i32_11 = arith.constant 7 : i32
    %24 = arith.muli %arg0, %c7_i32_11 : i32
    %c2_i32 = arith.constant 2 : i32
    %25 = arith.addi %24, %c2_i32 : i32
    %c8_i32_12 = arith.constant 8 : i32
    %26 = arith.muli %25, %c8_i32_12 : i32
    %27 = tpu.assume_multiple %26, 8 : i32
    %28 = arith.index_cast %27 : i32 to index
    %c0_13 = arith.constant 0 : index
    %29 = vector.load %arg9[%28, %c0_13] : memref<112x224xf32, #tpu.memory_space<vmem>>, vector<8x224xf32>
    %30 = arith.truncf %29 : vector<8x224xf32> to vector<8x224xbf16>
    %c448 = arith.constant 448 : index
    %c0_14 = arith.constant 0 : index
    %31 = vector.load %arg4[%c448, %c0_14] : memref<1568x512xbf16, #tpu.memory_space<vmem>>, vector<224x512xbf16>
    %cst_15 = arith.constant dense<0.000000e+00> : vector<8x512xf32>
    %32 = tpu.matmul %30, %31, %cst_15 {dimension_numbers = #tpu.dot_dimension_numbers<[1], [0], [0], [1], [0, 0, 1, 1], [], []>} : vector<8x224xbf16>, vector<224x512xbf16>, vector<8x512xf32> -> vector<8x512xf32>
    %33 = arith.addf %23, %32 : vector<8x512xf32>
    %c7_i32_16 = arith.constant 7 : i32
    %34 = arith.muli %arg0, %c7_i32_16 : i32
    %c3_i32 = arith.constant 3 : i32
    %35 = arith.addi %34, %c3_i32 : i32
    %c8_i32_17 = arith.constant 8 : i32
    %36 = arith.muli %35, %c8_i32_17 : i32
    %37 = tpu.assume_multiple %36, 8 : i32
    %38 = arith.index_cast %37 : i32 to index
    %c0_18 = arith.constant 0 : index
    %39 = vector.load %arg9[%38, %c0_18] : memref<112x224xf32, #tpu.memory_space<vmem>>, vector<8x224xf32>
    %40 = arith.truncf %39 : vector<8x224xf32> to vector<8x224xbf16>
    %c672 = arith.constant 672 : index
    %c0_19 = arith.constant 0 : index
    %41 = vector.load %arg4[%c672, %c0_19] : memref<1568x512xbf16, #tpu.memory_space<vmem>>, vector<224x512xbf16>
    %cst_20 = arith.constant dense<0.000000e+00> : vector<8x512xf32>
    %42 = tpu.matmul %40, %41, %cst_20 {dimension_numbers = #tpu.dot_dimension_numbers<[1], [0], [0], [1], [0, 0, 1, 1], [], []>} : vector<8x224xbf16>, vector<224x512xbf16>, vector<8x512xf32> -> vector<8x512xf32>
    %43 = arith.addf %33, %42 : vector<8x512xf32>
    %c7_i32_21 = arith.constant 7 : i32
    %44 = arith.muli %arg0, %c7_i32_21 : i32
    %c4_i32 = arith.constant 4 : i32
    %45 = arith.addi %44, %c4_i32 : i32
    %c8_i32_22 = arith.constant 8 : i32
    %46 = arith.muli %45, %c8_i32_22 : i32
    %47 = tpu.assume_multiple %46, 8 : i32
    %48 = arith.index_cast %47 : i32 to index
    %c0_23 = arith.constant 0 : index
    %49 = vector.load %arg9[%48, %c0_23] : memref<112x224xf32, #tpu.memory_space<vmem>>, vector<8x224xf32>
    %50 = arith.truncf %49 : vector<8x224xf32> to vector<8x224xbf16>
    %c896 = arith.constant 896 : index
    %c0_24 = arith.constant 0 : index
    %51 = vector.load %arg4[%c896, %c0_24] : memref<1568x512xbf16, #tpu.memory_space<vmem>>, vector<224x512xbf16>
    %cst_25 = arith.constant dense<0.000000e+00> : vector<8x512xf32>
    %52 = tpu.matmul %50, %51, %cst_25 {dimension_numbers = #tpu.dot_dimension_numbers<[1], [0], [0], [1], [0, 0, 1, 1], [], []>} : vector<8x224xbf16>, vector<224x512xbf16>, vector<8x512xf32> -> vector<8x512xf32>
    %53 = arith.addf %43, %52 : vector<8x512xf32>
    %c7_i32_26 = arith.constant 7 : i32
    %54 = arith.muli %arg0, %c7_i32_26 : i32
    %c5_i32 = arith.constant 5 : i32
    %55 = arith.addi %54, %c5_i32 : i32
    %c8_i32_27 = arith.constant 8 : i32
    %56 = arith.muli %55, %c8_i32_27 : i32
    %57 = tpu.assume_multiple %56, 8 : i32
    %58 = arith.index_cast %57 : i32 to index
    %c0_28 = arith.constant 0 : index
    %59 = vector.load %arg9[%58, %c0_28] : memref<112x224xf32, #tpu.memory_space<vmem>>, vector<8x224xf32>
    %60 = arith.truncf %59 : vector<8x224xf32> to vector<8x224xbf16>
    %c1120 = arith.constant 1120 : index
    %c0_29 = arith.constant 0 : index
    %61 = vector.load %arg4[%c1120, %c0_29] : memref<1568x512xbf16, #tpu.memory_space<vmem>>, vector<224x512xbf16>
    %cst_30 = arith.constant dense<0.000000e+00> : vector<8x512xf32>
    %62 = tpu.matmul %60, %61, %cst_30 {dimension_numbers = #tpu.dot_dimension_numbers<[1], [0], [0], [1], [0, 0, 1, 1], [], []>} : vector<8x224xbf16>, vector<224x512xbf16>, vector<8x512xf32> -> vector<8x512xf32>
    %63 = arith.addf %53, %62 : vector<8x512xf32>
    %c7_i32_31 = arith.constant 7 : i32
    %64 = arith.muli %arg0, %c7_i32_31 : i32
    %c6_i32 = arith.constant 6 : i32
    %65 = arith.addi %64, %c6_i32 : i32
    %c8_i32_32 = arith.constant 8 : i32
    %66 = arith.muli %65, %c8_i32_32 : i32
    %67 = tpu.assume_multiple %66, 8 : i32
    %68 = arith.index_cast %67 : i32 to index
    %c0_33 = arith.constant 0 : index
    %69 = vector.load %arg9[%68, %c0_33] : memref<112x224xf32, #tpu.memory_space<vmem>>, vector<8x224xf32>
    %70 = arith.truncf %69 : vector<8x224xf32> to vector<8x224xbf16>
    %c1344 = arith.constant 1344 : index
    %c0_34 = arith.constant 0 : index
    %71 = vector.load %arg4[%c1344, %c0_34] : memref<1568x512xbf16, #tpu.memory_space<vmem>>, vector<224x512xbf16>
    %cst_35 = arith.constant dense<0.000000e+00> : vector<8x512xf32>
    %72 = tpu.matmul %70, %71, %cst_35 {dimension_numbers = #tpu.dot_dimension_numbers<[1], [0], [0], [1], [0, 0, 1, 1], [], []>} : vector<8x224xbf16>, vector<224x512xbf16>, vector<8x512xf32> -> vector<8x512xf32>
    %73 = arith.addf %63, %72 : vector<8x512xf32>
    %c0_36 = arith.constant 0 : index
    %c0_37 = arith.constant 0 : index
    %74 = vector.load %arg10[%c0_36, %c0_37] : memref<8x512xf32, #tpu.memory_space<vmem>>, vector<8x512xf32>
    tpu.vector_store %arg10[%c0_36, %c0_37], %73 {strides = array<i32>} : memref<8x512xf32, #tpu.memory_space<vmem>>, vector<8x512xf32>,
    %c1_i32_38 = arith.constant 1 : i32
    %75 = arith.cmpi eq, %arg0, %c1_i32_38 : i32
    %76 = arith.extui %75 : i1 to i32
    %c0_i32_39 = arith.constant 0 : i32
    %77 = arith.cmpi ne, %76, %c0_i32_39 : i32
    scf.if %77 {
      %c0_40 = arith.constant 0 : index
      %c0_41 = arith.constant 0 : index
      %78 = vector.load %arg10[%c0_40, %c0_41] : memref<8x512xf32, #tpu.memory_space<vmem>>, vector<8x512xf32>
      %c0_42 = arith.constant 0 : index
      %c0_43 = arith.constant 0 : index
      %79 = vector.load %arg5[%c0_42, %c0_43] : memref<1x512xf32, #tpu.memory_space<vmem>>, vector<1x512xf32>
      %80 = vector.broadcast %79 : vector<1x512xf32> to vector<8x512xf32>
      %81 = arith.addf %78, %80 : vector<8x512xf32>
      %cst_44 = arith.constant 0.000000e+00 : f32
      %82 = vector.broadcast %cst_44 : f32 to vector<8x512xf32>
      %83 = arith.maximumf %81, %82 : vector<8x512xf32>
      %c0_45 = arith.constant 0 : index
      %c0_46 = arith.constant 0 : index
      %84 = vector.load %arg6[%c0_45, %c0_46] : memref<512x1xf32, #tpu.memory_space<vmem>>, vector<512x1xf32>
      %cst_47 = arith.constant dense<0.000000e+00> : vector<8x1xf32>
      %85 = tpu.matmul %83, %84, %cst_47 {dimension_numbers = #tpu.dot_dimension_numbers<[1], [0], [0], [1], [0, 0, 1, 1], [], []>} : vector<8x512xf32>, vector<512x1xf32>, vector<8x1xf32> -> vector<8x1xf32>
      %c0_48 = arith.constant 0 : index
      %c0_49 = arith.constant 0 : index
      %86 = memref.load %arg7[%c0_48, %c0_49] : memref<1x1xf32, #tpu.memory_space<smem>>
      %87 = vector.broadcast %86 : f32 to vector<8x1xf32>
      %88 = arith.addf %85, %87 : vector<8x1xf32>
      %cst_50 = arith.constant 0.000000e+00 : f32
      %89 = vector.broadcast %cst_50 : f32 to vector<8x1xf32>
      %90 = arith.subf %89, %88 : vector<8x1xf32>
      %91 = math.exp %90 : vector<8x1xf32>
      %cst_51 = arith.constant 1.000000e+00 : f32
      %92 = vector.broadcast %cst_51 : f32 to vector<8x1xf32>
      %93 = arith.addf %92, %91 : vector<8x1xf32>
      %cst_52 = arith.constant 1.000000e+00 : f32
      %94 = vector.broadcast %cst_52 : f32 to vector<8x1xf32>
      %95 = arith.divf %94, %93 : vector<8x1xf32>
      %96 = arith.mulf %88, %95 : vector<8x1xf32>
      %c0_53 = arith.constant 0 : index
      %c0_54 = arith.constant 0 : index
      %97 = vector.load %arg8[%c0_53, %c0_54] : memref<8x1xf32, #tpu.memory_space<vmem>>, vector<8x1xf32>
      tpu.vector_store %arg8[%c0_53, %c0_54], %96 {strides = array<i32>} : memref<8x1xf32, #tpu.memory_space<vmem>>, vector<8x1xf32>,
    } else {
    }
    return
  }
  func.func @transform_0(%arg0: i32) -> (i32, i32, i32) {
    %c0_i32 = arith.constant 0 : i32
    %c0_i32_0 = arith.constant 0 : i32
    %c0_i32_1 = arith.constant 0 : i32
    %c0_i32_2 = arith.constant 0 : i32
    return %c0_i32, %c0_i32_0, %c0_i32_1 : i32, i32, i32
  }
  func.func @transform_1(%arg0: i32) -> (i32, i32, i32) {
    %c0_i32 = arith.constant 0 : i32
    %c0_i32_0 = arith.constant 0 : i32
    %c0_i32_1 = arith.constant 0 : i32
    %c0_i32_2 = arith.constant 0 : i32
    return %c0_i32, %c0_i32_0, %c0_i32_1 : i32, i32, i32
  }
  func.func @transform_2(%arg0: i32) -> (i32, i32) {
    %c0_i32 = arith.constant 0 : i32
    %c0_i32_0 = arith.constant 0 : i32
    %c0_i32_1 = arith.constant 0 : i32
    return %c0_i32, %c0_i32_0 : i32, i32
  }
  func.func @transform_3(%arg0: i32) -> (i32, i32) {
    %c0_i32 = arith.constant 0 : i32
    %c0_i32_0 = arith.constant 0 : i32
    return %arg0, %c0_i32 : i32, i32
  }
  func.func @transform_4(%arg0: i32) -> (i32, i32) {
    %c0_i32 = arith.constant 0 : i32
    %c0_i32_0 = arith.constant 0 : i32
    %c0_i32_1 = arith.constant 0 : i32
    return %c0_i32, %c0_i32_0 : i32, i32
  }
  func.func @transform_5(%arg0: i32) -> (i32, i32) {
    %c0_i32 = arith.constant 0 : i32
    %c0_i32_0 = arith.constant 0 : i32
    %c0_i32_1 = arith.constant 0 : i32
    return %c0_i32, %c0_i32_0 : i32, i32
  }
  func.func @transform_6(%arg0: i32) -> (i32, i32) {
    %c0_i32 = arith.constant 0 : i32
    %c0_i32_0 = arith.constant 0 : i32
    %c0_i32_1 = arith.constant 0 : i32
    return %c0_i32, %c0_i32_0 : i32, i32
  }
  func.func @transform_7(%arg0: i32) -> (i32, i32) {
    %c0_i32 = arith.constant 0 : i32
    %c0_i32_0 = arith.constant 0 : i32
    %c0_i32_1 = arith.constant 0 : i32
    return %c0_i32, %c0_i32_0 : i32, i32
  }
}

</mosaic_0001>

<bundles_post_ra>
// kernel: siamese_cnn_forward.1
= control target key start
LH: loop header
LB: loop body
LE: loop exit
PB: predicated region body
PF: predicated region fallthrough
CT: control target
= control target key end

     0   :  { %s8026_s0 = inlined_call_operand.vmem [shape: bf16[2,112,192], index: 0, kind: input, shape index: {}]   ;;  %s8027_s1 = inlined_call_operand.hbm [shape: bf16[2,192,224], index: 1, kind: input, shape index: {}]   ;;  %s8028_s2 = inlined_call_operand.hbm [shape: f32[1,224], index: 2, kind: input, shape index: {}]   ;;  %s8029_s3 = inlined_call_operand.hbm [shape: bf16[3136,512], index: 3, kind: input, shape index: {}]   ;;  %s8030_s4 = inlined_call_operand.hbm [shape: f32[1,512], index: 4, kind: input, shape index: {}]   ;;  %s8031_s5 = inlined_call_operand.vmem [shape: f32[512,1], index: 5, kind: input, shape index: {}]   ;;  %s8032_s6 = inlined_call_operand.<no memory space> [shape: f32[1,1], index: 6, kind: input, shape index: {}]   ;;  %s8033_s7 = inlined_call_operand.vmem [shape: f32[8,1], index: 7, kind: output, shape index: {}]  }
   0x1   :  { %8040 = sst [smem:[#allocation17_spill]] %s8033_s7 }
   0x2   :  { %12 = sst [smem:[#allocation4]] %s8032_s6 }
   0x3   :  { %13 = vsyncpa [#allocation6], 0 }
   0x4   :  { %14 = vsyncpa [#allocation8], 0  ;;  %s6663_s26 = smov 0   ;;  %s6665_s27 = smov 0  }
   0x5   :  { %s6667_s28 = smov 0   ;;  %s6669_s29 = smov 0  }
   0x6 LB: > { %s6682_s6 = sadd.s32 4294967295, %s6609_s29   ;;  %s6685_s30 = sadd.s32 1, %s6609_s29   ;;  %s6609_s29 = sphi %s6669_s29, %s8060_s29   ;;  %s6605_s28 = sphi %s6667_s28, %s8064_s28   ;;  %s6601_s27 = sphi %s6665_s27, %s8063_s27   ;;  %s6597_s26 = sphi %s6663_s26, %s8062_s26  }
   0x7   : > { %8041 = sst [smem:[#allocation15_spill]] %s6685_s30  ;;  %s87_s8 = ssub.s32 %s6609_s29, %s6685_s30 }
   0x8   : > { %s90_s9 = sadd.s32 1, %s6605_s28  ;;  %p88_p0 = scmp.eq.s32.totalorder %s87_s8, 0 }
   0x9   : > { %p97_p1 = scmp.ne.s32.totalorder %s6605_s28, %s6601_s27  ;;  %p98_p2 = scmp.eq.s32.totalorder %s6609_s29, 0 }
   0xa   : > { %p103_p3 = scmp.ne.s32.totalorder %s6601_s27, %s6597_s26  ;;  %p8034_p5 = scmp.eq.s32.totalorder %s6682_s6, 0 }
   0xb   : > { %s6695_s10 = scalar_select %p88_p0, %s6605_s28, %s90_s9  }
   0xc   : > { %p6697_p4 = por %p98_p2, %p97_p1  ;;  %p4893_p6 = scmp.ge.s32.totalorder %s6609_s29, 1 }
   0xd   : > { %8042 = sst [smem:[#allocation16_spill]] %s6695_s10  ;;  %p198_p7 = scmp.lt.s32.totalorder %s6609_s29, 3 }
   0xe   : > { %p6706_p8 = por %p8034_p5, %p103_p3  ;;  %s6611_s14 = smov [#allocation5]  }
   0xf   : > { %p6711_p10 = pnand %p4893_p6, %p198_p7  ;;  %s213_s15 = sshll.u32 %s6611_s14, 4  ;;  %s214_s15 = int_to_ptr.vmem [resolvable:$true] %s213_s15 }
  0x10   : > { %s8044_s12 = scalar_select %p6706_p8, 1, 0 }
  0x11   : > { %s8045_s13 = scalar_select %p6711_p10, 1, 0 }
  0x12   : > { %p5682_p11 = pneg %p6711_p10  ;;  %p5699_p13 = scmp.lt.s32.totalorder %s6609_s29, 2 }
  0x13   : > { %s6449_s20 = scalar_lea.hbm %s8027_s1, 6144 }
  0x14   : > { %p6719_p12 = pnand %p5682_p11, %p8034_p5  ;;  %p6726_p0 = pnand %p5699_p13, %p6697_p4 }
  0x15   : > { %p6450_p1 = scmp.ne.s32.totalorder %s8027_s1, %s6449_s20  ;;  %p6456_p6 = scmp.lt.u32.totalorder %s6449_s20, %s8027_s1 }
  0x16   : > { %s8047_s17 = scalar_select %p6726_p0, 1, 0 }
  0x17   : > { %p6738_p2 = pneg %p6719_p12 }
  0x19   : > { %p6452_p3 = pnand %p6738_p2, %p6450_p1 }
  0x1b   : > { %p6453_p4 = pneg %p6452_p3 }
  0x1d   : > { %p6458_p7 = pnand %p6456_p6, %p6453_p4 }
  0x1f   : > { %6461 = shalt.err (!%p6458_p7)
}
  0x20   : > { %s6462_s26 = scalar_lea.vmem %s214_s15, 6144  ;;  %p6470_p5 = scmp.lt.s32.totalorder %s214_s15, %s214_s15 }
  0x21   : > { %p6463_p11 = scmp.ne.s32.totalorder %s214_s15, %s6462_s26  ;;  %p6471_p8 = scmp.lt.s32.totalorder %s6462_s26, %s6462_s26 }
  0x23   : > { %p6465_p13 = pnand %p6463_p11, %p6738_p2  ;;  %p6472_p10 = por %p6471_p8, %p6470_p5 }
  0x25   : > { %p6466_p9 = pneg %p6465_p13 }
  0x27   : > { %p6473_p0 = pnand %p6472_p10, %p6466_p9 }
  0x29   : > { %6476 = shalt.err (!%p6473_p0)
}
  0x2a   : > { %s6612_s8 = smov 128   ;;  %s6613_s9 = smov 8  }
  0x2b   : > { %5685 = dma.hbm_to_vmem [thread:$0]  (!%p6719_p12), %s8027_s1, 6144, %s214_s15, [#allocation6], %s6612_s8, %s6612_s8, %s6613_s9  }
  0x2c   : > { %s6614_s18 = smov [#allocation7]   ;;  %s6615_s20 = smov [#allocation10]  }
  0x2d   : > { %s227_s19 = sshll.u32 %s6614_s18, 4  ;;  %s238_s21 = sshll.u32 %s6615_s20, 4  ;;  %s228_s19 = int_to_ptr.vmem [resolvable:$true] %s227_s19  ;;  %s239_s21 = int_to_ptr.vmem [resolvable:$true] %s238_s21 }
  0x2e   : > { %s6477_s25 = scalar_lea.hbm %s8028_s2, 32 }
  0x2f   : > { %p6478_p5 = scmp.ne.s32.totalorder %s8028_s2, %s6477_s25  ;;  %p6484_p10 = scmp.lt.u32.totalorder %s6477_s25, %s8028_s2 }
  0x31   : > { %p6480_p8 = pnand %p6478_p5, %p6738_p2 }
  0x33   : > { %p6481_p9 = pneg %p6480_p8 }
  0x35   : > { %p6486_p0 = pnand %p6484_p10, %p6481_p9 }
  0x37   : > { %6489 = shalt.err (!%p6486_p0)
}
  0x38   : > { %s6490_s15 = scalar_lea.vmem %s228_s19, 32  ;;  %p6498_p6 = scmp.lt.s32.totalorder %s228_s19, %s228_s19 }
  0x39   : > { %p6491_p1 = scmp.ne.s32.totalorder %s228_s19, %s6490_s15  ;;  %p6499_p7 = scmp.lt.s32.totalorder %s6490_s15, %s6490_s15 }
  0x3b   : > { %p6493_p3 = pnand %p6491_p1, %p6738_p2  ;;  %p6500_p11 = por %p6499_p7, %p6498_p6 }
  0x3d   : > { %p6494_p4 = pneg %p6493_p3 }
  0x3f   : > { %p6501_p13 = pnand %p6500_p11, %p6494_p4 }
  0x41   : > { %6504 = shalt.err (!%p6501_p13)
}
  0x42   : > { %5688 = dma.hbm_to_vmem [thread:$0]  (!%p6719_p12), %s8028_s2, 32, %s228_s19, [#allocation8]  }
  0x43   : > { %s255_s7 = sand.u32 1, %s6609_s29   ;;  %s6505_s11 = scalar_lea.hbm %s8030_s4, 64 }
  0x44   : > { %p6506_p5 = scmp.ne.s32.totalorder %s8030_s4, %s6505_s11  ;;  %p6512_p10 = scmp.lt.u32.totalorder %s6505_s11, %s8030_s4 }
  0x46   : > { %p6508_p8 = pnand %p6506_p5, %p6738_p2 }
  0x48   : > { %p6509_p9 = pneg %p6508_p8 }
  0x4a   : > { %p6514_p0 = pnand %p6512_p10, %p6509_p9 }
  0x4c   : > { %6517 = shalt.err (!%p6514_p0)
}
  0x4d   : > { %s6518_s19 = scalar_lea.vmem %s239_s21, 64  ;;  %p6526_p6 = scmp.lt.s32.totalorder %s239_s21, %s239_s21 }
  0x4e   : > { %p6519_p1 = scmp.ne.s32.totalorder %s239_s21, %s6518_s19  ;;  %p6527_p7 = scmp.lt.s32.totalorder %s6518_s19, %s6518_s19 }
  0x50   : > { %p6521_p3 = pnand %p6519_p1, %p6738_p2  ;;  %p6528_p11 = por %p6527_p7, %p6526_p6 }
  0x52   : > { %p6522_p4 = pneg %p6521_p3 }
  0x54   : > { %p6529_p13 = pnand %p6528_p11, %p6522_p4 }
  0x56   : > { %6532 = shalt.err (!%p6529_p13)
}
  0x57   : > { %5691 = dma.hbm_to_vmem [thread:$0]  (!%p6719_p12), %s8030_s4, 64, %s239_s21, [#allocation8]  }
  0x58   : > { %s257_s26 = sand.u32 1, %s6605_s28   ;;  %s5473_s23 = smul.u32 50176, %s6609_s29 }
  0x59   : > { %s5666_s15 = smul.u32 3136, %s257_s26  ;;  %s6800_s11 = scalar_lea.sflag [#allocation6], %s255_s7 }
  0x5a   : > { %s6796_s30 = scalar_lea.hbm %s8029_s3, %s5473_s23  ;;  %p8049_p2 = scmp.ne.s32.totalorder %s8047_s17, 0 }
  0x5b   : > { %s259_s16 = scalar_lea.vmem [#allocation9], %s5666_s15  ;;  %s6533_s14 = scalar_lea.hbm %s6796_s30, 50176 }
  0x5c   : > { %s267_s9 = sshll.u32 %s259_s16, 4  ;;  %p6534_p12 = scmp.ne.s32.totalorder %s6796_s30, %s6533_s14  ;;  %s6798_s9 = int_to_ptr.vmem [resolvable:$true] %s267_s9 }
  0x5d   : > { %p6535_p5 = pneg %p8049_p2  ;;  %s6538_s18 = scalar_lea.hbm %s8029_s3, 100352 }
  0x5e   : > { %p6539_p10 = scmp.lt.u32.totalorder %s6796_s30, %s8029_s3  ;;  %p6540_p0 = scmp.lt.u32.totalorder %s6538_s18, %s6533_s14 }
  0x5f   : > { %p6536_p8 = pnand %p6535_p5, %p6534_p12  ;;  %p6542_p3 = scmp.lt.u32.totalorder %s6533_s14, %s6796_s30 }
  0x60   : > { %p6541_p1 = por %p6540_p0, %p6539_p10 }
  0x61   : > { %p6537_p9 = pneg %p6536_p8 }
  0x62   : > { %p6543_p4 = por %p6542_p3, %p6541_p1 }
  0x64   : > { %p6544_p6 = pnand %p6543_p4, %p6537_p9 }
  0x66   : > { %6547 = shalt.err (!%p6544_p6)
}
  0x67   : > { %s6548_s7 = scalar_lea.vmem %s6798_s9, 50176  ;;  %s6616_s19 = smov [#allocation9]  }
  0x68   : > { %p6549_p7 = scmp.ne.s32.totalorder %s6798_s9, %s6548_s7  ;;  %s6553_s24 = sshll.u32 %s6616_s19, 4  ;;  %s6554_s24 = int_to_ptr.vmem [resolvable:$false] %s6553_s24 }
  0x69   : > { %s6555_s25 = scalar_lea.vmem %s6554_s24, 100352  ;;  %p6556_p12 = scmp.lt.s32.totalorder %s6798_s9, %s6554_s24 }
  0x6a   : > { %p6551_p11 = pnand %p6549_p7, %p6535_p5  ;;  %p6557_p8 = scmp.lt.s32.totalorder %s6555_s25, %s6548_s7 }
  0x6c   : > { %p6552_p13 = pneg %p6551_p11  ;;  %p6558_p10 = por %p6557_p8, %p6556_p12 }
  0x6e   : > { %p6559_p0 = pnand %p6558_p10, %p6552_p13 }
  0x70   : > { %6562 = shalt.err (!%p6559_p0)
}
  0x71   : > { %s6617_s26 = smov 256   ;;  %s6618_s15 = smov 16  }
  0x72   : > { %5695 = dma.hbm_to_vmem [thread:$0]  (!%p8049_p2), %s6796_s30, 50176, %s6798_s9, %s6800_s11, %s6617_s26, %s6617_s26, %s6618_s15  }
  0x73   : > { %p8050_p5 = scmp.ne.s32.totalorder %s8045_s13, 0 }
  0x74   : > { %p8051_p9 = scmp.eq.s32.totalorder (!%p8050_p5), %s6682_s6, 0 }
  0x75   : > { %279 = sbr.rel (%p8050_p5) target bundleno = 1391 (0x56f), region = 48 }
  0x7c   : > { %6580 = dma.done.wait (%p8051_p9), [#allocation6], 6144   ;;  %p8052_p1 = pmov %p8051_p9 }
  0x7e   : > { %6582 = vsyncadd (%p8052_p1), [#allocation6], 4294961152  ;;  %p8053_p3 = pmov %p8052_p1 }
  0x7f   : > { %p8054_p4 = pmov %p8052_p1 }
  0x80   : > { %6584 = dma.done.wait (%p8053_p3), [#allocation8], 32  }
  0x81   : > { %6586 = vsyncadd (%p8054_p4), [#allocation8], 4294967264  ;;  %s289_s17 = sand.u32 1, %s6682_s6   ;;  %s291_s23 = sand.u32 1, %s6601_s27  }
  0x82   : > { %s5667_s10 = smul.u32 3136, %s291_s23  ;;  %s290_s13 = scalar_lea.sflag [#allocation6], %s289_s17 }
  0x83   : > { %p8055_p2 = scmp.ne.s32.totalorder %s8044_s12, 0 }
  0x84   : > { %s6840_s8 = scalar_lea.vmem [#allocation9], %s5667_s10 }
  0x85   : > { %6588 = dma.done.wait (%p8055_p2), %s290_s13, 50176  }
  0x86   : > { %6590 = vsyncadd (%p8055_p2), %s290_s13, 4294917120  ;;  %p8056_p6 = pmov %p8052_p1 }
  0x87   : > { %p8057_p7 = pmov %p8052_p1 }
  0x88   : > { %6592 = dma.done.wait (%p8056_p6), [#allocation8], 64  }
  0x89   : > { %6594 = vsyncadd (%p8057_p7), [#allocation8], 4294967232  ;;  %p8058_p11 = scmp.ne.s32.totalorder %s6682_s6, 0 }
  0x8a   : > { %v6852_v0 = vld [vmem:[#allocation5 + $0x4] ss:$8 sps:$4 sm:$0xff] (!%p8058_p11)   ;;  %v6857_v2 = vld [vmem:[#allocation5] ss:$8 sps:$4 sm:$0xff] (!%p8058_p11)   ;;  %v6862_v4 = vld [vmem:[#allocation5 + $0x14] ss:$8 sps:$4 sm:$0xff] (!%p8058_p11)  }
  0x8b   : > { %328 = sbr.rel (%p8058_p11) target bundleno = 515 (0x203), region = 68  ;;  %v6854_v1 = vld [vmem:[#allocation5 + $0xc4] ss:$8 sps:$4 sm:$0xff] (!%p8058_p11)   ;;  %584 = vmatprep.subr.bf16.mxu0 (!%p8058_p11), %v6852_v0  ;;  %v6859_v3 = vld [vmem:[#allocation5 + $0xc0] ss:$8 sps:$4 sm:$0xff] (!%p8058_p11)   ;;  %vm562_vm0 = vcmask (!%p8058_p11), 523264  }
  0x8c   : > { %888 = vmatprep.subr.bf16.mxu1 (!%p8058_p11), %v6854_v1  ;;  %585 = vmatpush1.bf16.msra.mxu0 (!%p8058_p11), %v6857_v2  ;;  %v6866_v5 = vld [vmem:[#allocation5 + $0xd4] ss:$8 sps:$4 sm:$0xff] (!%p8058_p11)   ;;  %v6868_v6 = vld [vmem:[#allocation5 + $0x10] ss:$8 sps:$4 sm:$0xff] (!%p8058_p11)   ;;  %v6874_v8 = vld [vmem:[#allocation5 + $0x24] ss:$8 sps:$4 sm:$0xff] (!%p8058_p11)  }
  0x8d   : > { %889 = vmatpush1.bf16.msra.mxu1 (!%p8058_p11), %v6859_v3  ;;  %586 = vmatprep.subr.bf16.mxu0 (!%p8058_p11), %v6862_v4  ;;  %v6871_v7 = vld [vmem:[#allocation5 + $0xd0] ss:$8 sps:$4 sm:$0xff] (!%p8058_p11)   ;;  %v6876_v9 = vld [vmem:[#allocation5 + $0xe4] ss:$8 sps:$4 sm:$0xff] (!%p8058_p11)   ;;  %v6878_v10 = vld [vmem:[#allocation5 + $0x20] ss:$8 sps:$4 sm:$0xff] (!%p8058_p11)  }
  0x8e   : > { %890 = vmatprep.subr.bf16.mxu1 (!%p8058_p11), %v6866_v5  ;;  %v6880_v11 = vld [vmem:[#allocation5 + $0xe0] ss:$8 sps:$4 sm:$0xff] (!%p8058_p11)   ;;  %v6884_v12 = vld [vmem:[#allocation5 + $0x34] ss:$8 sps:$4 sm:$0xff] (!%p8058_p11)   ;;  %v6890_v14 = vld [vmem:[#allocation5 + $0x30] ss:$8 sps:$4 sm:$0xff] (!%p8058_p11)  }
  0x8f   : > { %v6888_v13 = vld [vmem:[#allocation5 + $0xf4] ss:$8 sps:$4 sm:$0xff] (!%p8058_p11)   ;;  %v6894_v15 = vld [vmem:[#allocation5 + $0xf0] ss:$8 sps:$4 sm:$0xff] (!%p8058_p11)   ;;  %v6896_v16 = vld [vmem:[#allocation5 + $0x44] ss:$8 sps:$4 sm:$0xff] (!%p8058_p11)  }
  0x90   : > { %587 = vmatpush1.bf16.msra.mxu0 (!%p8058_p11), %v6868_v6  ;;  %v6900_v17 = vld [vmem:[#allocation5 + $0x104] ss:$8 sps:$4 sm:$0xff] (!%p8058_p11)   ;;  %v6902_v18 = vld [vmem:[#allocation5 + $0x40] ss:$8 sps:$4 sm:$0xff] (!%p8058_p11)   ;;  %v6908_v20 = vld [vmem:[#allocation5 + $0x54] ss:$8 sps:$4 sm:$0xff] (!%p8058_p11)  }
  0x91   : > { %891 = vmatpush1.bf16.msra.mxu1 (!%p8058_p11), %v6871_v7  ;;  %588 = vmatprep.subr.bf16.mxu0 (!%p8058_p11), %v6874_v8  ;;  %v6904_v19 = vld [vmem:[#allocation5 + $0x100] ss:$8 sps:$4 sm:$0xff] (!%p8058_p11)   ;;  %v6912_v21 = vld [vmem:[#allocation5 + $0x114] ss:$8 sps:$4 sm:$0xff] (!%p8058_p11)   ;;  %v6914_v22 = vld [vmem:[#allocation5 + $0x50] ss:$8 sps:$4 sm:$0xff] (!%p8058_p11)  }
  0x92   : > { %892 = vmatprep.subr.bf16.mxu1 %v6876_v9  ;;  %v6918_v23 = vld [vmem:[#allocation5 + $0x110] ss:$8 sps:$4 sm:$0xff]   ;;  %v6920_v24 = vld [vmem:[#allocation5 + $0x64] ss:$8 sps:$4 sm:$0xff]   ;;  %v6926_v26 = vld [vmem:[#allocation5 + $0x60] ss:$8 sps:$4 sm:$0xff]  }
  0x93   : > { %v6924_v25 = vld [vmem:[#allocation5 + $0x124] ss:$8 sps:$4 sm:$0xff]   ;;  %v6928_v27 = vld [vmem:[#allocation5 + $0x120] ss:$8 sps:$4 sm:$0xff]   ;;  %v6932_v28 = vld [vmem:[#allocation5 + $0x74] ss:$8 sps:$4 sm:$0xff]  }
  0x94   : > { %589 = vmatpush1.bf16.msra.mxu0 %v6878_v10  ;;  %v6936_v29 = vld [vmem:[#allocation5 + $0x134] ss:$8 sps:$4 sm:$0xff]   ;;  %v6938_v30 = vld [vmem:[#allocation5 + $0x70] ss:$8 sps:$4 sm:$0xff]   ;;  %v6944_v32 = vld [vmem:[#allocation5 + $0x84] ss:$8 sps:$4 sm:$0xff]  }
  0x95   : > { %893 = vmatpush1.bf16.msra.mxu1 %v6880_v11  ;;  %590 = vmatprep.subr.bf16.mxu0 %v6884_v12  ;;  %v6942_v31 = vld [vmem:[#allocation5 + $0x130] ss:$8 sps:$4 sm:$0xff]   ;;  %v6948_v33 = vld [vmem:[#allocation5 + $0x144] ss:$8 sps:$4 sm:$0xff]   ;;  %v6950_v34 = vld [vmem:[#allocation5 + $0x80] ss:$8 sps:$4 sm:$0xff]  }
  0x96   : > { %894 = vmatprep.subr.bf16.mxu1 %v6888_v13  ;;  %v6952_v35 = vld [vmem:[#allocation5 + $0x140] ss:$8 sps:$4 sm:$0xff]   ;;  %v6954_v36 = vld [vmem:[#allocation5 + $0x94] ss:$8 sps:$4 sm:$0xff]   ;;  %v5817_v38 = vld [vmem:[%s8026_s0 + $0x4] ss:$8 sps:$4 sm:$0xff]  }
  0x97   : > { %v6958_v37 = vld [vmem:[#allocation5 + $0x154] ss:$8 sps:$4 sm:$0xff]   ;;  %v6965_v39 = vld [vmem:[#allocation5 + $0x90] ss:$8 sps:$4 sm:$0xff]   ;;  %4943 = vmatprep.mubr.msk.bf16.mxu0 %vm562_vm0, %v5817_v38  ;;  %4974 = vmatprep.mubr.msk.bf16.mxu1 %vm562_vm0, %v5817_v38  ;;  %v6973_v41 = vld [vmem:[#allocation5 + $0xa4] ss:$8 sps:$4 sm:$0xff]  }
  0x98   : > { %591 = vmatpush1.bf16.msra.mxu0 %v6890_v14  ;;  %v6967_v40 = vld [vmem:[#allocation5 + $0x150] ss:$8 sps:$4 sm:$0xff]   ;;  %v6977_v42 = vld [vmem:[#allocation5 + $0x164] ss:$8 sps:$4 sm:$0xff]   ;;  %v6979_v43 = vld [vmem:[#allocation5 + $0xa0] ss:$8 sps:$4 sm:$0xff]  }
  0x99   : > { %895 = vmatpush1.bf16.msra.mxu1 %v6894_v15  ;;  %592 = vmatprep.subr.bf16.mxu0 %v6896_v16  ;;  %v6981_v44 = vld [vmem:[#allocation5 + $0x160] ss:$8 sps:$4 sm:$0xff]   ;;  %v6985_v45 = vld [vmem:[#allocation5 + $0xb4] ss:$8 sps:$4 sm:$0xff]   ;;  %v6991_v47 = vld [vmem:[#allocation5 + $0xb0] ss:$8 sps:$4 sm:$0xff]  }
  0x9a   : > { %896 = vmatprep.subr.bf16.mxu1 %v6900_v17  ;;  %v6989_v46 = vld [vmem:[#allocation5 + $0x174] ss:$8 sps:$4 sm:$0xff]   ;;  %v6995_v48 = vld [vmem:[#allocation5 + $0x170] ss:$8 sps:$4 sm:$0xff]   ;;  %v5815_v49 = vld [vmem:[%s8026_s0] ss:$8 sps:$4 sm:$0xff]  }
  0x9b   : > { %v5818_v50 = vld [vmem:[%s8026_s0 + $0x14] ss:$8 sps:$4 sm:$0xff]   ;;  %v5820_v51 = vld [vmem:[%s8026_s0 + $0x10] ss:$8 sps:$4 sm:$0xff]   ;;  %v5821_v52 = vld [vmem:[%s8026_s0 + $0x24] ss:$8 sps:$4 sm:$0xff]  }
  0x9c   : > { %593 = vmatpush1.bf16.msra.mxu0 %v6902_v18  ;;  %v5823_v53 = vld [vmem:[%s8026_s0 + $0x20] ss:$8 sps:$4 sm:$0xff]   ;;  %v5824_v54 = vld [vmem:[%s8026_s0 + $0x34] ss:$8 sps:$4 sm:$0xff]   ;;  %v5826_v55 = vld [vmem:[%s8026_s0 + $0x30] ss:$8 sps:$4 sm:$0xff]  }
  0x9d   : > { %897 = vmatpush1.bf16.msra.mxu1 %v6904_v19  ;;  %594 = vmatprep.subr.bf16.mxu0 %v6908_v20  ;;  %v5827_v56 = vld [vmem:[%s8026_s0 + $0x44] ss:$8 sps:$4 sm:$0xff]   ;;  %v5829_v57 = vld [vmem:[%s8026_s0 + $0x40] ss:$8 sps:$4 sm:$0xff]   ;;  %v5830_v58 = vld [vmem:[%s8026_s0 + $0x54] ss:$8 sps:$4 sm:$0xff]  }
  0x9e   : > { %898 = vmatprep.subr.bf16.mxu1 %v6912_v21  ;;  %v5832_v59 = vld [vmem:[%s8026_s0 + $0x50] ss:$8 sps:$4 sm:$0xff]   ;;  %v5833_v60 = vld [vmem:[%s8026_s0 + $0x64] ss:$8 sps:$4 sm:$0xff]   ;;  %v5835_v61 = vld [vmem:[%s8026_s0 + $0x60] ss:$8 sps:$4 sm:$0xff]  }
  0x9f   : > { %v5838_v62 = vld [vmem:[%s8026_s0 + $0x74] ss:$8 sps:$4 sm:$0xff]   ;;  %v5836_v63 = vld [vmem:[%s8026_s0 + $0x70] ss:$8 sps:$4 sm:$0xff]   ;;  %vm1465_vm1 = vcmask 785408  }
  0xa0   : > { %595 = vmatpush1.bf16.msra.mxu0 %v6914_v22 }
  0xa1   : > { %899 = vmatpush1.bf16.msra.mxu1 %v6918_v23  ;;  %596 = vmatprep.subr.bf16.mxu0 %v6920_v24 }
  0xa2   : > { %900 = vmatprep.subr.bf16.mxu1 %v6924_v25 }
  0xa4   : > { %597 = vmatpush1.bf16.msra.mxu0 %v6926_v26 }
  0xa5   : > { %901 = vmatpush1.bf16.msra.mxu1 %v6928_v27  ;;  %598 = vmatprep.subr.bf16.mxu0 %v6932_v28 }
  0xa6   : > { %902 = vmatprep.subr.bf16.mxu1 %v6936_v29 }
  0xa8   : > { %599 = vmatpush1.bf16.msra.mxu0 %v6938_v30 }
  0xa9   : > { %903 = vmatpush1.bf16.msra.mxu1 %v6942_v31  ;;  %600 = vmatprep.subr.bf16.mxu0 %v6944_v32 }
  0xaa   : > { %904 = vmatprep.subr.bf16.mxu1 %v6948_v33 }
  0xac   : > { %601 = vmatpush1.bf16.msra.mxu0 %v6950_v34 }
  0xad   : > { %905 = vmatpush1.bf16.msra.mxu1 %v6952_v35  ;;  %602 = vmatprep.subr.bf16.mxu0 %v6954_v36 }
  0xae   : > { %906 = vmatprep.subr.bf16.mxu1 %v6958_v37 }
  0xb0   : > { %603 = vmatpush1.bf16.msra.mxu0 %v6965_v39 }
  0xb1   : > { %907 = vmatpush1.bf16.msra.mxu1 %v6967_v40  ;;  %604 = vmatprep.subr.bf16.mxu0 %v6973_v41 }
  0xb2   : > { %908 = vmatprep.subr.bf16.mxu1 %v6977_v42 }
  0xb4   : > { %605 = vmatpush1.bf16.msra.mxu0 %v6979_v43 }
  0xb5   : > { %909 = vmatpush1.bf16.msra.mxu1 %v6981_v44  ;;  %606 = vmatprep.subr.bf16.mxu0 %v6985_v45 }
  0xb6   : > { %910 = vmatprep.subr.bf16.mxu1 %v6989_v46 }
  0xb8   : > { %607 = vmatpush1.bf16.msra.mxu0 %v6991_v47 }
  0xb9   : > { %911 = vmatpush1.bf16.msra.mxu1 %v6995_v48  ;;  %1146 = vmatprep.subr.bf16.mxu0 %v6852_v0  ;;  %v5839_v0 = vld [vmem:[%s8026_s0 + $0x84] ss:$8 sps:$4 sm:$0xff]  }
  0xba   : > { %1305 = vmatprep.subr.bf16.mxu1 %v6854_v1  ;;  %v5841_v1 = vld [vmem:[%s8026_s0 + $0x80] ss:$8 sps:$4 sm:$0xff]  }
  0xbb   : > { %617 = vmatmul.mubr.bf16.vlgmr.msra.gmra.mrb[0].mxu0 %v5815_v49 }
  0xbc   : > { %921 = vmatmul.mubr.bf16.vlgmr.msra.gmra.mrb[0].mxu1 %v5815_v49  ;;  %1147 = vmatpush1.bf16.msra.mxu0 %v6857_v2  ;;  %v5842_v2 = vld [vmem:[%s8026_s0 + $0x94] ss:$8 sps:$4 sm:$0xff]  }
  0xbd   : > { %1306 = vmatpush1.bf16.msra.mxu1 %v6859_v3  ;;  %1148 = vmatprep.subr.bf16.mxu0 %v6862_v4  ;;  %v5844_v3 = vld [vmem:[%s8026_s0 + $0x90] ss:$8 sps:$4 sm:$0xff]   ;;  %v5845_v4 = vld [vmem:[%s8026_s0 + $0xa4] ss:$8 sps:$4 sm:$0xff]  }
  0xbe   : > { %4944 = vmatprep.mubr.msk.bf16.mxu0 %vm562_vm0, %v5818_v50  ;;  %4975 = vmatprep.mubr.msk.bf16.mxu1 %vm562_vm0, %v5818_v50 }
  0xbf   : > { %1307 = vmatprep.subr.bf16.mxu1 %v6866_v5  ;;  %v5847_v5 = vld [vmem:[%s8026_s0 + $0xa0] ss:$8 sps:$4 sm:$0xff]  }
  0xc0   : > { %1149 = vmatpush1.bf16.msra.mxu0 %v6868_v6  ;;  %v5848_v6 = vld [vmem:[%s8026_s0 + $0xb4] ss:$8 sps:$4 sm:$0xff]  }
  0xc1   : > { %1308 = vmatpush1.bf16.msra.mxu1 %v6871_v7  ;;  %1150 = vmatprep.subr.bf16.mxu0 %v6874_v8  ;;  %v5850_v7 = vld [vmem:[%s8026_s0 + $0xb0] ss:$8 sps:$4 sm:$0xff]   ;;  %v5851_v8 = vld [vmem:[%s8026_s0 + $0xc4] ss:$8 sps:$4 sm:$0xff]  }
  0xc2   : > { %1309 = vmatprep.subr.bf16.mxu1 %v6876_v9  ;;  %v5853_v9 = vld [vmem:[%s8026_s0 + $0xc0] ss:$8 sps:$4 sm:$0xff]  }
  0xc3   : > { %627 = vmatmul.mubr.bf16.gmra.mrb[4].mxu0 %v5820_v51 }
  0xc4   : > { %931 = vmatmul.mubr.bf16.gmra.mrb[4].mxu1 %v5820_v51  ;;  %1151 = vmatpush1.bf16.msra.mxu0 %v6878_v10  ;;  %v5854_v10 = vld [vmem:[%s8026_s0 + $0xd4] ss:$8 sps:$4 sm:$0xff]  }
  0xc5   : > { %1310 = vmatpush1.bf16.msra.mxu1 %v6880_v11  ;;  %1152 = vmatprep.subr.bf16.mxu0 %v6884_v12  ;;  %v5856_v11 = vld [vmem:[%s8026_s0 + $0xd0] ss:$8 sps:$4 sm:$0xff]   ;;  %v369_v12 = vlaneseq }
  0xc6   : > { %4945 = vmatprep.mubr.msk.bf16.mxu0 %vm562_vm0, %v5821_v52  ;;  %4976 = vmatprep.mubr.msk.bf16.mxu1 %vm562_vm0, %v5821_v52 }
  0xc7   : > { %1311 = vmatprep.subr.bf16.mxu1 %v6888_v13  ;;  %v6619_v13 = vmov 0.0  }
  0xc8   : > { %1153 = vmatpush1.bf16.msra.mxu0 %v6890_v14  ;;  %1493 = vst [vmem:[#allocation3] sm:$0xff] %v6619_v13  ;;  %1494 = vst [vmem:[#allocation3 + $0x8] sm:$0xff] %v6619_v13  ;;  %v370_v14 = vshrl.u32 %v369_v12, 7 }
  0xc9   : > { %1312 = vmatpush1.bf16.msra.mxu1 %v6894_v15  ;;  %1154 = vmatprep.subr.bf16.mxu0 %v6896_v16  ;;  %1495 = vst [vmem:[#allocation3 + $0x10] sm:$0xff] %v6619_v13  ;;  %1496 = vst [vmem:[#allocation3 + $0x18] sm:$0xff] %v6619_v13  ;;  %v329_v16 = vld [vmem:[#allocation7] sm:$0x3] }
  0xca   : > { %1313 = vmatprep.subr.bf16.mxu1 %v6900_v17  ;;  %v371_v15 = vsub.s32 0, %v370_v14  ;;  %v375_v17 = vsub.s32 1, %v370_v14 }
  0xcb   : > { %637 = vmatmul.mubr.bf16.gmra.mrb[8].mxu0 %v5823_v53 }
  0xcc   : > { %941 = vmatmul.mubr.bf16.gmra.mrb[8].mxu1 %v5823_v53  ;;  %1155 = vmatpush1.bf16.msra.mxu0 %v6902_v18  ;;  %v7156_v18 = vrot.slane %v329_v16, %v371_v15 }
  0xcd   : > { %1314 = vmatpush1.bf16.msra.mxu1 %v6904_v19  ;;  %4946 = vmatprep.mubr.msk.bf16.mxu0 %vm562_vm0, %v5824_v54  ;;  %v7158_v19 = vrot.slane %v329_v16, %v375_v17 }
  0xce   : > { %4977 = vmatprep.mubr.msk.bf16.mxu1 %vm562_vm0, %v5824_v54  ;;  %1156 = vmatprep.subr.bf16.mxu0 %v6908_v20 }
  0xcf   : > { %1315 = vmatprep.subr.bf16.mxu1 %v6912_v21 }
  0xd0   : > { %1157 = vmatpush1.bf16.msra.mxu0 %v6914_v22 }
  0xd1   : > { %1316 = vmatpush1.bf16.msra.mxu1 %v6918_v23  ;;  %1158 = vmatprep.subr.bf16.mxu0 %v6920_v24 }
  0xd2   : > { %1317 = vmatprep.subr.bf16.mxu1 %v6924_v25 }
  0xd3   : > { %647 = vmatmul.mubr.bf16.gmra.mrb[12].mxu0 %v5826_v55 }
  0xd4   : > { %951 = vmatmul.mubr.bf16.gmra.mrb[12].mxu1 %v5826_v55  ;;  %1159 = vmatpush1.bf16.msra.mxu0 %v6926_v26 }
  0xd5   : > { %4947 = vmatprep.mubr.msk.bf16.mxu0 %vm562_vm0, %v5827_v56  ;;  %4978 = vmatprep.mubr.msk.bf16.mxu1 %vm562_vm0, %v5827_v56 }
  0xd6   : > { %1318 = vmatpush1.bf16.msra.mxu1 %v6928_v27  ;;  %1160 = vmatprep.subr.bf16.mxu0 %v6932_v28 }
  0xd7   : > { %1319 = vmatprep.subr.bf16.mxu1 %v6936_v29 }
  0xd8   : > { %1161 = vmatpush1.bf16.msra.mxu0 %v6938_v30 }
  0xd9   : > { %1162 = vmatprep.subr.bf16.mxu0 %v6944_v32 }
  0xda   : > { %1320 = vmatpush1.bf16.msra.mxu1 %v6942_v31 }
  0xdb   : > { %1321 = vmatprep.subr.bf16.mxu1 %v6948_v33  ;;  %657 = vmatmul.mubr.bf16.gmra.mrb[16].mxu0 %v5829_v57 }
  0xdc   : > { %961 = vmatmul.mubr.bf16.gmra.mrb[16].mxu1 %v5829_v57  ;;  %4948 = vmatprep.mubr.msk.bf16.mxu0 %vm562_vm0, %v5830_v58 }
  0xdd   : > { %4979 = vmatprep.mubr.msk.bf16.mxu1 %vm562_vm0, %v5830_v58  ;;  %1163 = vmatpush1.bf16.msra.mxu0 %v6950_v34 }
  0xde   : > { %1322 = vmatpush1.bf16.msra.mxu1 %v6952_v35  ;;  %1164 = vmatprep.subr.bf16.mxu0 %v6954_v36 }
  0xdf   : > { %1323 = vmatprep.subr.bf16.mxu1 %v6958_v37 }
  0xe1   : > { %1165 = vmatpush1.bf16.msra.mxu0 %v6965_v39 }
  0xe2   : > { %1324 = vmatpush1.bf16.msra.mxu1 %v6967_v40  ;;  %1166 = vmatprep.subr.bf16.mxu0 %v6973_v41 }
  0xe3   : > { %1325 = vmatprep.subr.bf16.mxu1 %v6977_v42  ;;  %667 = vmatmul.mubr.bf16.gmra.mrb[20].mxu0 %v5832_v59 }
  0xe4   : > { %971 = vmatmul.mubr.bf16.gmra.mrb[20].mxu1 %v5832_v59  ;;  %4949 = vmatprep.mubr.msk.bf16.mxu0 %vm562_vm0, %v5833_v60 }
  0xe5   : > { %4980 = vmatprep.mubr.msk.bf16.mxu1 %vm562_vm0, %v5833_v60  ;;  %1167 = vmatpush1.bf16.msra.mxu0 %v6979_v43 }
  0xe6   : > { %1326 = vmatpush1.bf16.msra.mxu1 %v6981_v44  ;;  %1168 = vmatprep.subr.bf16.mxu0 %v6985_v45 }
  0xe7   : > { %1327 = vmatprep.subr.bf16.mxu1 %v6989_v46 }
  0xe9   : > { %1169 = vmatpush1.bf16.msra.mxu0 %v6991_v47 }
  0xea   : > { %1328 = vmatpush1.bf16.msra.mxu1 %v6995_v48 }
  0xeb   : > { %677 = vmatmul.mubr.bf16.gmra.mrb[24].mxu0 %v5835_v61 }
  0xec   : > { %981 = vmatmul.mubr.bf16.gmra.mrb[24].mxu1 %v5835_v61  ;;  %5009 = vmatprep.mubr.msk.bf16.mxu0 %vm562_vm0, %v5838_v62 }
  0xed   : > { %5016 = vmatprep.mubr.msk.bf16.mxu1 %vm562_vm0, %v5838_v62 }
  0xf3   : > { %1179 = vmatmul.mubr.bf16.vlgmr.msra.gmra.mrb[28].mxu0 %v5836_v63 }
  0xf4   : > { %1338 = vmatmul.mubr.bf16.vlgmr.msra.gmra.mrb[28].mxu1 %v5836_v63  ;;  %5010 = vmatprep.mubr.msk.bf16.mxu0 %vm562_vm0, %v5839_v0 }
  0xf5   : > { %5017 = vmatprep.mubr.msk.bf16.mxu1 %vm562_vm0, %v5839_v0 }
  0xfb   : > { %1189 = vmatmul.mubr.bf16.gmra.mrb[32].mxu0 %v5841_v1 }
  0xfc   : > { %1348 = vmatmul.mubr.bf16.gmra.mrb[32].mxu1 %v5841_v1  ;;  %5011 = vmatprep.mubr.msk.bf16.mxu0 %vm562_vm0, %v5842_v2 }
  0xfd   : > { %5018 = vmatprep.mubr.msk.bf16.mxu1 %vm562_vm0, %v5842_v2 }
 0x103   : > { %1199 = vmatmul.mubr.bf16.gmra.mrb[36].mxu0 %v5844_v3 }
 0x104   : > { %1358 = vmatmul.mubr.bf16.gmra.mrb[36].mxu1 %v5844_v3  ;;  %5012 = vmatprep.mubr.msk.bf16.mxu0 %vm562_vm0, %v5845_v4 }
 0x105   : > { %5019 = vmatprep.mubr.msk.bf16.mxu1 %vm562_vm0, %v5845_v4 }
 0x10b   : > { %1209 = vmatmul.mubr.bf16.gmra.mrb[40].mxu0 %v5847_v5 }
 0x10c   : > { %1368 = vmatmul.mubr.bf16.gmra.mrb[40].mxu1 %v5847_v5  ;;  %5013 = vmatprep.mubr.msk.bf16.mxu0 %vm562_vm0, %v5848_v6 }
 0x10d   : > { %5020 = vmatprep.mubr.msk.bf16.mxu1 %vm562_vm0, %v5848_v6 }
 0x113   : > { %1219 = vmatmul.mubr.bf16.gmra.mrb[44].mxu0 %v5850_v7 }
 0x114   : > { %1378 = vmatmul.mubr.bf16.gmra.mrb[44].mxu1 %v5850_v7  ;;  %5014 = vmatprep.mubr.msk.bf16.mxu0 %vm562_vm0, %v5851_v8 }
 0x115   : > { %5021 = vmatprep.mubr.msk.bf16.mxu1 %vm562_vm0, %v5851_v8 }
 0x11b   : > { %1229 = vmatmul.mubr.bf16.gmra.mrb[48].mxu0 %v5853_v9 }
 0x11c   : > { %1388 = vmatmul.mubr.bf16.gmra.mrb[48].mxu1 %v5853_v9  ;;  %5015 = vmatprep.mubr.msk.bf16.mxu0 %vm562_vm0, %v5854_v10 }
 0x11d   : > { %5022 = vmatprep.mubr.msk.bf16.mxu1 %vm562_vm0, %v5854_v10 }
 0x123   : > { %1239 = vmatmul.mubr.bf16.gmra.mrb[52].mxu0 %v5856_v11 }
 0x124   : > { %1398 = vmatmul.mubr.bf16.gmra.mrb[52].mxu1 %v5856_v11 }
 0x18e   : > { %v618_v20 = vpop.f32.mrb[0].mxu0 }
 0x18f   : > { %v922_v21 = vpop.f32.mrb[0].mxu1  ;;  %v619_v22 = vadd.f32 %v618_v20, %v7156_v18  ;;  %v620_v24 = vpop.f32.mrb[1].mxu0 }
 0x190   : > { %v923_v23 = vadd.f32 %v922_v21, %v7156_v18  ;;  %v924_v25 = vpop.f32.mrb[1].mxu1  ;;  %v621_v26 = vadd.f32 %v620_v24, %v7158_v19  ;;  %v622_v28 = vpop.f32.mrb[2].mxu0 }
 0x191   : > { %v925_v27 = vadd.f32 %v924_v25, %v7158_v19  ;;  %v926_v29 = vpop.f32.mrb[2].mxu1  ;;  %v687_v30 = vmax.f32 %v619_v22, 0.0  ;;  %v623_v32 = vadd.f32 %v622_v28, %v7156_v18  ;;  %v624_v34 = vpop.f32.mrb[3].mxu0 }
 0x192   : > { %v991_v31 = vmax.f32 %v923_v23, 0.0  ;;  %v927_v33 = vadd.f32 %v926_v29, %v7156_v18  ;;  %v928_v35 = vpop.f32.mrb[3].mxu1  ;;  %v688_v36 = vmax.f32 %v621_v26, 0.0  ;;  %v625_v38 = vadd.f32 %v624_v34, %v7158_v19 }
 0x193   : > { %v992_v37 = vmax.f32 %v925_v27, 0.0  ;;  %v929_v39 = vadd.f32 %v928_v35, %v7158_v19  ;;  %v715_v40 = vmax.f32 %v687_v30, 0.0  ;;  %v689_v41 = vmax.f32 %v623_v32, 0.0 }
 0x194   : > { %v716_v42 = vmax.f32 %v688_v36, 0.0  ;;  %v690_v43 = vmax.f32 %v625_v38, 0.0  ;;  %v993_v46 = vmax.f32 %v927_v33, 0.0 }
 0x195   : > { %v7168_v44 = vmax.f32 %v715_v40, %v991_v31  ;;  %v717_v45 = vmax.f32 %v689_v41, 0.0  ;;  %v994_v49 = vmax.f32 %v929_v39, 0.0 }
 0x196   : > { %v7170_v47 = vmax.f32 %v716_v42, %v992_v37  ;;  %v718_v48 = vmax.f32 %v690_v43, 0.0  ;;  %v628_v50 = vpop.f32.mrb[4].mxu0 }
 0x197   : > { %v932_v51 = vpop.f32.mrb[4].mxu1  ;;  %v7172_v52 = vmax.f32 %v717_v45, %v993_v46  ;;  %v629_v53 = vadd.f32 %v628_v50, %v7156_v18  ;;  %v630_v55 = vpop.f32.mrb[5].mxu0 }
 0x198   : > { %v933_v54 = vadd.f32 %v932_v51, %v7156_v18  ;;  %v934_v56 = vpop.f32.mrb[5].mxu1  ;;  %v7176_v57 = vmax.f32 %v718_v48, %v994_v49  ;;  %v631_v58 = vadd.f32 %v630_v55, %v7158_v19  ;;  %v632_v60 = vpop.f32.mrb[6].mxu0 }
 0x199   : > { %v935_v59 = vadd.f32 %v934_v56, %v7158_v19  ;;  %v936_v61 = vpop.f32.mrb[6].mxu1  ;;  %v691_v62 = vmax.f32 %v629_v53, 0.0  ;;  %v633_v0 = vadd.f32 %v632_v60, %v7156_v18  ;;  %v634_v2 = vpop.f32.mrb[7].mxu0 }
 0x19a   : > { %v995_v63 = vmax.f32 %v933_v54, 0.0  ;;  %v937_v1 = vadd.f32 %v936_v61, %v7156_v18  ;;  %v938_v3 = vpop.f32.mrb[7].mxu1  ;;  %v692_v4 = vmax.f32 %v631_v58, 0.0  ;;  %v635_v6 = vadd.f32 %v634_v2, %v7158_v19 }
 0x19b   : > { %v996_v5 = vmax.f32 %v935_v59, 0.0  ;;  %v939_v7 = vadd.f32 %v938_v3, %v7158_v19  ;;  %v719_v8 = vmax.f32 %v691_v62, 0.0  ;;  %v693_v9 = vmax.f32 %v633_v0, 0.0 }
 0x19c   : > { %v720_v10 = vmax.f32 %v692_v4, 0.0  ;;  %v694_v11 = vmax.f32 %v635_v6, 0.0  ;;  %v997_v14 = vmax.f32 %v937_v1, 0.0 }
 0x19d   : > { %v7184_v12 = vmax.f32 %v719_v8, %v995_v63  ;;  %v721_v13 = vmax.f32 %v693_v9, 0.0  ;;  %v998_v17 = vmax.f32 %v939_v7, 0.0 }
 0x19e   : > { %v7186_v15 = vmax.f32 %v720_v10, %v996_v5  ;;  %v722_v16 = vmax.f32 %v694_v11, 0.0  ;;  %v638_v20 = vpop.f32.mrb[8].mxu0 }
 0x19f   : > { %v942_v21 = vpop.f32.mrb[8].mxu1  ;;  %v7188_v22 = vmax.f32 %v721_v13, %v997_v14  ;;  %v639_v23 = vadd.f32 %v638_v20, %v7156_v18  ;;  %v640_v25 = vpop.f32.mrb[9].mxu0 }
 0x1a0   : > { %v943_v24 = vadd.f32 %v942_v21, %v7156_v18  ;;  %v944_v26 = vpop.f32.mrb[9].mxu1  ;;  %v7192_v27 = vmax.f32 %v722_v16, %v998_v17  ;;  %v641_v28 = vadd.f32 %v640_v25, %v7158_v19  ;;  %v642_v30 = vpop.f32.mrb[10].mxu0 }
 0x1a1   : > { %v945_v29 = vadd.f32 %v944_v26, %v7158_v19  ;;  %v946_v31 = vpop.f32.mrb[10].mxu1  ;;  %v695_v32 = vmax.f32 %v639_v23, 0.0  ;;  %v643_v34 = vadd.f32 %v642_v30, %v7156_v18  ;;  %v644_v36 = vpop.f32.mrb[11].mxu0 }
 0x1a2   : > { %v999_v33 = vmax.f32 %v943_v24, 0.0  ;;  %v947_v35 = vadd.f32 %v946_v31, %v7156_v18  ;;  %v948_v37 = vpop.f32.mrb[11].mxu1  ;;  %v696_v38 = vmax.f32 %v641_v28, 0.0  ;;  %v645_v40 = vadd.f32 %v644_v36, %v7158_v19 }
 0x1a3   : > { %v1000_v39 = vmax.f32 %v945_v29, 0.0  ;;  %v949_v41 = vadd.f32 %v948_v37, %v7158_v19  ;;  %v723_v42 = vmax.f32 %v695_v32, 0.0  ;;  %v697_v43 = vmax.f32 %v643_v34, 0.0 }
 0x1a4   : > { %v724_v45 = vmax.f32 %v696_v38, 0.0  ;;  %v698_v46 = vmax.f32 %v645_v40, 0.0  ;;  %v1001_v50 = vmax.f32 %v947_v35, 0.0 }
 0x1a5   : > { %v7200_v48 = vmax.f32 %v723_v42, %v999_v33  ;;  %v725_v49 = vmax.f32 %v697_v43, 0.0  ;;  %v1002_v54 = vmax.f32 %v949_v41, 0.0 }
 0x1a6   : > { %v7202_v51 = vmax.f32 %v724_v45, %v1000_v39  ;;  %v726_v53 = vmax.f32 %v698_v46, 0.0  ;;  %v648_v55 = vpop.f32.mrb[12].mxu0 }
 0x1a7   : > { %v952_v56 = vpop.f32.mrb[12].mxu1  ;;  %v7204_v58 = vmax.f32 %v725_v49, %v1001_v50  ;;  %v649_v59 = vadd.f32 %v648_v55, %v7156_v18  ;;  %v650_v61 = vpop.f32.mrb[13].mxu0 }
 0x1a8   : > { %v953_v60 = vadd.f32 %v952_v56, %v7156_v18  ;;  %v954_v62 = vpop.f32.mrb[13].mxu1  ;;  %v7208_v63 = vmax.f32 %v726_v53, %v1002_v54  ;;  %v651_v0 = vadd.f32 %v650_v61, %v7158_v19  ;;  %v652_v2 = vpop.f32.mrb[14].mxu0 }
 0x1a9   : > { %v955_v1 = vadd.f32 %v954_v62, %v7158_v19  ;;  %v956_v3 = vpop.f32.mrb[14].mxu1  ;;  %v699_v4 = vmax.f32 %v649_v59, 0.0  ;;  %v653_v6 = vadd.f32 %v652_v2, %v7156_v18  ;;  %v654_v8 = vpop.f32.mrb[15].mxu0 }
 0x1aa   : > { %v1003_v5 = vmax.f32 %v953_v60, 0.0  ;;  %v957_v7 = vadd.f32 %v956_v3, %v7156_v18  ;;  %v958_v9 = vpop.f32.mrb[15].mxu1  ;;  %v700_v10 = vmax.f32 %v651_v0, 0.0  ;;  %v655_v13 = vadd.f32 %v654_v8, %v7158_v19 }
 0x1ab   : > { %v1004_v11 = vmax.f32 %v955_v1, 0.0  ;;  %v959_v14 = vadd.f32 %v958_v9, %v7158_v19  ;;  %v727_v16 = vmax.f32 %v699_v4, 0.0  ;;  %v701_v17 = vmax.f32 %v653_v6, 0.0 }
 0x1ac   : > { %v728_v20 = vmax.f32 %v700_v10, 0.0  ;;  %v702_v21 = vmax.f32 %v655_v13, 0.0  ;;  %v1005_v25 = vmax.f32 %v957_v7, 0.0 }
 0x1ad   : > { %v7216_v23 = vmax.f32 %v727_v16, %v1003_v5  ;;  %v729_v24 = vmax.f32 %v701_v17, 0.0  ;;  %v1006_v29 = vmax.f32 %v959_v14, 0.0 }
 0x1ae   : > { %v7218_v26 = vmax.f32 %v728_v20, %v1004_v11  ;;  %v730_v28 = vmax.f32 %v702_v21, 0.0  ;;  %v658_v30 = vpop.f32.mrb[16].mxu0 }
 0x1af   : > { %v962_v31 = vpop.f32.mrb[16].mxu1  ;;  %v7220_v32 = vmax.f32 %v729_v24, %v1005_v25  ;;  %v659_v33 = vadd.f32 %v658_v30, %v7156_v18  ;;  %v660_v35 = vpop.f32.mrb[17].mxu0 }
 0x1b0   : > { %v963_v34 = vadd.f32 %v962_v31, %v7156_v18  ;;  %v964_v36 = vpop.f32.mrb[17].mxu1  ;;  %v7224_v37 = vmax.f32 %v730_v28, %v1006_v29  ;;  %v661_v38 = vadd.f32 %v660_v35, %v7158_v19  ;;  %v662_v40 = vpop.f32.mrb[18].mxu0 }
 0x1b1   : > { %v965_v39 = vadd.f32 %v964_v36, %v7158_v19  ;;  %v966_v41 = vpop.f32.mrb[18].mxu1  ;;  %v703_v42 = vmax.f32 %v659_v33, 0.0  ;;  %v663_v45 = vadd.f32 %v662_v40, %v7156_v18  ;;  %v664_v49 = vpop.f32.mrb[19].mxu0 }
 0x1b2   : > { %v1007_v43 = vmax.f32 %v963_v34, 0.0  ;;  %v967_v46 = vadd.f32 %v966_v41, %v7156_v18  ;;  %v968_v50 = vpop.f32.mrb[19].mxu1  ;;  %v704_v53 = vmax.f32 %v661_v38, 0.0  ;;  %v665_v55 = vadd.f32 %v664_v49, %v7158_v19 }
 0x1b3   : > { %v1008_v54 = vmax.f32 %v965_v39, 0.0  ;;  %v969_v56 = vadd.f32 %v968_v50, %v7158_v19  ;;  %v731_v59 = vmax.f32 %v703_v42, 0.0  ;;  %v705_v60 = vmax.f32 %v663_v45, 0.0 }
 0x1b4   : > { %v732_v61 = vmax.f32 %v704_v53, 0.0  ;;  %v706_v62 = vmax.f32 %v665_v55, 0.0  ;;  %v1009_v2 = vmax.f32 %v967_v46, 0.0 }
 0x1b5   : > { %v7232_v0 = vmax.f32 %v731_v59, %v1007_v43  ;;  %v733_v1 = vmax.f32 %v705_v60, 0.0  ;;  %v1010_v5 = vmax.f32 %v969_v56, 0.0 }
 0x1b6   : > { %v7234_v3 = vmax.f32 %v732_v61, %v1008_v54  ;;  %v734_v4 = vmax.f32 %v706_v62, 0.0  ;;  %v668_v6 = vpop.f32.mrb[20].mxu0 }
 0x1b7   : > { %v972_v7 = vpop.f32.mrb[20].mxu1  ;;  %v7236_v8 = vmax.f32 %v733_v1, %v1009_v2  ;;  %v669_v9 = vadd.f32 %v668_v6, %v7156_v18  ;;  %v670_v11 = vpop.f32.mrb[21].mxu0 }
 0x1b8   : > { %v973_v10 = vadd.f32 %v972_v7, %v7156_v18  ;;  %v974_v13 = vpop.f32.mrb[21].mxu1  ;;  %v7240_v14 = vmax.f32 %v734_v4, %v1010_v5  ;;  %v671_v16 = vadd.f32 %v670_v11, %v7158_v19  ;;  %v672_v20 = vpop.f32.mrb[22].mxu0 }
 0x1b9   : > { %v975_v17 = vadd.f32 %v974_v13, %v7158_v19  ;;  %v976_v21 = vpop.f32.mrb[22].mxu1  ;;  %v707_v24 = vmax.f32 %v669_v9, 0.0  ;;  %v673_v28 = vadd.f32 %v672_v20, %v7156_v18  ;;  %v674_v30 = vpop.f32.mrb[23].mxu0 }
 0x1ba   : > { %v1011_v25 = vmax.f32 %v973_v10, 0.0  ;;  %v977_v29 = vadd.f32 %v976_v21, %v7156_v18  ;;  %v978_v31 = vpop.f32.mrb[23].mxu1  ;;  %v708_v33 = vmax.f32 %v671_v16, 0.0  ;;  %v675_v35 = vadd.f32 %v674_v30, %v7158_v19 }
 0x1bb   : > { %v1012_v34 = vmax.f32 %v975_v17, 0.0  ;;  %v979_v36 = vadd.f32 %v978_v31, %v7158_v19  ;;  %v735_v38 = vmax.f32 %v707_v24, 0.0  ;;  %v709_v39 = vmax.f32 %v673_v28, 0.0 }
 0x1bc   : > { %v736_v40 = vmax.f32 %v708_v33, 0.0  ;;  %v710_v41 = vmax.f32 %v675_v35, 0.0  ;;  %v1013_v45 = vmax.f32 %v977_v29, 0.0 }
 0x1bd   : > { %v7248_v42 = vmax.f32 %v735_v38, %v1011_v25  ;;  %v737_v43 = vmax.f32 %v709_v39, 0.0  ;;  %v1014_v50 = vmax.f32 %v979_v36, 0.0 }
 0x1be   : > { %v7250_v46 = vmax.f32 %v736_v40, %v1012_v34  ;;  %v738_v49 = vmax.f32 %v710_v41, 0.0  ;;  %v678_v53 = vpop.f32.mrb[24].mxu0 }
 0x1bf   : > { %v982_v54 = vpop.f32.mrb[24].mxu1  ;;  %v7252_v55 = vmax.f32 %v737_v43, %v1013_v45  ;;  %v679_v56 = vadd.f32 %v678_v53, %v7156_v18  ;;  %v680_v60 = vpop.f32.mrb[25].mxu0 }
 0x1c0   : > { %v983_v59 = vadd.f32 %v982_v54, %v7156_v18  ;;  %v984_v61 = vpop.f32.mrb[25].mxu1  ;;  %v7256_v62 = vmax.f32 %v738_v49, %v1014_v50  ;;  %v681_v1 = vadd.f32 %v680_v60, %v7158_v19  ;;  %v682_v4 = vpop.f32.mrb[26].mxu0 }
 0x1c1   : > { %v985_v2 = vadd.f32 %v984_v61, %v7158_v19  ;;  %v986_v5 = vpop.f32.mrb[26].mxu1  ;;  %v711_v6 = vmax.f32 %v679_v56, 0.0  ;;  %v683_v9 = vadd.f32 %v682_v4, %v7156_v18  ;;  %v684_v11 = vpop.f32.mrb[27].mxu0 }
 0x1c2   : > { %v1015_v7 = vmax.f32 %v983_v59, 0.0  ;;  %v987_v10 = vadd.f32 %v986_v5, %v7156_v18  ;;  %v988_v13 = vpop.f32.mrb[27].mxu1  ;;  %v712_v16 = vmax.f32 %v681_v1, 0.0  ;;  %v685_v20 = vadd.f32 %v684_v11, %v7158_v19 }
 0x1c3   : > { %v1016_v17 = vmax.f32 %v985_v2, 0.0  ;;  %v989_v21 = vadd.f32 %v988_v13, %v7158_v19  ;;  %v739_v24 = vmax.f32 %v711_v6, 0.0  ;;  %v713_v25 = vmax.f32 %v683_v9, 0.0 }
 0x1c4   : > { %v740_v28 = vmax.f32 %v712_v16, 0.0  ;;  %v714_v29 = vmax.f32 %v685_v20, 0.0  ;;  %v1017_v33 = vmax.f32 %v987_v10, 0.0 }
 0x1c5   : > { %v7264_v30 = vmax.f32 %v739_v24, %v1015_v7  ;;  %v741_v31 = vmax.f32 %v713_v25, 0.0  ;;  %v1018_v36 = vmax.f32 %v989_v21, 0.0 }
 0x1c6   : > { %v7266_v34 = vmax.f32 %v740_v28, %v1016_v17  ;;  %v742_v35 = vmax.f32 %v714_v29, 0.0  ;;  %v1180_v38 = vpop.f32.mrb[28].mxu0 }
 0x1c7   : > { %v1339_v39 = vpop.f32.mrb[28].mxu1  ;;  %v7268_v40 = vmax.f32 %v741_v31, %v1017_v33  ;;  %v1181_v41 = vadd.f32 %v1180_v38, %v7156_v18  ;;  %v1182_v45 = vpop.f32.mrb[29].mxu0 }
 0x1c8   : > { %v1340_v43 = vadd.f32 %v1339_v39, %v7156_v18  ;;  %v1341_v49 = vpop.f32.mrb[29].mxu1  ;;  %v7272_v50 = vmax.f32 %v742_v35, %v1018_v36  ;;  %v1183_v53 = vadd.f32 %v1182_v45, %v7158_v19  ;;  %v1184_v56 = vpop.f32.mrb[30].mxu0 }
 0x1c9   : > { %v1342_v54 = vadd.f32 %v1341_v49, %v7158_v19  ;;  %v1343_v59 = vpop.f32.mrb[30].mxu1  ;;  %v1249_v60 = vmax.f32 %v1181_v41, 0.0  ;;  %v1185_v1 = vadd.f32 %v1184_v56, %v7156_v18  ;;  %v1186_v4 = vpop.f32.mrb[31].mxu0 }
 0x1ca   : > { %v1408_v61 = vmax.f32 %v1340_v43, 0.0  ;;  %v1344_v2 = vadd.f32 %v1343_v59, %v7156_v18  ;;  %v1345_v5 = vpop.f32.mrb[31].mxu1  ;;  %v1250_v6 = vmax.f32 %v1183_v53, 0.0  ;;  %v1187_v9 = vadd.f32 %v1186_v4, %v7158_v19 }
 0x1cb   : > { %v1409_v7 = vmax.f32 %v1342_v54, 0.0  ;;  %v1346_v10 = vadd.f32 %v1345_v5, %v7158_v19  ;;  %v1277_v11 = vmax.f32 %v7168_v44, %v1249_v60  ;;  %v1251_v13 = vmax.f32 %v1185_v1, 0.0 }
 0x1cc   : > { %v1278_v16 = vmax.f32 %v7170_v47, %v1250_v6  ;;  %v1252_v17 = vmax.f32 %v1187_v9, 0.0  ;;  %v1410_v24 = vmax.f32 %v1344_v2, 0.0 }
 0x1cd   : > { %v1436_v20 = vmax.f32 %v1277_v11, %v1408_v61  ;;  %v1279_v21 = vmax.f32 %v7172_v52, %v1251_v13  ;;  %v1411_v29 = vmax.f32 %v1346_v10, 0.0 }
 0x1ce   : > { %v1437_v25 = vmax.f32 %v1278_v16, %v1409_v7  ;;  %v1280_v28 = vmax.f32 %v7176_v57, %v1252_v17  ;;  %v1190_v31 = vpop.f32.mrb[32].mxu0 }
 0x1cf   : > { %v1349_v33 = vpop.f32.mrb[32].mxu1  ;;  %1464 = vst [vmem:[#allocation2] sm:$0xff] %v1436_v20  ;;  %v1438_v35 = vmax.f32 %v1279_v21, %v1410_v24  ;;  %v1191_v36 = vadd.f32 %v1190_v31, %v7156_v18  ;;  %v1192_v38 = vpop.f32.mrb[33].mxu0 }
 0x1d0   : > { %v1350_v44 = vadd.f32 %v1349_v33, %v7156_v18  ;;  %v1351_v47 = vpop.f32.mrb[33].mxu1  ;;  %1466 = vst.msk [vmem:[#allocation2 + $0x8] sm:$0xff] %vm1465_vm1, %v1437_v25  ;;  %v1439_v39 = vmax.f32 %v1280_v28, %v1411_v29  ;;  %v1193_v52 = vadd.f32 %v1192_v38, %v7158_v19  ;;  %v1194_v43 = vpop.f32.mrb[34].mxu0 }
 0x1d1   : > { %v1352_v41 = vadd.f32 %v1351_v47, %v7158_v19  ;;  %v1353_v57 = vpop.f32.mrb[34].mxu1  ;;  %1467 = vst [vmem:[#allocation2 + $0x10] sm:$0xff] %v1438_v35  ;;  %v1253_v45 = vmax.f32 %v1191_v36, 0.0  ;;  %v1195_v53 = vadd.f32 %v1194_v43, %v7156_v18  ;;  %v1196_v56 = vpop.f32.mrb[35].mxu0 }
 0x1d2   : > { %v1412_v49 = vmax.f32 %v1350_v44, 0.0  ;;  %v1354_v54 = vadd.f32 %v1353_v57, %v7156_v18  ;;  %v1355_v59 = vpop.f32.mrb[35].mxu1  ;;  %1468 = vst.msk [vmem:[#allocation2 + $0x18] sm:$0xff] %vm1465_vm1, %v1439_v39  ;;  %v1254_v60 = vmax.f32 %v1193_v52, 0.0  ;;  %v1197_v1 = vadd.f32 %v1196_v56, %v7158_v19 }
 0x1d3   : > { %v1413_v61 = vmax.f32 %v1352_v41, 0.0  ;;  %v1356_v2 = vadd.f32 %v1355_v59, %v7158_v19  ;;  %v1281_v4 = vmax.f32 %v7184_v12, %v1253_v45  ;;  %v1255_v5 = vmax.f32 %v1195_v53, 0.0 }
 0x1d4   : > { %v1282_v6 = vmax.f32 %v7186_v15, %v1254_v60  ;;  %v1256_v7 = vmax.f32 %v1197_v1, 0.0  ;;  %v1414_v11 = vmax.f32 %v1354_v54, 0.0 }
 0x1d5   : > { %v1440_v9 = vmax.f32 %v1281_v4, %v1412_v49  ;;  %v1283_v10 = vmax.f32 %v7188_v22, %v1255_v5  ;;  %v1415_v17 = vmax.f32 %v1356_v2, 0.0 }
 0x1d6   : > { %v1441_v13 = vmax.f32 %v1282_v6, %v1413_v61  ;;  %v1284_v16 = vmax.f32 %v7192_v27, %v1256_v7  ;;  %v1200_v20 = vpop.f32.mrb[36].mxu0 }
 0x1d7   : > { %v1359_v21 = vpop.f32.mrb[36].mxu1  ;;  %1469 = vst [vmem:[#allocation2 + $0x20] sm:$0xff] %v1440_v9  ;;  %v1442_v24 = vmax.f32 %v1283_v10, %v1414_v11  ;;  %v1201_v25 = vadd.f32 %v1200_v20, %v7156_v18  ;;  %v1202_v28 = vpop.f32.mrb[37].mxu0 }
 0x1d8   : > { %v1360_v12 = vadd.f32 %v1359_v21, %v7156_v18  ;;  %v1361_v29 = vpop.f32.mrb[37].mxu1  ;;  %1470 = vst.msk [vmem:[#allocation2 + $0x28] sm:$0xff] %vm1465_vm1, %v1441_v13  ;;  %v1443_v15 = vmax.f32 %v1284_v16, %v1415_v17  ;;  %v1203_v22 = vadd.f32 %v1202_v28, %v7158_v19  ;;  %v1204_v33 = vpop.f32.mrb[38].mxu0 }
 0x1d9   : > { %v1362_v31 = vadd.f32 %v1361_v29, %v7158_v19  ;;  %v1363_v27 = vpop.f32.mrb[38].mxu1  ;;  %1471 = vst [vmem:[#allocation2 + $0x30] sm:$0xff] %v1442_v24  ;;  %v1257_v35 = vmax.f32 %v1201_v25, 0.0  ;;  %v1205_v44 = vadd.f32 %v1204_v33, %v7156_v18  ;;  %v1206_v47 = vpop.f32.mrb[39].mxu0 }
 0x1da   : > { %v1416_v36 = vmax.f32 %v1360_v12, 0.0  ;;  %v1364_v38 = vadd.f32 %v1363_v27, %v7156_v18  ;;  %v1365_v39 = vpop.f32.mrb[39].mxu1  ;;  %1472 = vst.msk [vmem:[#allocation2 + $0x38] sm:$0xff] %vm1465_vm1, %v1443_v15  ;;  %v1258_v52 = vmax.f32 %v1203_v22, 0.0  ;;  %v1207_v43 = vadd.f32 %v1206_v47, %v7158_v19 }
 0x1db   : > { %v1417_v41 = vmax.f32 %v1362_v31, 0.0  ;;  %v1366_v57 = vadd.f32 %v1365_v39, %v7158_v19  ;;  %v1285_v45 = vmax.f32 %v7200_v48, %v1257_v35  ;;  %v1259_v49 = vmax.f32 %v1205_v44, 0.0 }
 0x1dc   : > { %v1286_v53 = vmax.f32 %v7202_v51, %v1258_v52  ;;  %v1260_v54 = vmax.f32 %v1207_v43, 0.0  ;;  %v1418_v60 = vmax.f32 %v1364_v38, 0.0 }
 0x1dd   : > { %v1444_v56 = vmax.f32 %v1285_v45, %v1416_v36  ;;  %v1287_v59 = vmax.f32 %v7204_v58, %v1259_v49  ;;  %v1419_v2 = vmax.f32 %v1366_v57, 0.0 }
 0x1de   : > { %v1445_v61 = vmax.f32 %v1286_v53, %v1417_v41  ;;  %v1288_v1 = vmax.f32 %v7208_v63, %v1260_v54  ;;  %v1210_v4 = vpop.f32.mrb[40].mxu0 }
 0x1df   : > { %v1369_v5 = vpop.f32.mrb[40].mxu1  ;;  %1473 = vst [vmem:[#allocation2 + $0x40] sm:$0xff] %v1444_v56  ;;  %v1446_v6 = vmax.f32 %v1287_v59, %v1418_v60  ;;  %v1211_v7 = vadd.f32 %v1210_v4, %v7156_v18  ;;  %v1212_v9 = vpop.f32.mrb[41].mxu0 }
 0x1e0   : > { %v1370_v48 = vadd.f32 %v1369_v5, %v7156_v18  ;;  %v1371_v10 = vpop.f32.mrb[41].mxu1  ;;  %1474 = vst.msk [vmem:[#allocation2 + $0x48] sm:$0xff] %vm1465_vm1, %v1445_v61  ;;  %v1447_v51 = vmax.f32 %v1288_v1, %v1419_v2  ;;  %v1213_v58 = vadd.f32 %v1212_v9, %v7158_v19  ;;  %v1214_v13 = vpop.f32.mrb[42].mxu0 }
 0x1e1   : > { %v1372_v11 = vadd.f32 %v1371_v10, %v7158_v19  ;;  %v1373_v63 = vpop.f32.mrb[42].mxu1  ;;  %1475 = vst [vmem:[#allocation2 + $0x50] sm:$0xff] %v1446_v6  ;;  %v1261_v16 = vmax.f32 %v1211_v7, 0.0  ;;  %v1215_v20 = vadd.f32 %v1214_v13, %v7156_v18  ;;  %v1216_v24 = vpop.f32.mrb[43].mxu0 }
 0x1e2   : > { %v1420_v17 = vmax.f32 %v1370_v48, 0.0  ;;  %v1374_v21 = vadd.f32 %v1373_v63, %v7156_v18  ;;  %v1375_v25 = vpop.f32.mrb[43].mxu1  ;;  %1476 = vst.msk [vmem:[#allocation2 + $0x58] sm:$0xff] %vm1465_vm1, %v1447_v51  ;;  %v1262_v12 = vmax.f32 %v1213_v58, 0.0  ;;  %v1217_v29 = vadd.f32 %v1216_v24, %v7158_v19 }
 0x1e3   : > { %v1421_v28 = vmax.f32 %v1372_v11, 0.0  ;;  %v1376_v15 = vadd.f32 %v1375_v25, %v7158_v19  ;;  %v1289_v22 = vmax.f32 %v7216_v23, %v1261_v16  ;;  %v1263_v31 = vmax.f32 %v1215_v20, 0.0 }
 0x1e4   : > { %v1290_v33 = vmax.f32 %v7218_v26, %v1262_v12  ;;  %v1264_v27 = vmax.f32 %v1217_v29, 0.0  ;;  %v1422_v44 = vmax.f32 %v1374_v21, 0.0 }
 0x1e5   : > { %v1448_v35 = vmax.f32 %v1289_v22, %v1420_v17  ;;  %v1291_v36 = vmax.f32 %v7220_v32, %v1263_v31  ;;  %v1423_v39 = vmax.f32 %v1376_v15, 0.0 }
 0x1e6   : > { %v1449_v38 = vmax.f32 %v1290_v33, %v1421_v28  ;;  %v1292_v47 = vmax.f32 %v7224_v37, %v1264_v27  ;;  %v1220_v52 = vpop.f32.mrb[44].mxu0 }
 0x1e7   : > { %v1379_v41 = vpop.f32.mrb[44].mxu1  ;;  %1477 = vst [vmem:[#allocation2 + $0x60] sm:$0xff] %v1448_v35  ;;  %v1450_v43 = vmax.f32 %v1291_v36, %v1422_v44  ;;  %v1221_v57 = vadd.f32 %v1220_v52, %v7156_v18  ;;  %v1222_v45 = vpop.f32.mrb[45].mxu0 }
 0x1e8   : > { %v1380_v23 = vadd.f32 %v1379_v41, %v7156_v18  ;;  %v1381_v49 = vpop.f32.mrb[45].mxu1  ;;  %1478 = vst.msk [vmem:[#allocation2 + $0x68] sm:$0xff] %vm1465_vm1, %v1449_v38  ;;  %v1451_v26 = vmax.f32 %v1292_v47, %v1423_v39  ;;  %v1223_v32 = vadd.f32 %v1222_v45, %v7158_v19  ;;  %v1224_v54 = vpop.f32.mrb[46].mxu0 }
 0x1e9   : > { %v1382_v53 = vadd.f32 %v1381_v49, %v7158_v19  ;;  %v1383_v37 = vpop.f32.mrb[46].mxu1  ;;  %1479 = vst [vmem:[#allocation2 + $0x70] sm:$0xff] %v1450_v43  ;;  %v1265_v56 = vmax.f32 %v1221_v57, 0.0  ;;  %v1225_v60 = vadd.f32 %v1224_v54, %v7156_v18  ;;  %v1226_v1 = vpop.f32.mrb[47].mxu0 }
 0x1ea   : > { %v1424_v59 = vmax.f32 %v1380_v23, 0.0  ;;  %v1384_v61 = vadd.f32 %v1383_v37, %v7156_v18  ;;  %v1385_v2 = vpop.f32.mrb[47].mxu1  ;;  %1480 = vst.msk [vmem:[#allocation2 + $0x78] sm:$0xff] %vm1465_vm1, %v1451_v26  ;;  %v1266_v4 = vmax.f32 %v1223_v32, 0.0  ;;  %v1227_v6 = vadd.f32 %v1226_v1, %v7158_v19 }
 0x1eb   : > { %v1425_v5 = vmax.f32 %v1382_v53, 0.0  ;;  %v1386_v7 = vadd.f32 %v1385_v2, %v7158_v19  ;;  %v1293_v48 = vmax.f32 %v7232_v0, %v1265_v56  ;;  %v1267_v9 = vmax.f32 %v1225_v60, 0.0 }
 0x1ec   : > { %v1294_v10 = vmax.f32 %v7234_v3, %v1266_v4  ;;  %v1268_v51 = vmax.f32 %v1227_v6, 0.0  ;;  %v1426_v13 = vmax.f32 %v1384_v61, 0.0 }
 0x1ed   : > { %v1452_v58 = vmax.f32 %v1293_v48, %v1424_v59  ;;  %v1295_v11 = vmax.f32 %v7236_v8, %v1267_v9  ;;  %v1427_v17 = vmax.f32 %v1386_v7, 0.0 }
 0x1ee   : > { %v1453_v63 = vmax.f32 %v1294_v10, %v1425_v5  ;;  %v1296_v16 = vmax.f32 %v7240_v14, %v1268_v51  ;;  %v1230_v20 = vpop.f32.mrb[48].mxu0 }
 0x1ef   : > { %v1389_v21 = vpop.f32.mrb[48].mxu1  ;;  %1481 = vst [vmem:[#allocation2 + $0x80] sm:$0xff] %v1452_v58  ;;  %v1454_v24 = vmax.f32 %v1295_v11, %v1426_v13  ;;  %v1231_v25 = vadd.f32 %v1230_v20, %v7156_v18  ;;  %v1232_v12 = vpop.f32.mrb[49].mxu0 }
 0x1f0   : > { %v1390_v0 = vadd.f32 %v1389_v21, %v7156_v18  ;;  %v1391_v28 = vpop.f32.mrb[49].mxu1  ;;  %1482 = vst.msk [vmem:[#allocation2 + $0x88] sm:$0xff] %vm1465_vm1, %v1453_v63  ;;  %v1455_v3 = vmax.f32 %v1296_v16, %v1427_v17  ;;  %v1233_v8 = vadd.f32 %v1232_v12, %v7158_v19  ;;  %v1234_v15 = vpop.f32.mrb[50].mxu0 }
 0x1f1   : > { %v1392_v29 = vadd.f32 %v1391_v28, %v7158_v19  ;;  %v1393_v14 = vpop.f32.mrb[50].mxu1  ;;  %1483 = vst [vmem:[#allocation2 + $0x90] sm:$0xff] %v1454_v24  ;;  %v1269_v22 = vmax.f32 %v1231_v25, 0.0  ;;  %v1235_v33 = vadd.f32 %v1234_v15, %v7156_v18  ;;  %v1236_v35 = vpop.f32.mrb[51].mxu0 }
 0x1f2   : > { %v1428_v31 = vmax.f32 %v1390_v0, 0.0  ;;  %v1394_v27 = vadd.f32 %v1393_v14, %v7156_v18  ;;  %v1395_v36 = vpop.f32.mrb[51].mxu1  ;;  %1484 = vst.msk [vmem:[#allocation2 + $0x98] sm:$0xff] %vm1465_vm1, %v1455_v3  ;;  %v1270_v44 = vmax.f32 %v1233_v8, 0.0  ;;  %v1237_v47 = vadd.f32 %v1236_v35, %v7158_v19 }
 0x1f3   : > { %v1429_v38 = vmax.f32 %v1392_v29, 0.0  ;;  %v1396_v39 = vadd.f32 %v1395_v36, %v7158_v19  ;;  %v1297_v52 = vmax.f32 %v7248_v42, %v1269_v22  ;;  %v1271_v41 = vmax.f32 %v1235_v33, 0.0 }
 0x1f4   : > { %v1298_v43 = vmax.f32 %v7250_v46, %v1270_v44  ;;  %v1272_v57 = vmax.f32 %v1237_v47, 0.0  ;;  %v1430_v49 = vmax.f32 %v1394_v27, 0.0 }
 0x1f5   : > { %v1456_v23 = vmax.f32 %v1297_v52, %v1428_v31  ;;  %v1299_v45 = vmax.f32 %v7252_v55, %v1271_v41  ;;  %v1431_v53 = vmax.f32 %v1396_v39, 0.0 }
 0x1f6   : > { %v1457_v26 = vmax.f32 %v1298_v43, %v1429_v38  ;;  %v1300_v32 = vmax.f32 %v7256_v62, %v1272_v57  ;;  %v1240_v54 = vpop.f32.mrb[52].mxu0 }
 0x1f7   : > { %v1399_v37 = vpop.f32.mrb[52].mxu1  ;;  %1485 = vst [vmem:[#allocation2 + $0xa0] sm:$0xff] %v1456_v23  ;;  %v1458_v56 = vmax.f32 %v1299_v45, %v1430_v49  ;;  %v1241_v59 = vadd.f32 %v1240_v54, %v7156_v18  ;;  %v1242_v60 = vpop.f32.mrb[53].mxu0 }
 0x1f8   : > { %v1400_v42 = vadd.f32 %v1399_v37, %v7156_v18  ;;  %v1401_v61 = vpop.f32.mrb[53].mxu1  ;;  %1486 = vst.msk [vmem:[#allocation2 + $0xa8] sm:$0xff] %vm1465_vm1, %v1457_v26  ;;  %v1459_v46 = vmax.f32 %v1300_v32, %v1431_v53  ;;  %v1243_v55 = vadd.f32 %v1242_v60, %v7158_v19  ;;  %v1244_v2 = vpop.f32.mrb[54].mxu0 }
 0x1f9   : > { %v1402_v1 = vadd.f32 %v1401_v61, %v7158_v19  ;;  %v1403_v62 = vpop.f32.mrb[54].mxu1  ;;  %1487 = vst [vmem:[#allocation2 + $0xb0] sm:$0xff] %v1458_v56  ;;  %v1273_v4 = vmax.f32 %v1241_v59, 0.0  ;;  %v1245_v6 = vadd.f32 %v1244_v2, %v7156_v18  ;;  %v1246_v48 = vpop.f32.mrb[55].mxu0 }
 0x1fa   : > { %v1432_v5 = vmax.f32 %v1400_v42, 0.0  ;;  %v1404_v7 = vadd.f32 %v1403_v62, %v7156_v18  ;;  %v1405_v9 = vpop.f32.mrb[55].mxu1  ;;  %1488 = vst.msk [vmem:[#allocation2 + $0xb8] sm:$0xff] %vm1465_vm1, %v1459_v46  ;;  %v1274_v10 = vmax.f32 %v1243_v55, 0.0  ;;  %v1247_v58 = vadd.f32 %v1246_v48, %v7158_v19 }
 0x1fb   : > { %v1433_v51 = vmax.f32 %v1402_v1, 0.0  ;;  %v1406_v11 = vadd.f32 %v1405_v9, %v7158_v19  ;;  %v1301_v13 = vmax.f32 %v7264_v30, %v1273_v4  ;;  %v1275_v63 = vmax.f32 %v1245_v6, 0.0 }
 0x1fc   : > { %v1302_v16 = vmax.f32 %v7266_v34, %v1274_v10  ;;  %v1276_v17 = vmax.f32 %v1247_v58, 0.0  ;;  %v1434_v18 = vmax.f32 %v1404_v7, 0.0 }
 0x1fd   : > { %v1460_v20 = vmax.f32 %v1301_v13, %v1432_v5  ;;  %v1303_v21 = vmax.f32 %v7268_v40, %v1275_v63  ;;  %v1435_v0 = vmax.f32 %v1406_v11, 0.0 }
 0x1fe   : > { %v1461_v24 = vmax.f32 %v1302_v16, %v1433_v51  ;;  %v1304_v25 = vmax.f32 %v7272_v50, %v1276_v17 }
 0x1ff   : > { %1489 = vst [vmem:[#allocation2 + $0xc0] sm:$0xff] %v1460_v20  ;;  %v1462_v12 = vmax.f32 %v1303_v21, %v1434_v18 }
 0x200   : > { %1490 = vst.msk [vmem:[#allocation2 + $0xc8] sm:$0xff] %vm1465_vm1, %v1461_v24  ;;  %v1463_v28 = vmax.f32 %v1304_v25, %v1435_v0 }
 0x201   : > { %1491 = vst [vmem:[#allocation2 + $0xd0] sm:$0xff] %v1462_v12 }
 0x202   : > { %1492 = vst.msk [vmem:[#allocation2 + $0xd8] sm:$0xff] %vm1465_vm1, %v1463_v28 }
 0x203 PF: > { %v5857_v19 = vld [vmem:[%s6840_s8 + $0x4] ss:$16 sps:$4 sm:$0xff]   ;;  %v5859_v30 = vld [vmem:[%s6840_s8 + $0xc] ss:$16 sps:$4 sm:$0xff]   ;;  %v5861_v34 = vld [vmem:[%s6840_s8] ss:$16 sps:$4 sm:$0xff]  }
 0x204   : > { %1851 = vmatprep.subr.bf16.mxu0 %v5857_v19  ;;  %v5862_v40 = vld [vmem:[%s6840_s8 + $0x8] ss:$16 sps:$4 sm:$0xff]   ;;  %1892 = vmatprep.subr.bf16.mxu1 %v5859_v30  ;;  %v5863_v50 = vld [vmem:[%s6840_s8 + $0x24] ss:$16 sps:$4 sm:$0xff]   ;;  %v5865_v3 = vld [vmem:[%s6840_s8 + $0x2c] ss:$16 sps:$4 sm:$0xff]  }
 0x205   : > { %1852 = vmatpush1.bf16.msra.mxu0 %v5861_v34  ;;  %1893 = vmatpush1.bf16.msra.mxu1 %v5862_v40  ;;  %v5867_v8 = vld [vmem:[%s6840_s8 + $0x20] ss:$16 sps:$4 sm:$0xff]   ;;  %v5868_v29 = vld [vmem:[%s6840_s8 + $0x28] ss:$16 sps:$4 sm:$0xff]   ;;  %v5869_v15 = vld [vmem:[%s6840_s8 + $0x44] ss:$16 sps:$4 sm:$0xff]  }
 0x206   : > { %1853 = vmatprep.subr.bf16.mxu0 %v5863_v50  ;;  %1894 = vmatprep.subr.bf16.mxu1 %v5865_v3  ;;  %v5871_v14 = vld [vmem:[%s6840_s8 + $0x4c] ss:$16 sps:$4 sm:$0xff]   ;;  %v5873_v22 = vld [vmem:[%s6840_s8 + $0x40] ss:$16 sps:$4 sm:$0xff]   ;;  %v5874_v31 = vld [vmem:[%s6840_s8 + $0x48] ss:$16 sps:$4 sm:$0xff]  }
 0x207   : > { %v5875_v33 = vld [vmem:[%s6840_s8 + $0x64] ss:$16 sps:$4 sm:$0xff]   ;;  %v5877_v27 = vld [vmem:[%s6840_s8 + $0x6c] ss:$16 sps:$4 sm:$0xff]   ;;  %v5879_v35 = vld [vmem:[%s6840_s8 + $0x60] ss:$16 sps:$4 sm:$0xff]  }
 0x208   : > { %v5880_v36 = vld [vmem:[%s6840_s8 + $0x68] ss:$16 sps:$4 sm:$0xff]   ;;  %v5881_v44 = vld [vmem:[%s6840_s8 + $0x84] ss:$16 sps:$4 sm:$0xff]   ;;  %v5883_v38 = vld [vmem:[%s6840_s8 + $0x8c] ss:$16 sps:$4 sm:$0xff]  }
 0x209   : > { %1854 = vmatpush1.bf16.msra.mxu0 %v5867_v8  ;;  %1895 = vmatpush1.bf16.msra.mxu1 %v5868_v29  ;;  %v5885_v47 = vld [vmem:[%s6840_s8 + $0x80] ss:$16 sps:$4 sm:$0xff]   ;;  %v5886_v39 = vld [vmem:[%s6840_s8 + $0x88] ss:$16 sps:$4 sm:$0xff]   ;;  %v5887_v52 = vld [vmem:[%s6840_s8 + $0xa4] ss:$16 sps:$4 sm:$0xff]  }
 0x20a   : > { %1855 = vmatprep.subr.bf16.mxu0 %v5869_v15  ;;  %1896 = vmatprep.subr.bf16.mxu1 %v5871_v14  ;;  %v5889_v41 = vld [vmem:[%s6840_s8 + $0xac] ss:$16 sps:$4 sm:$0xff]   ;;  %v5891_v43 = vld [vmem:[%s6840_s8 + $0xa0] ss:$16 sps:$4 sm:$0xff]   ;;  %v5892_v57 = vld [vmem:[%s6840_s8 + $0xa8] ss:$16 sps:$4 sm:$0xff]  }
 0x20b   : > { %v5893_v23 = vld [vmem:[%s6840_s8 + $0xc4] ss:$16 sps:$4 sm:$0xff]   ;;  %v5895_v45 = vld [vmem:[%s6840_s8 + $0xcc] ss:$16 sps:$4 sm:$0xff]   ;;  %v5897_v49 = vld [vmem:[%s6840_s8 + $0xc0] ss:$16 sps:$4 sm:$0xff]  }
 0x20c   : > { %v5898_v26 = vld [vmem:[%s6840_s8 + $0xc8] ss:$16 sps:$4 sm:$0xff]   ;;  %v5899_v32 = vld [vmem:[%s6840_s8 + $0xe4] ss:$16 sps:$4 sm:$0xff]   ;;  %s7400_s25 = smul.u32 56, %s6682_s6  ;;  %vm1847_vm2 = vcmask 785408  }
 0x20d   : > { %1856 = vmatpush1.bf16.msra.mxu0 %v5873_v22  ;;  %1897 = vmatpush1.bf16.msra.mxu1 %v5874_v31  ;;  %v5901_v53 = vld [vmem:[%s6840_s8 + $0xec] ss:$16 sps:$4 sm:$0xff]   ;;  %v5903_v54 = vld [vmem:[%s6840_s8 + $0xe0] ss:$16 sps:$4 sm:$0xff]   ;;  %v5904_v37 = vld [vmem:[%s6840_s8 + $0xe8] ss:$16 sps:$4 sm:$0xff]  }
 0x20e   : > { %1857 = vmatprep.subr.bf16.mxu0 %v5875_v33  ;;  %1898 = vmatprep.subr.bf16.mxu1 %v5877_v27  ;;  %v5905_v56 = vld [vmem:[%s6840_s8 + $0x104] ss:$16 sps:$4 sm:$0xff]   ;;  %s1502_s26 = sshra.s32 %s7400_s25, 3  ;;  %v5907_v59 = vld [vmem:[%s6840_s8 + $0x10c] ss:$16 sps:$4 sm:$0xff]   ;;  %s5456_s23 = sadd.s32 8, %s7400_s25 }
 0x20f   : > { %v5909_v42 = vld [vmem:[%s6840_s8 + $0x100] ss:$16 sps:$4 sm:$0xff]   ;;  %v5910_v60 = vld [vmem:[%s6840_s8 + $0x108] ss:$16 sps:$4 sm:$0xff]   ;;  %s7410_s15 = sshll.u32 %s1502_s26, 4  ;;  %s1940_s10 = sshra.s32 %s5456_s23, 3 }
 0x210   : > { %v5911_v61 = vld [vmem:[%s6840_s8 + $0x124] ss:$16 sps:$4 sm:$0xff]   ;;  %v5913_v46 = vld [vmem:[%s6840_s8 + $0x12c] ss:$16 sps:$4 sm:$0xff]   ;;  %v5915_v55 = vld [vmem:[%s6840_s8 + $0x120] ss:$16 sps:$4 sm:$0xff]  }
 0x211   : > { %1858 = vmatpush1.bf16.msra.mxu0 %v5879_v35  ;;  %1899 = vmatpush1.bf16.msra.mxu1 %v5880_v36  ;;  %v5916_v1 = vld [vmem:[%s6840_s8 + $0x128] ss:$16 sps:$4 sm:$0xff]   ;;  %v5917_v2 = vld [vmem:[%s6840_s8 + $0x144] ss:$16 sps:$4 sm:$0xff]   ;;  %v5919_v62 = vld [vmem:[%s6840_s8 + $0x14c] ss:$16 sps:$4 sm:$0xff]  }
 0x212   : > { %1859 = vmatprep.subr.bf16.mxu0 %v5881_v44  ;;  %1900 = vmatprep.subr.bf16.mxu1 %v5883_v38  ;;  %s1506_s17 = scalar_lea.vmem [#allocation2], %s7410_s15  ;;  %v5921_v6 = vld [vmem:[%s6840_s8 + $0x140] ss:$16 sps:$4 sm:$0xff]   ;;  %v5922_v7 = vld [vmem:[%s6840_s8 + $0x148] ss:$16 sps:$4 sm:$0xff]   ;;  %s5457_s13 = sshll.u32 %s1940_s10, 4 }
 0x213   : > { %v1508_v4 = vld [vmem:[%s1506_s17 + $0x8] sm:$0xff]  ;;  %v5927_v10 = vld [vmem:[%s6840_s8 + $0x160] ss:$16 sps:$4 sm:$0xff]   ;;  %s7463_s12 = scalar_lea.vmem [#allocation2], %s5457_s13  ;;  %s5459_s30 = sadd.s32 16, %s7400_s25 }
 0x214   : > { %v1510_v5 = vpack.c.bf16 %v1508_v4, %v1508_v4  ;;  %v5923_v48 = vld [vmem:[%s6840_s8 + $0x164] ss:$16 sps:$4 sm:$0xff]   ;;  %v5925_v9 = vld [vmem:[%s6840_s8 + $0x16c] ss:$16 sps:$4 sm:$0xff]   ;;  %v5928_v51 = vld [vmem:[%s6840_s8 + $0x168] ss:$16 sps:$4 sm:$0xff]  }
 0x215   : > { %1860 = vmatpush1.bf16.msra.mxu0 %v5885_v47  ;;  %1901 = vmatpush1.bf16.msra.mxu1 %v5886_v39  ;;  %v5929_v58 = vld [vmem:[%s6840_s8 + $0x184] ss:$16 sps:$4 sm:$0xff]   ;;  %v5931_v11 = vld [vmem:[%s6840_s8 + $0x18c] ss:$16 sps:$4 sm:$0xff]   ;;  %v5933_v13 = vld [vmem:[%s6840_s8 + $0x180] ss:$16 sps:$4 sm:$0xff]  }
 0x216   : > { %1861 = vmatprep.subr.bf16.mxu0 %v5887_v52  ;;  %1902 = vmatprep.subr.bf16.mxu1 %v5889_v41  ;;  %v5934_v63 = vld [vmem:[%s6840_s8 + $0x188] ss:$16 sps:$4 sm:$0xff]   ;;  %v5935_v16 = vld [vmem:[%s6840_s8 + $0x1a4] ss:$16 sps:$4 sm:$0xff]   ;;  %v5937_v17 = vld [vmem:[%s6840_s8 + $0x1ac] ss:$16 sps:$4 sm:$0xff]  }
 0x217   : > { %5081 = vmatprep.mubr.msk.bf16.mxu0 %vm1847_vm2, %v1510_v5  ;;  %5082 = vmatprep.mubr.msk.bf16.mxu1 %vm1847_vm2, %v1510_v5  ;;  %v5939_v20 = vld [vmem:[%s6840_s8 + $0x1a0] ss:$16 sps:$4 sm:$0xff]   ;;  %v5940_v21 = vld [vmem:[%s6840_s8 + $0x1a8] ss:$16 sps:$4 sm:$0xff]   ;;  %v5943_v24 = vld [vmem:[%s6840_s8 + $0x1c4] ss:$16 sps:$4 sm:$0xff]  }
 0x218   : > { %v1507_v18 = vld [vmem:[%s1506_s17] sm:$0xff]  ;;  %v5944_v28 = vld [vmem:[%s6840_s8 + $0x1c8] ss:$16 sps:$4 sm:$0xff]   ;;  %s2376_s16 = sshra.s32 %s5459_s30, 3  ;;  %s5462_s14 = sadd.s32 24, %s7400_s25 }
 0x219   : > { %1862 = vmatpush1.bf16.msra.mxu0 %v5891_v43  ;;  %1903 = vmatpush1.bf16.msra.mxu1 %v5892_v57  ;;  %v5946_v25 = vld [vmem:[%s6840_s8 + $0x1cc] ss:$16 sps:$4 sm:$0xff]   ;;  %v1509_v0 = vpack.c.bf16 %v1507_v18, %v1507_v18  ;;  %v5941_v12 = vld [vmem:[%s6840_s8 + $0x1c0] ss:$16 sps:$4 sm:$0xff]   ;;  %v5949_v19 = vld [vmem:[%s6840_s8 + $0x1e4] ss:$16 sps:$4 sm:$0xff]  }
 0x21a   : > { %1863 = vmatprep.subr.bf16.mxu0 %v5893_v23  ;;  %1904 = vmatprep.subr.bf16.mxu1 %v5895_v45  ;;  %v5952_v30 = vld [vmem:[%s6840_s8 + $0x1ec] ss:$16 sps:$4 sm:$0xff]   ;;  %v5947_v34 = vld [vmem:[%s6840_s8 + $0x1e0] ss:$16 sps:$4 sm:$0xff]   ;;  %v5950_v40 = vld [vmem:[%s6840_s8 + $0x1e8] ss:$16 sps:$4 sm:$0xff]  }
 0x21b   : > { %v5955_v50 = vld [vmem:[%s6840_s8 + $0x204] ss:$16 sps:$4 sm:$0xff]   ;;  %v5958_v3 = vld [vmem:[%s6840_s8 + $0x20c] ss:$16 sps:$4 sm:$0xff]   ;;  %v5953_v8 = vld [vmem:[%s6840_s8 + $0x200] ss:$16 sps:$4 sm:$0xff]  }
 0x21c   : > { %v5956_v29 = vld [vmem:[%s6840_s8 + $0x208] ss:$16 sps:$4 sm:$0xff]   ;;  %v5961_v15 = vld [vmem:[%s6840_s8 + $0x224] ss:$16 sps:$4 sm:$0xff]   ;;  %v5964_v14 = vld [vmem:[%s6840_s8 + $0x22c] ss:$16 sps:$4 sm:$0xff]  }
 0x21d   : > { %1864 = vmatpush1.bf16.msra.mxu0 %v5897_v49  ;;  %1905 = vmatpush1.bf16.msra.mxu1 %v5898_v26  ;;  %v5959_v22 = vld [vmem:[%s6840_s8 + $0x220] ss:$16 sps:$4 sm:$0xff]   ;;  %v5962_v31 = vld [vmem:[%s6840_s8 + $0x228] ss:$16 sps:$4 sm:$0xff]   ;;  %v5967_v33 = vld [vmem:[%s6840_s8 + $0x244] ss:$16 sps:$4 sm:$0xff]  }
 0x21e   : > { %1865 = vmatprep.subr.bf16.mxu0 %v5899_v32  ;;  %1906 = vmatprep.subr.bf16.mxu1 %v5901_v53  ;;  %v5970_v27 = vld [vmem:[%s6840_s8 + $0x24c] ss:$16 sps:$4 sm:$0xff]   ;;  %v5965_v35 = vld [vmem:[%s6840_s8 + $0x240] ss:$16 sps:$4 sm:$0xff]   ;;  %v5968_v36 = vld [vmem:[%s6840_s8 + $0x248] ss:$16 sps:$4 sm:$0xff]  }
 0x21f   : > { %v5973_v44 = vld [vmem:[%s6840_s8 + $0x264] ss:$16 sps:$4 sm:$0xff]   ;;  %v5976_v38 = vld [vmem:[%s6840_s8 + $0x26c] ss:$16 sps:$4 sm:$0xff]   ;;  %v5971_v47 = vld [vmem:[%s6840_s8 + $0x260] ss:$16 sps:$4 sm:$0xff]  }
 0x220   : > { %v1946_v39 = vld [vmem:[%s7463_s12 + $0x8] sm:$0xff]  ;;  %v5977_v23 = vld [vmem:[%s6840_s8 + $0x280] ss:$16 sps:$4 sm:$0xff]   ;;  %s5460_s9 = sshll.u32 %s2376_s16, 4  ;;  %s2812_s29 = sshra.s32 %s5462_s14, 3 }
 0x221   : > { %1866 = vmatpush1.bf16.msra.mxu0 %v5903_v54  ;;  %1907 = vmatpush1.bf16.msra.mxu1 %v5904_v37  ;;  %v5974_v52 = vld [vmem:[%s6840_s8 + $0x268] ss:$16 sps:$4 sm:$0xff]   ;;  %v5979_v41 = vld [vmem:[%s6840_s8 + $0x284] ss:$16 sps:$4 sm:$0xff]   ;;  %v1948_v43 = vpack.c.bf16 %v1946_v39, %v1946_v39  ;;  %v5982_v57 = vld [vmem:[%s6840_s8 + $0x28c] ss:$16 sps:$4 sm:$0xff]  }
 0x222   : > { %1867 = vmatprep.subr.bf16.mxu0 %v5905_v56  ;;  %1908 = vmatprep.subr.bf16.mxu1 %v5907_v59  ;;  %v5980_v45 = vld [vmem:[%s6840_s8 + $0x288] ss:$16 sps:$4 sm:$0xff]   ;;  %v5985_v49 = vld [vmem:[%s6840_s8 + $0x2a4] ss:$16 sps:$4 sm:$0xff]   ;;  %v5988_v26 = vld [vmem:[%s6840_s8 + $0x2ac] ss:$16 sps:$4 sm:$0xff]  }
 0x223   : > { %v5983_v32 = vld [vmem:[%s6840_s8 + $0x2a0] ss:$16 sps:$4 sm:$0xff]   ;;  %v5986_v53 = vld [vmem:[%s6840_s8 + $0x2a8] ss:$16 sps:$4 sm:$0xff]   ;;  %v5991_v54 = vld [vmem:[%s6840_s8 + $0x2c4] ss:$16 sps:$4 sm:$0xff]  }
 0x224   : > { %v5994_v37 = vld [vmem:[%s6840_s8 + $0x2cc] ss:$16 sps:$4 sm:$0xff]   ;;  %v5989_v56 = vld [vmem:[%s6840_s8 + $0x2c0] ss:$16 sps:$4 sm:$0xff]   ;;  %v5992_v59 = vld [vmem:[%s6840_s8 + $0x2c8] ss:$16 sps:$4 sm:$0xff]  }
 0x225   : > { %1868 = vmatpush1.bf16.msra.mxu0 %v5909_v42  ;;  %1909 = vmatpush1.bf16.msra.mxu1 %v5910_v60  ;;  %v5997_v42 = vld [vmem:[%s6840_s8 + $0x2e4] ss:$16 sps:$4 sm:$0xff]   ;;  %v6000_v60 = vld [vmem:[%s6840_s8 + $0x2ec] ss:$16 sps:$4 sm:$0xff]   ;;  %v6028_v18 = vld [vmem:[%s6840_s8 + $0x388] ss:$16 sps:$4 sm:$0xff]  }
 0x226   : > { %1869 = vmatprep.subr.bf16.mxu0 %v5911_v61  ;;  %1910 = vmatprep.subr.bf16.mxu1 %v5913_v46  ;;  %v5995_v61 = vld [vmem:[%s6840_s8 + $0x2e0] ss:$16 sps:$4 sm:$0xff]   ;;  %v5998_v46 = vld [vmem:[%s6840_s8 + $0x2e8] ss:$16 sps:$4 sm:$0xff]   ;;  %v6009_v4 = vld [vmem:[%s6840_s8 + $0x324] ss:$16 sps:$4 sm:$0xff]  }
 0x227   : > { %v6012_v5 = vld [vmem:[%s6840_s8 + $0x32c] ss:$16 sps:$4 sm:$0xff]   ;;  %s7509_s11 = scalar_lea.vmem [#allocation2], %s5460_s9  ;;  %s5463_s21 = sshll.u32 %s2812_s29, 4 }
 0x228   : > { %v6066_v39 = vld [vmem:[%s6840_s8 + $0x44c] ss:$16 sps:$4 sm:$0xff]   ;;  %s7570_s18 = scalar_lea.vmem [#allocation2], %s5463_s21  ;;  %s5465_s20 = sadd.s32 32, %s7400_s25 }
 0x229   : > { %1870 = vmatpush1.bf16.msra.mxu0 %v5915_v55  ;;  %1911 = vmatpush1.bf16.msra.mxu1 %v5916_v1  ;;  %v6003_v55 = vld [vmem:[%s6840_s8 + $0x304] ss:$16 sps:$4 sm:$0xff]   ;;  %v6006_v1 = vld [vmem:[%s6840_s8 + $0x30c] ss:$16 sps:$4 sm:$0xff]   ;;  %s3248_s22 = sshra.s32 %s5465_s20, 3  ;;  %s5468_s24 = sadd.s32 40, %s7400_s25 }
 0x22a   : > { %1871 = vmatprep.subr.bf16.mxu0 %v5917_v2  ;;  %1912 = vmatprep.subr.bf16.mxu1 %v5919_v62  ;;  %v6001_v2 = vld [vmem:[%s6840_s8 + $0x300] ss:$16 sps:$4 sm:$0xff]   ;;  %v6004_v62 = vld [vmem:[%s6840_s8 + $0x308] ss:$16 sps:$4 sm:$0xff]   ;;  %s5466_s7 = sshll.u32 %s3248_s22, 4  ;;  %s3684_s26 = sshra.s32 %s5468_s24, 3 }
 0x22b   : > { %s7631_s19 = scalar_lea.vmem [#allocation2], %s5466_s7  ;;  %s5469_s15 = sshll.u32 %s3684_s26, 4 }
 0x22c   : > { %s7694_s17 = scalar_lea.vmem [#allocation2], %s5469_s15  ;;  %s5471_s23 = sadd.s32 48, %s7400_s25 }
 0x22d   : > { %1872 = vmatpush1.bf16.msra.mxu0 %v5921_v6  ;;  %1913 = vmatpush1.bf16.msra.mxu1 %v5922_v7  ;;  %v6007_v6 = vld [vmem:[%s6840_s8 + $0x320] ss:$16 sps:$4 sm:$0xff]   ;;  %v6010_v7 = vld [vmem:[%s6840_s8 + $0x328] ss:$16 sps:$4 sm:$0xff]   ;;  %s4120_s10 = sshra.s32 %s5471_s23, 3  ;;  %p5449_p13 = scmp.ne.s32.totalorder %s6682_s6, 1 }
 0x22e   : > { %1873 = vmatprep.subr.bf16.mxu0 %v5923_v48  ;;  %1914 = vmatprep.subr.bf16.mxu1 %v5925_v9  ;;  %v6015_v48 = vld [vmem:[%s6840_s8 + $0x344] ss:$16 sps:$4 sm:$0xff]   ;;  %v6018_v9 = vld [vmem:[%s6840_s8 + $0x34c] ss:$16 sps:$4 sm:$0xff]   ;;  %s5472_s25 = sshll.u32 %s4120_s10, 4  ;;  %s4660_s7 = sld [smem:[#allocation4]] (!%p5449_p13) }
 0x22f   : > { %s7757_s13 = scalar_lea.vmem [#allocation2], %s5472_s25  ;;  %vm4809_vm3 = vcmask (!%p5449_p13), 7168   ;;  %s8059_s26 = sld [smem:[#allocation17_spill]] (!%p5449_p13) }
 0x231   : > { %1874 = vmatpush1.bf16.msra.mxu0 %v5927_v10  ;;  %1915 = vmatpush1.bf16.msra.mxu1 %v5928_v51  ;;  %v6013_v10 = vld [vmem:[%s6840_s8 + $0x340] ss:$16 sps:$4 sm:$0xff]   ;;  %v6016_v51 = vld [vmem:[%s6840_s8 + $0x348] ss:$16 sps:$4 sm:$0xff]  }
 0x232   : > { %1875 = vmatprep.subr.bf16.mxu0 %v5929_v58  ;;  %1916 = vmatprep.subr.bf16.mxu1 %v5931_v11  ;;  %v6021_v58 = vld [vmem:[%s6840_s8 + $0x364] ss:$16 sps:$4 sm:$0xff]   ;;  %v6024_v11 = vld [vmem:[%s6840_s8 + $0x36c] ss:$16 sps:$4 sm:$0xff]  }
 0x235   : > { %1876 = vmatpush1.bf16.msra.mxu0 %v5933_v13  ;;  %1917 = vmatpush1.bf16.msra.mxu1 %v5934_v63  ;;  %v6019_v13 = vld [vmem:[%s6840_s8 + $0x360] ss:$16 sps:$4 sm:$0xff]   ;;  %v6022_v63 = vld [vmem:[%s6840_s8 + $0x368] ss:$16 sps:$4 sm:$0xff]  }
 0x236   : > { %1877 = vmatprep.subr.bf16.mxu0 %v5935_v16  ;;  %1918 = vmatprep.subr.bf16.mxu1 %v5937_v17  ;;  %v6027_v16 = vld [vmem:[%s6840_s8 + $0x384] ss:$16 sps:$4 sm:$0xff]  }
 0x237   : > { %v1945_v17 = vld [vmem:[%s7463_s12] sm:$0xff] }
 0x239   : > { %1878 = vmatpush1.bf16.msra.mxu0 %v5939_v20  ;;  %1919 = vmatpush1.bf16.msra.mxu1 %v5940_v21  ;;  %v6030_v20 = vld [vmem:[%s6840_s8 + $0x38c] ss:$16 sps:$4 sm:$0xff]   ;;  %v6025_v21 = vld [vmem:[%s6840_s8 + $0x380] ss:$16 sps:$4 sm:$0xff]  }
 0x23a   : > { %2288 = vmatprep.subr.bf16.mxu0 %v5943_v24  ;;  %2329 = vmatprep.subr.bf16.mxu1 %v5946_v25  ;;  %v1947_v24 = vpack.c.bf16 %v1945_v17, %v1945_v17  ;;  %v6033_v25 = vld [vmem:[%s6840_s8 + $0x3a4] ss:$16 sps:$4 sm:$0xff]  }
 0x23c   : > { %1884 = vmatmul.mubr.bf16.vlgmr.msra.gmra.mrb[0].mxu0 %v1509_v0  ;;  %1925 = vmatmul.mubr.bf16.vlgmr.msra.gmra.mrb[0].mxu1 %v1509_v0  ;;  %v6036_v0 = vld [vmem:[%s6840_s8 + $0x3ac] ss:$16 sps:$4 sm:$0xff]  }
 0x23d   : > { %2289 = vmatpush1.bf16.msra.mxu0 %v5941_v12  ;;  %2330 = vmatpush1.bf16.msra.mxu1 %v5944_v28  ;;  %v2382_v12 = vld [vmem:[%s7509_s11 + $0x8] sm:$0xff] }
 0x23e   : > { %2290 = vmatprep.subr.bf16.mxu0 %v5949_v19  ;;  %2331 = vmatprep.subr.bf16.mxu1 %v5952_v30  ;;  %v2384_v28 = vpack.c.bf16 %v2382_v12, %v2382_v12  ;;  %v6031_v19 = vld [vmem:[%s6840_s8 + $0x3a0] ss:$16 sps:$4 sm:$0xff]   ;;  %v6034_v30 = vld [vmem:[%s6840_s8 + $0x3a8] ss:$16 sps:$4 sm:$0xff]   ;;  %v6123_v12 = vld [vmem:[%s6840_s8 + $0x584] ss:$16 sps:$4 sm:$0xff]  }
 0x23f   : > { %5142 = vmatprep.mubr.msk.bf16.mxu0 %vm1847_vm2, %v1948_v43  ;;  %5143 = vmatprep.mubr.msk.bf16.mxu1 %vm1847_vm2, %v1948_v43  ;;  %v6069_v43 = vld [vmem:[%s6840_s8 + $0x464] ss:$16 sps:$4 sm:$0xff]  }
 0x241   : > { %2291 = vmatpush1.bf16.msra.mxu0 %v5947_v34  ;;  %2332 = vmatpush1.bf16.msra.mxu1 %v5950_v40  ;;  %v6039_v34 = vld [vmem:[%s6840_s8 + $0x3c4] ss:$16 sps:$4 sm:$0xff]   ;;  %v6042_v40 = vld [vmem:[%s6840_s8 + $0x3cc] ss:$16 sps:$4 sm:$0xff]  }
 0x242   : > { %2292 = vmatprep.subr.bf16.mxu0 %v5955_v50  ;;  %2333 = vmatprep.subr.bf16.mxu1 %v5958_v3  ;;  %v6037_v50 = vld [vmem:[%s6840_s8 + $0x3c0] ss:$16 sps:$4 sm:$0xff]   ;;  %v6040_v3 = vld [vmem:[%s6840_s8 + $0x3c8] ss:$16 sps:$4 sm:$0xff]  }
 0x245   : > { %2293 = vmatpush1.bf16.msra.mxu0 %v5953_v8  ;;  %2334 = vmatpush1.bf16.msra.mxu1 %v5956_v29  ;;  %v6045_v8 = vld [vmem:[%s6840_s8 + $0x3e4] ss:$16 sps:$4 sm:$0xff]   ;;  %v6048_v29 = vld [vmem:[%s6840_s8 + $0x3ec] ss:$16 sps:$4 sm:$0xff]  }
 0x246   : > { %2294 = vmatprep.subr.bf16.mxu0 %v5961_v15  ;;  %2335 = vmatprep.subr.bf16.mxu1 %v5964_v14  ;;  %v6043_v15 = vld [vmem:[%s6840_s8 + $0x3e0] ss:$16 sps:$4 sm:$0xff]   ;;  %v6046_v14 = vld [vmem:[%s6840_s8 + $0x3e8] ss:$16 sps:$4 sm:$0xff]  }
 0x249   : > { %2295 = vmatpush1.bf16.msra.mxu0 %v5959_v22  ;;  %2336 = vmatpush1.bf16.msra.mxu1 %v5962_v31  ;;  %v6051_v22 = vld [vmem:[%s6840_s8 + $0x404] ss:$16 sps:$4 sm:$0xff]   ;;  %v6054_v31 = vld [vmem:[%s6840_s8 + $0x40c] ss:$16 sps:$4 sm:$0xff]  }
 0x24a   : > { %2296 = vmatprep.subr.bf16.mxu0 %v5967_v33  ;;  %2337 = vmatprep.subr.bf16.mxu1 %v5970_v27  ;;  %v6049_v33 = vld [vmem:[%s6840_s8 + $0x400] ss:$16 sps:$4 sm:$0xff]   ;;  %v6052_v27 = vld [vmem:[%s6840_s8 + $0x408] ss:$16 sps:$4 sm:$0xff]  }
 0x24d   : > { %2297 = vmatpush1.bf16.msra.mxu0 %v5965_v35  ;;  %2338 = vmatpush1.bf16.msra.mxu1 %v5968_v36  ;;  %v6057_v35 = vld [vmem:[%s6840_s8 + $0x424] ss:$16 sps:$4 sm:$0xff]   ;;  %v6060_v36 = vld [vmem:[%s6840_s8 + $0x42c] ss:$16 sps:$4 sm:$0xff]  }
 0x24e   : > { %2298 = vmatprep.subr.bf16.mxu0 %v5973_v44  ;;  %2339 = vmatprep.subr.bf16.mxu1 %v5976_v38  ;;  %v6055_v44 = vld [vmem:[%s6840_s8 + $0x420] ss:$16 sps:$4 sm:$0xff]   ;;  %v6058_v38 = vld [vmem:[%s6840_s8 + $0x428] ss:$16 sps:$4 sm:$0xff]  }
 0x251   : > { %2299 = vmatpush1.bf16.msra.mxu0 %v5971_v47  ;;  %2340 = vmatpush1.bf16.msra.mxu1 %v5974_v52  ;;  %v6063_v47 = vld [vmem:[%s6840_s8 + $0x444] ss:$16 sps:$4 sm:$0xff]   ;;  %v6061_v52 = vld [vmem:[%s6840_s8 + $0x440] ss:$16 sps:$4 sm:$0xff]  }
 0x252   : > { %2300 = vmatprep.subr.bf16.mxu0 %v5979_v41  ;;  %2341 = vmatprep.subr.bf16.mxu1 %v5982_v57  ;;  %v6064_v41 = vld [vmem:[%s6840_s8 + $0x448] ss:$16 sps:$4 sm:$0xff]   ;;  %v6072_v57 = vld [vmem:[%s6840_s8 + $0x46c] ss:$16 sps:$4 sm:$0xff]  }
 0x255   : > { %2301 = vmatpush1.bf16.msra.mxu0 %v5977_v23  ;;  %2342 = vmatpush1.bf16.msra.mxu1 %v5980_v45  ;;  %v6067_v23 = vld [vmem:[%s6840_s8 + $0x460] ss:$16 sps:$4 sm:$0xff]   ;;  %v6070_v45 = vld [vmem:[%s6840_s8 + $0x468] ss:$16 sps:$4 sm:$0xff]  }
 0x256   : > { %2302 = vmatprep.subr.bf16.mxu0 %v5985_v49  ;;  %2343 = vmatprep.subr.bf16.mxu1 %v5988_v26  ;;  %v6075_v49 = vld [vmem:[%s6840_s8 + $0x484] ss:$16 sps:$4 sm:$0xff]   ;;  %v6078_v26 = vld [vmem:[%s6840_s8 + $0x48c] ss:$16 sps:$4 sm:$0xff]  }
 0x259   : > { %2303 = vmatpush1.bf16.msra.mxu0 %v5983_v32  ;;  %2344 = vmatpush1.bf16.msra.mxu1 %v5986_v53  ;;  %v6073_v32 = vld [vmem:[%s6840_s8 + $0x480] ss:$16 sps:$4 sm:$0xff]   ;;  %v6076_v53 = vld [vmem:[%s6840_s8 + $0x488] ss:$16 sps:$4 sm:$0xff]  }
 0x25a   : > { %2304 = vmatprep.subr.bf16.mxu0 %v5991_v54  ;;  %2345 = vmatprep.subr.bf16.mxu1 %v5994_v37  ;;  %v6081_v54 = vld [vmem:[%s6840_s8 + $0x4a4] ss:$16 sps:$4 sm:$0xff]   ;;  %v6084_v37 = vld [vmem:[%s6840_s8 + $0x4ac] ss:$16 sps:$4 sm:$0xff]  }
 0x25d   : > { %2305 = vmatpush1.bf16.msra.mxu0 %v5989_v56  ;;  %2346 = vmatpush1.bf16.msra.mxu1 %v5992_v59  ;;  %v6079_v56 = vld [vmem:[%s6840_s8 + $0x4a0] ss:$16 sps:$4 sm:$0xff]   ;;  %v6082_v59 = vld [vmem:[%s6840_s8 + $0x4a8] ss:$16 sps:$4 sm:$0xff]  }
 0x25e   : > { %2306 = vmatprep.subr.bf16.mxu0 %v5997_v42  ;;  %2347 = vmatprep.subr.bf16.mxu1 %v6000_v60  ;;  %v6087_v42 = vld [vmem:[%s6840_s8 + $0x4c4] ss:$16 sps:$4 sm:$0xff]   ;;  %v6090_v60 = vld [vmem:[%s6840_s8 + $0x4cc] ss:$16 sps:$4 sm:$0xff]  }
 0x261   : > { %2307 = vmatpush1.bf16.msra.mxu0 %v5995_v61  ;;  %2348 = vmatpush1.bf16.msra.mxu1 %v5998_v46  ;;  %v6085_v61 = vld [vmem:[%s6840_s8 + $0x4c0] ss:$16 sps:$4 sm:$0xff]   ;;  %v6088_v46 = vld [vmem:[%s6840_s8 + $0x4c8] ss:$16 sps:$4 sm:$0xff]  }
 0x262   : > { %2308 = vmatprep.subr.bf16.mxu0 %v6003_v55  ;;  %2349 = vmatprep.subr.bf16.mxu1 %v6006_v1  ;;  %v6093_v55 = vld [vmem:[%s6840_s8 + $0x4e4] ss:$16 sps:$4 sm:$0xff]   ;;  %v6096_v1 = vld [vmem:[%s6840_s8 + $0x4ec] ss:$16 sps:$4 sm:$0xff]  }
 0x265   : > { %2309 = vmatpush1.bf16.msra.mxu0 %v6001_v2  ;;  %2350 = vmatpush1.bf16.msra.mxu1 %v6004_v62  ;;  %v6091_v2 = vld [vmem:[%s6840_s8 + $0x4e0] ss:$16 sps:$4 sm:$0xff]   ;;  %v6094_v62 = vld [vmem:[%s6840_s8 + $0x4e8] ss:$16 sps:$4 sm:$0xff]  }
 0x266   : > { %2310 = vmatprep.subr.bf16.mxu0 %v6009_v4  ;;  %2351 = vmatprep.subr.bf16.mxu1 %v6012_v5  ;;  %v6099_v4 = vld [vmem:[%s6840_s8 + $0x504] ss:$16 sps:$4 sm:$0xff]   ;;  %v6102_v5 = vld [vmem:[%s6840_s8 + $0x50c] ss:$16 sps:$4 sm:$0xff]  }
 0x269   : > { %2311 = vmatpush1.bf16.msra.mxu0 %v6007_v6  ;;  %2352 = vmatpush1.bf16.msra.mxu1 %v6010_v7  ;;  %v6097_v6 = vld [vmem:[%s6840_s8 + $0x500] ss:$16 sps:$4 sm:$0xff]   ;;  %v6100_v7 = vld [vmem:[%s6840_s8 + $0x508] ss:$16 sps:$4 sm:$0xff]  }
 0x26a   : > { %2312 = vmatprep.subr.bf16.mxu0 %v6015_v48  ;;  %2353 = vmatprep.subr.bf16.mxu1 %v6018_v9  ;;  %v6105_v48 = vld [vmem:[%s6840_s8 + $0x524] ss:$16 sps:$4 sm:$0xff]   ;;  %v6108_v9 = vld [vmem:[%s6840_s8 + $0x52c] ss:$16 sps:$4 sm:$0xff]  }
 0x26d   : > { %2313 = vmatpush1.bf16.msra.mxu0 %v6013_v10  ;;  %2354 = vmatpush1.bf16.msra.mxu1 %v6016_v51  ;;  %v6103_v10 = vld [vmem:[%s6840_s8 + $0x520] ss:$16 sps:$4 sm:$0xff]   ;;  %v6106_v51 = vld [vmem:[%s6840_s8 + $0x528] ss:$16 sps:$4 sm:$0xff]  }
 0x26e   : > { %2314 = vmatprep.subr.bf16.mxu0 %v6021_v58  ;;  %2355 = vmatprep.subr.bf16.mxu1 %v6024_v11  ;;  %v6111_v58 = vld [vmem:[%s6840_s8 + $0x544] ss:$16 sps:$4 sm:$0xff]  }
 0x26f   : > { %v2381_v11 = vld [vmem:[%s7509_s11] sm:$0xff] }
 0x270   : > { %v2383_v17 = vpack.c.bf16 %v2381_v11, %v2381_v11  ;;  %v6193_v11 = vld [vmem:[%s6840_s8 + $0x700] ss:$16 sps:$4 sm:$0xff]  }
 0x271   : > { %2315 = vmatpush1.bf16.msra.mxu0 %v6019_v13  ;;  %2356 = vmatpush1.bf16.msra.mxu1 %v6022_v63  ;;  %v6114_v13 = vld [vmem:[%s6840_s8 + $0x54c] ss:$16 sps:$4 sm:$0xff]   ;;  %v6109_v63 = vld [vmem:[%s6840_s8 + $0x540] ss:$16 sps:$4 sm:$0xff]  }
 0x272   : > { %2724 = vmatprep.subr.bf16.mxu0 %v6027_v16  ;;  %2765 = vmatprep.subr.bf16.mxu1 %v6030_v20  ;;  %v6112_v16 = vld [vmem:[%s6840_s8 + $0x548] ss:$16 sps:$4 sm:$0xff]  }
 0x273   : > { %v2818_v20 = vld [vmem:[%s7570_s18 + $0x8] sm:$0xff] }
 0x274   : > { %2321 = vmatmul.mubr.bf16.vlgmr.msra.gmra.mrb[0].mxu0 %v1947_v24  ;;  %2362 = vmatmul.mubr.bf16.vlgmr.msra.gmra.mrb[0].mxu1 %v1947_v24  ;;  %v2820_v24 = vpack.c.bf16 %v2818_v20, %v2818_v20  ;;  %v6199_v20 = vld [vmem:[%s6840_s8 + $0x720] ss:$16 sps:$4 sm:$0xff]  }
 0x275   : > { %2725 = vmatpush1.bf16.msra.mxu0 %v6025_v21  ;;  %2766 = vmatpush1.bf16.msra.mxu1 %v6028_v18  ;;  %v6117_v21 = vld [vmem:[%s6840_s8 + $0x564] ss:$16 sps:$4 sm:$0xff]   ;;  %v6120_v18 = vld [vmem:[%s6840_s8 + $0x56c] ss:$16 sps:$4 sm:$0xff]  }
 0x276   : > { %2726 = vmatprep.subr.bf16.mxu0 %v6033_v25  ;;  %2767 = vmatprep.subr.bf16.mxu1 %v6036_v0  ;;  %v6115_v25 = vld [vmem:[%s6840_s8 + $0x560] ss:$16 sps:$4 sm:$0xff]   ;;  %v6118_v0 = vld [vmem:[%s6840_s8 + $0x568] ss:$16 sps:$4 sm:$0xff]  }
 0x277   : > { %5203 = vmatprep.mubr.msk.bf16.mxu0 %vm1847_vm2, %v2384_v28  ;;  %5204 = vmatprep.mubr.msk.bf16.mxu1 %vm1847_vm2, %v2384_v28  ;;  %v6126_v28 = vld [vmem:[%s6840_s8 + $0x58c] ss:$16 sps:$4 sm:$0xff]  }
 0x279   : > { %2727 = vmatpush1.bf16.msra.mxu0 %v6031_v19  ;;  %2768 = vmatpush1.bf16.msra.mxu1 %v6034_v30  ;;  %v6121_v19 = vld [vmem:[%s6840_s8 + $0x580] ss:$16 sps:$4 sm:$0xff]   ;;  %v6124_v30 = vld [vmem:[%s6840_s8 + $0x588] ss:$16 sps:$4 sm:$0xff]  }
 0x27a   : > { %2728 = vmatprep.subr.bf16.mxu0 %v6039_v34  ;;  %2769 = vmatprep.subr.bf16.mxu1 %v6042_v40  ;;  %v6129_v34 = vld [vmem:[%s6840_s8 + $0x5a4] ss:$16 sps:$4 sm:$0xff]   ;;  %v6132_v40 = vld [vmem:[%s6840_s8 + $0x5ac] ss:$16 sps:$4 sm:$0xff]  }
 0x27d   : > { %2729 = vmatpush1.bf16.msra.mxu0 %v6037_v50  ;;  %2770 = vmatpush1.bf16.msra.mxu1 %v6040_v3  ;;  %v6127_v50 = vld [vmem:[%s6840_s8 + $0x5a0] ss:$16 sps:$4 sm:$0xff]   ;;  %v6130_v3 = vld [vmem:[%s6840_s8 + $0x5a8] ss:$16 sps:$4 sm:$0xff]  }
 0x27e   : > { %2730 = vmatprep.subr.bf16.mxu0 %v6045_v8  ;;  %2771 = vmatprep.subr.bf16.mxu1 %v6048_v29  ;;  %v6135_v8 = vld [vmem:[%s6840_s8 + $0x5c4] ss:$16 sps:$4 sm:$0xff]   ;;  %v6138_v29 = vld [vmem:[%s6840_s8 + $0x5cc] ss:$16 sps:$4 sm:$0xff]  }
 0x281   : > { %2731 = vmatpush1.bf16.msra.mxu0 %v6043_v15  ;;  %2772 = vmatpush1.bf16.msra.mxu1 %v6046_v14  ;;  %v6133_v15 = vld [vmem:[%s6840_s8 + $0x5c0] ss:$16 sps:$4 sm:$0xff]   ;;  %v6136_v14 = vld [vmem:[%s6840_s8 + $0x5c8] ss:$16 sps:$4 sm:$0xff]  }
 0x282   : > { %2732 = vmatprep.subr.bf16.mxu0 %v6051_v22  ;;  %2773 = vmatprep.subr.bf16.mxu1 %v6054_v31  ;;  %v6141_v22 = vld [vmem:[%s6840_s8 + $0x5e4] ss:$16 sps:$4 sm:$0xff]   ;;  %v6144_v31 = vld [vmem:[%s6840_s8 + $0x5ec] ss:$16 sps:$4 sm:$0xff]  }
 0x285   : > { %2733 = vmatpush1.bf16.msra.mxu0 %v6049_v33  ;;  %2774 = vmatpush1.bf16.msra.mxu1 %v6052_v27  ;;  %v6139_v33 = vld [vmem:[%s6840_s8 + $0x5e0] ss:$16 sps:$4 sm:$0xff]   ;;  %v6142_v27 = vld [vmem:[%s6840_s8 + $0x5e8] ss:$16 sps:$4 sm:$0xff]  }
 0x286   : > { %2734 = vmatprep.subr.bf16.mxu0 %v6057_v35  ;;  %2775 = vmatprep.subr.bf16.mxu1 %v6060_v36  ;;  %v6147_v35 = vld [vmem:[%s6840_s8 + $0x604] ss:$16 sps:$4 sm:$0xff]   ;;  %v6150_v36 = vld [vmem:[%s6840_s8 + $0x60c] ss:$16 sps:$4 sm:$0xff]  }
 0x289   : > { %2735 = vmatpush1.bf16.msra.mxu0 %v6055_v44  ;;  %2776 = vmatpush1.bf16.msra.mxu1 %v6058_v38  ;;  %v6145_v44 = vld [vmem:[%s6840_s8 + $0x600] ss:$16 sps:$4 sm:$0xff]   ;;  %v6148_v38 = vld [vmem:[%s6840_s8 + $0x608] ss:$16 sps:$4 sm:$0xff]  }
 0x28a   : > { %2736 = vmatprep.subr.bf16.mxu0 %v6063_v47  ;;  %2777 = vmatprep.subr.bf16.mxu1 %v6066_v39  ;;  %v6153_v47 = vld [vmem:[%s6840_s8 + $0x624] ss:$16 sps:$4 sm:$0xff]   ;;  %v6156_v39 = vld [vmem:[%s6840_s8 + $0x62c] ss:$16 sps:$4 sm:$0xff]  }
 0x28d   : > { %2737 = vmatpush1.bf16.msra.mxu0 %v6061_v52  ;;  %2778 = vmatpush1.bf16.msra.mxu1 %v6064_v41  ;;  %v6151_v52 = vld [vmem:[%s6840_s8 + $0x620] ss:$16 sps:$4 sm:$0xff]   ;;  %v6154_v41 = vld [vmem:[%s6840_s8 + $0x628] ss:$16 sps:$4 sm:$0xff]  }
 0x28e   : > { %2738 = vmatprep.subr.bf16.mxu0 %v6069_v43  ;;  %2779 = vmatprep.subr.bf16.mxu1 %v6072_v57  ;;  %v6159_v43 = vld [vmem:[%s6840_s8 + $0x644] ss:$16 sps:$4 sm:$0xff]   ;;  %v6162_v57 = vld [vmem:[%s6840_s8 + $0x64c] ss:$16 sps:$4 sm:$0xff]  }
 0x291   : > { %2739 = vmatpush1.bf16.msra.mxu0 %v6067_v23  ;;  %2780 = vmatpush1.bf16.msra.mxu1 %v6070_v45  ;;  %v6157_v23 = vld [vmem:[%s6840_s8 + $0x640] ss:$16 sps:$4 sm:$0xff]   ;;  %v6160_v45 = vld [vmem:[%s6840_s8 + $0x648] ss:$16 sps:$4 sm:$0xff]  }
 0x292   : > { %2740 = vmatprep.subr.bf16.mxu0 %v6075_v49  ;;  %2781 = vmatprep.subr.bf16.mxu1 %v6078_v26  ;;  %v6165_v49 = vld [vmem:[%s6840_s8 + $0x664] ss:$16 sps:$4 sm:$0xff]   ;;  %v6168_v26 = vld [vmem:[%s6840_s8 + $0x66c] ss:$16 sps:$4 sm:$0xff]  }
 0x295   : > { %2741 = vmatpush1.bf16.msra.mxu0 %v6073_v32  ;;  %2782 = vmatpush1.bf16.msra.mxu1 %v6076_v53  ;;  %v6163_v32 = vld [vmem:[%s6840_s8 + $0x660] ss:$16 sps:$4 sm:$0xff]   ;;  %v6166_v53 = vld [vmem:[%s6840_s8 + $0x668] ss:$16 sps:$4 sm:$0xff]  }
 0x296   : > { %2742 = vmatprep.subr.bf16.mxu0 %v6081_v54  ;;  %2783 = vmatprep.subr.bf16.mxu1 %v6084_v37  ;;  %v6171_v54 = vld [vmem:[%s6840_s8 + $0x684] ss:$16 sps:$4 sm:$0xff]   ;;  %v6174_v37 = vld [vmem:[%s6840_s8 + $0x68c] ss:$16 sps:$4 sm:$0xff]  }
 0x299   : > { %2743 = vmatpush1.bf16.msra.mxu0 %v6079_v56  ;;  %2784 = vmatpush1.bf16.msra.mxu1 %v6082_v59  ;;  %v6169_v56 = vld [vmem:[%s6840_s8 + $0x680] ss:$16 sps:$4 sm:$0xff]   ;;  %v6172_v59 = vld [vmem:[%s6840_s8 + $0x688] ss:$16 sps:$4 sm:$0xff]  }
 0x29a   : > { %2744 = vmatprep.subr.bf16.mxu0 %v6087_v42  ;;  %2785 = vmatprep.subr.bf16.mxu1 %v6090_v60  ;;  %v6177_v42 = vld [vmem:[%s6840_s8 + $0x6a4] ss:$16 sps:$4 sm:$0xff]   ;;  %v6180_v60 = vld [vmem:[%s6840_s8 + $0x6ac] ss:$16 sps:$4 sm:$0xff]  }
 0x29d   : > { %2745 = vmatpush1.bf16.msra.mxu0 %v6085_v61  ;;  %2786 = vmatpush1.bf16.msra.mxu1 %v6088_v46  ;;  %v6175_v61 = vld [vmem:[%s6840_s8 + $0x6a0] ss:$16 sps:$4 sm:$0xff]   ;;  %v6178_v46 = vld [vmem:[%s6840_s8 + $0x6a8] ss:$16 sps:$4 sm:$0xff]  }
 0x29e   : > { %2746 = vmatprep.subr.bf16.mxu0 %v6093_v55  ;;  %2787 = vmatprep.subr.bf16.mxu1 %v6096_v1  ;;  %v6183_v55 = vld [vmem:[%s6840_s8 + $0x6c4] ss:$16 sps:$4 sm:$0xff]   ;;  %v6186_v1 = vld [vmem:[%s6840_s8 + $0x6cc] ss:$16 sps:$4 sm:$0xff]  }
 0x2a1   : > { %2747 = vmatpush1.bf16.msra.mxu0 %v6091_v2  ;;  %2788 = vmatpush1.bf16.msra.mxu1 %v6094_v62  ;;  %v6181_v2 = vld [vmem:[%s6840_s8 + $0x6c0] ss:$16 sps:$4 sm:$0xff]   ;;  %v6184_v62 = vld [vmem:[%s6840_s8 + $0x6c8] ss:$16 sps:$4 sm:$0xff]  }
 0x2a2   : > { %2748 = vmatprep.subr.bf16.mxu0 %v6099_v4  ;;  %2789 = vmatprep.subr.bf16.mxu1 %v6102_v5  ;;  %v6189_v4 = vld [vmem:[%s6840_s8 + $0x6e4] ss:$16 sps:$4 sm:$0xff]   ;;  %v6192_v5 = vld [vmem:[%s6840_s8 + $0x6ec] ss:$16 sps:$4 sm:$0xff]  }
 0x2a5   : > { %2749 = vmatpush1.bf16.msra.mxu0 %v6097_v6  ;;  %2790 = vmatpush1.bf16.msra.mxu1 %v6100_v7  ;;  %v6187_v6 = vld [vmem:[%s6840_s8 + $0x6e0] ss:$16 sps:$4 sm:$0xff]   ;;  %v6190_v7 = vld [vmem:[%s6840_s8 + $0x6e8] ss:$16 sps:$4 sm:$0xff]  }
 0x2a6   : > { %2750 = vmatprep.subr.bf16.mxu0 %v6105_v48  ;;  %2791 = vmatprep.subr.bf16.mxu1 %v6108_v9  ;;  %v2817_v48 = vld [vmem:[%s7570_s18] sm:$0xff] }
 0x2a7   : > { %v6195_v9 = vld [vmem:[%s6840_s8 + $0x704] ss:$16 sps:$4 sm:$0xff]  }
 0x2a9   : > { %2751 = vmatpush1.bf16.msra.mxu0 %v6103_v10  ;;  %2792 = vmatpush1.bf16.msra.mxu1 %v6106_v51  ;;  %v6198_v10 = vld [vmem:[%s6840_s8 + $0x70c] ss:$16 sps:$4 sm:$0xff]   ;;  %v2819_v51 = vpack.c.bf16 %v2817_v48, %v2817_v48 }
 0x2aa   : > { %3160 = vmatprep.subr.bf16.mxu0 %v6111_v58  ;;  %3201 = vmatprep.subr.bf16.mxu1 %v6114_v13  ;;  %v3254_v58 = vld [vmem:[%s7631_s19 + $0x8] sm:$0xff] }
 0x2ab   : > { %v6196_v13 = vld [vmem:[%s6840_s8 + $0x708] ss:$16 sps:$4 sm:$0xff]  }
 0x2ac   : > { %2757 = vmatmul.mubr.bf16.vlgmr.msra.gmra.mrb[0].mxu0 %v2383_v17  ;;  %2798 = vmatmul.mubr.bf16.vlgmr.msra.gmra.mrb[0].mxu1 %v2383_v17  ;;  %v3256_v17 = vpack.c.bf16 %v3254_v58, %v3254_v58  ;;  %v3690_v48 = vld [vmem:[%s7694_s17 + $0x8] sm:$0xff] }
 0x2ad   : > { %3161 = vmatpush1.bf16.msra.mxu0 %v6109_v63  ;;  %3202 = vmatpush1.bf16.msra.mxu1 %v6112_v16  ;;  %v6201_v63 = vld [vmem:[%s6840_s8 + $0x724] ss:$16 sps:$4 sm:$0xff]   ;;  %v6204_v16 = vld [vmem:[%s6840_s8 + $0x72c] ss:$16 sps:$4 sm:$0xff]  }
 0x2ae   : > { %3162 = vmatprep.subr.bf16.mxu0 %v6117_v21  ;;  %3203 = vmatprep.subr.bf16.mxu1 %v6120_v18  ;;  %v6202_v21 = vld [vmem:[%s6840_s8 + $0x728] ss:$16 sps:$4 sm:$0xff]   ;;  %v6207_v18 = vld [vmem:[%s6840_s8 + $0x744] ss:$16 sps:$4 sm:$0xff]   ;;  %v6288_v58 = vld [vmem:[%s6840_s8 + $0x8ec] ss:$16 sps:$4 sm:$0xff]  }
 0x2af   : > { %5264 = vmatprep.mubr.msk.bf16.mxu0 %vm1847_vm2, %v2820_v24  ;;  %5265 = vmatprep.mubr.msk.bf16.mxu1 %vm1847_vm2, %v2820_v24  ;;  %v6210_v24 = vld [vmem:[%s6840_s8 + $0x74c] ss:$16 sps:$4 sm:$0xff]  }
 0x2b1   : > { %3163 = vmatpush1.bf16.msra.mxu0 %v6115_v25  ;;  %3204 = vmatpush1.bf16.msra.mxu1 %v6118_v0  ;;  %v6205_v25 = vld [vmem:[%s6840_s8 + $0x740] ss:$16 sps:$4 sm:$0xff]   ;;  %v6208_v0 = vld [vmem:[%s6840_s8 + $0x748] ss:$16 sps:$4 sm:$0xff]  }
 0x2b2   : > { %3164 = vmatprep.subr.bf16.mxu0 %v6123_v12  ;;  %3205 = vmatprep.subr.bf16.mxu1 %v6126_v28  ;;  %v6213_v12 = vld [vmem:[%s6840_s8 + $0x764] ss:$16 sps:$4 sm:$0xff]   ;;  %v6216_v28 = vld [vmem:[%s6840_s8 + $0x76c] ss:$16 sps:$4 sm:$0xff]  }
 0x2b5   : > { %3165 = vmatpush1.bf16.msra.mxu0 %v6121_v19  ;;  %3206 = vmatpush1.bf16.msra.mxu1 %v6124_v30  ;;  %v6211_v19 = vld [vmem:[%s6840_s8 + $0x760] ss:$16 sps:$4 sm:$0xff]   ;;  %v6214_v30 = vld [vmem:[%s6840_s8 + $0x768] ss:$16 sps:$4 sm:$0xff]  }
 0x2b6   : > { %3166 = vmatprep.subr.bf16.mxu0 %v6129_v34  ;;  %3207 = vmatprep.subr.bf16.mxu1 %v6132_v40  ;;  %v6219_v34 = vld [vmem:[%s6840_s8 + $0x784] ss:$16 sps:$4 sm:$0xff]   ;;  %v6222_v40 = vld [vmem:[%s6840_s8 + $0x78c] ss:$16 sps:$4 sm:$0xff]  }
 0x2b9   : > { %3167 = vmatpush1.bf16.msra.mxu0 %v6127_v50  ;;  %3208 = vmatpush1.bf16.msra.mxu1 %v6130_v3  ;;  %v6217_v50 = vld [vmem:[%s6840_s8 + $0x780] ss:$16 sps:$4 sm:$0xff]   ;;  %v6220_v3 = vld [vmem:[%s6840_s8 + $0x788] ss:$16 sps:$4 sm:$0xff]  }
 0x2ba   : > { %3168 = vmatprep.subr.bf16.mxu0 %v6135_v8  ;;  %3209 = vmatprep.subr.bf16.mxu1 %v6138_v29  ;;  %v6225_v8 = vld [vmem:[%s6840_s8 + $0x7a4] ss:$16 sps:$4 sm:$0xff]   ;;  %v6228_v29 = vld [vmem:[%s6840_s8 + $0x7ac] ss:$16 sps:$4 sm:$0xff]  }
 0x2bd   : > { %3169 = vmatpush1.bf16.msra.mxu0 %v6133_v15  ;;  %3210 = vmatpush1.bf16.msra.mxu1 %v6136_v14  ;;  %v6223_v15 = vld [vmem:[%s6840_s8 + $0x7a0] ss:$16 sps:$4 sm:$0xff]   ;;  %v6226_v14 = vld [vmem:[%s6840_s8 + $0x7a8] ss:$16 sps:$4 sm:$0xff]  }
 0x2be   : > { %3170 = vmatprep.subr.bf16.mxu0 %v6141_v22  ;;  %3211 = vmatprep.subr.bf16.mxu1 %v6144_v31  ;;  %v6231_v22 = vld [vmem:[%s6840_s8 + $0x7c4] ss:$16 sps:$4 sm:$0xff]   ;;  %v6234_v31 = vld [vmem:[%s6840_s8 + $0x7cc] ss:$16 sps:$4 sm:$0xff]  }
 0x2c1   : > { %3171 = vmatpush1.bf16.msra.mxu0 %v6139_v33  ;;  %3212 = vmatpush1.bf16.msra.mxu1 %v6142_v27  ;;  %v6229_v33 = vld [vmem:[%s6840_s8 + $0x7c0] ss:$16 sps:$4 sm:$0xff]   ;;  %v6232_v27 = vld [vmem:[%s6840_s8 + $0x7c8] ss:$16 sps:$4 sm:$0xff]  }
 0x2c2   : > { %3172 = vmatprep.subr.bf16.mxu0 %v6147_v35  ;;  %3213 = vmatprep.subr.bf16.mxu1 %v6150_v36  ;;  %v6237_v35 = vld [vmem:[%s6840_s8 + $0x7e4] ss:$16 sps:$4 sm:$0xff]   ;;  %v6240_v36 = vld [vmem:[%s6840_s8 + $0x7ec] ss:$16 sps:$4 sm:$0xff]  }
 0x2c5   : > { %3173 = vmatpush1.bf16.msra.mxu0 %v6145_v44  ;;  %3214 = vmatpush1.bf16.msra.mxu1 %v6148_v38  ;;  %v6235_v44 = vld [vmem:[%s6840_s8 + $0x7e0] ss:$16 sps:$4 sm:$0xff]   ;;  %v6238_v38 = vld [vmem:[%s6840_s8 + $0x7e8] ss:$16 sps:$4 sm:$0xff]  }
 0x2c6   : > { %3174 = vmatprep.subr.bf16.mxu0 %v6153_v47  ;;  %3215 = vmatprep.subr.bf16.mxu1 %v6156_v39  ;;  %v6243_v47 = vld [vmem:[%s6840_s8 + $0x804] ss:$16 sps:$4 sm:$0xff]   ;;  %v6246_v39 = vld [vmem:[%s6840_s8 + $0x80c] ss:$16 sps:$4 sm:$0xff]  }
 0x2c9   : > { %3175 = vmatpush1.bf16.msra.mxu0 %v6151_v52  ;;  %3216 = vmatpush1.bf16.msra.mxu1 %v6154_v41  ;;  %v6241_v52 = vld [vmem:[%s6840_s8 + $0x800] ss:$16 sps:$4 sm:$0xff]   ;;  %v6244_v41 = vld [vmem:[%s6840_s8 + $0x808] ss:$16 sps:$4 sm:$0xff]  }
 0x2ca   : > { %3176 = vmatprep.subr.bf16.mxu0 %v6159_v43  ;;  %3217 = vmatprep.subr.bf16.mxu1 %v6162_v57  ;;  %v6249_v43 = vld [vmem:[%s6840_s8 + $0x824] ss:$16 sps:$4 sm:$0xff]   ;;  %v6252_v57 = vld [vmem:[%s6840_s8 + $0x82c] ss:$16 sps:$4 sm:$0xff]  }
 0x2cd   : > { %3177 = vmatpush1.bf16.msra.mxu0 %v6157_v23  ;;  %3218 = vmatpush1.bf16.msra.mxu1 %v6160_v45  ;;  %v6247_v23 = vld [vmem:[%s6840_s8 + $0x820] ss:$16 sps:$4 sm:$0xff]   ;;  %v6250_v45 = vld [vmem:[%s6840_s8 + $0x828] ss:$16 sps:$4 sm:$0xff]  }
 0x2ce   : > { %3178 = vmatprep.subr.bf16.mxu0 %v6165_v49  ;;  %3219 = vmatprep.subr.bf16.mxu1 %v6168_v26  ;;  %v6255_v49 = vld [vmem:[%s6840_s8 + $0x844] ss:$16 sps:$4 sm:$0xff]   ;;  %v6258_v26 = vld [vmem:[%s6840_s8 + $0x84c] ss:$16 sps:$4 sm:$0xff]  }
 0x2d1   : > { %3179 = vmatpush1.bf16.msra.mxu0 %v6163_v32  ;;  %3220 = vmatpush1.bf16.msra.mxu1 %v6166_v53  ;;  %v6253_v32 = vld [vmem:[%s6840_s8 + $0x840] ss:$16 sps:$4 sm:$0xff]   ;;  %v6256_v53 = vld [vmem:[%s6840_s8 + $0x848] ss:$16 sps:$4 sm:$0xff]  }
 0x2d2   : > { %3180 = vmatprep.subr.bf16.mxu0 %v6171_v54  ;;  %3221 = vmatprep.subr.bf16.mxu1 %v6174_v37  ;;  %v6261_v54 = vld [vmem:[%s6840_s8 + $0x864] ss:$16 sps:$4 sm:$0xff]   ;;  %v6264_v37 = vld [vmem:[%s6840_s8 + $0x86c] ss:$16 sps:$4 sm:$0xff]  }
 0x2d5   : > { %3181 = vmatpush1.bf16.msra.mxu0 %v6169_v56  ;;  %3222 = vmatpush1.bf16.msra.mxu1 %v6172_v59  ;;  %v6259_v56 = vld [vmem:[%s6840_s8 + $0x860] ss:$16 sps:$4 sm:$0xff]   ;;  %v6262_v59 = vld [vmem:[%s6840_s8 + $0x868] ss:$16 sps:$4 sm:$0xff]  }
 0x2d6   : > { %3182 = vmatprep.subr.bf16.mxu0 %v6177_v42  ;;  %3223 = vmatprep.subr.bf16.mxu1 %v6180_v60  ;;  %v6267_v42 = vld [vmem:[%s6840_s8 + $0x884] ss:$16 sps:$4 sm:$0xff]   ;;  %v6270_v60 = vld [vmem:[%s6840_s8 + $0x88c] ss:$16 sps:$4 sm:$0xff]  }
 0x2d9   : > { %3183 = vmatpush1.bf16.msra.mxu0 %v6175_v61  ;;  %3224 = vmatpush1.bf16.msra.mxu1 %v6178_v46  ;;  %v6265_v61 = vld [vmem:[%s6840_s8 + $0x880] ss:$16 sps:$4 sm:$0xff]   ;;  %v6268_v46 = vld [vmem:[%s6840_s8 + $0x888] ss:$16 sps:$4 sm:$0xff]  }
 0x2da   : > { %3184 = vmatprep.subr.bf16.mxu0 %v6183_v55  ;;  %3225 = vmatprep.subr.bf16.mxu1 %v6186_v1  ;;  %v6273_v55 = vld [vmem:[%s6840_s8 + $0x8a4] ss:$16 sps:$4 sm:$0xff]   ;;  %v6276_v1 = vld [vmem:[%s6840_s8 + $0x8ac] ss:$16 sps:$4 sm:$0xff]  }
 0x2dd   : > { %3185 = vmatpush1.bf16.msra.mxu0 %v6181_v2  ;;  %3226 = vmatpush1.bf16.msra.mxu1 %v6184_v62  ;;  %v6271_v2 = vld [vmem:[%s6840_s8 + $0x8a0] ss:$16 sps:$4 sm:$0xff]   ;;  %v6274_v62 = vld [vmem:[%s6840_s8 + $0x8a8] ss:$16 sps:$4 sm:$0xff]  }
 0x2de   : > { %3186 = vmatprep.subr.bf16.mxu0 %v6189_v4  ;;  %3227 = vmatprep.subr.bf16.mxu1 %v6192_v5  ;;  %v3253_v4 = vld [vmem:[%s7631_s19] sm:$0xff] }
 0x2df   : > { %v6279_v5 = vld [vmem:[%s6840_s8 + $0x8c4] ss:$16 sps:$4 sm:$0xff]  }
 0x2e1   : > { %3187 = vmatpush1.bf16.msra.mxu0 %v6187_v6  ;;  %3228 = vmatpush1.bf16.msra.mxu1 %v6190_v7  ;;  %v6282_v6 = vld [vmem:[%s6840_s8 + $0x8cc] ss:$16 sps:$4 sm:$0xff]   ;;  %v3255_v7 = vpack.c.bf16 %v3253_v4, %v3253_v4 }
 0x2e2   : > { %3596 = vmatprep.subr.bf16.mxu0 %v6195_v9  ;;  %3637 = vmatprep.subr.bf16.mxu1 %v6198_v10  ;;  %v6277_v9 = vld [vmem:[%s6840_s8 + $0x8c0] ss:$16 sps:$4 sm:$0xff]   ;;  %v6280_v10 = vld [vmem:[%s6840_s8 + $0x8c8] ss:$16 sps:$4 sm:$0xff]  }
 0x2e3   : > { %v4126_v4 = vld [vmem:[%s7757_s13 + $0x8] sm:$0xff] }
 0x2e4   : > { %3193 = vmatmul.mubr.bf16.vlgmr.msra.gmra.mrb[0].mxu0 %v2819_v51  ;;  %3234 = vmatmul.mubr.bf16.vlgmr.msra.gmra.mrb[0].mxu1 %v2819_v51  ;;  %v6285_v51 = vld [vmem:[%s6840_s8 + $0x8e4] ss:$16 sps:$4 sm:$0xff]  }
 0x2e5   : > { %3597 = vmatpush1.bf16.msra.mxu0 %v6193_v11  ;;  %3638 = vmatpush1.bf16.msra.mxu1 %v6196_v13  ;;  %v3692_v11 = vpack.c.bf16 %v3690_v48, %v3690_v48  ;;  %v6283_v13 = vld [vmem:[%s6840_s8 + $0x8e0] ss:$16 sps:$4 sm:$0xff]   ;;  %v6372_v48 = vld [vmem:[%s6840_s8 + $0xaac] ss:$16 sps:$4 sm:$0xff]  }
 0x2e6   : > { %3598 = vmatprep.subr.bf16.mxu0 %v6201_v63  ;;  %3639 = vmatprep.subr.bf16.mxu1 %v6204_v16  ;;  %v6286_v63 = vld [vmem:[%s6840_s8 + $0x8e8] ss:$16 sps:$4 sm:$0xff]   ;;  %v6291_v16 = vld [vmem:[%s6840_s8 + $0x904] ss:$16 sps:$4 sm:$0xff]  }
 0x2e7   : > { %5325 = vmatprep.mubr.msk.bf16.mxu0 %vm1847_vm2, %v3256_v17  ;;  %5326 = vmatprep.mubr.msk.bf16.mxu1 %vm1847_vm2, %v3256_v17  ;;  %v6294_v17 = vld [vmem:[%s6840_s8 + $0x90c] ss:$16 sps:$4 sm:$0xff]  }
 0x2e9   : > { %3599 = vmatpush1.bf16.msra.mxu0 %v6199_v20  ;;  %3640 = vmatpush1.bf16.msra.mxu1 %v6202_v21  ;;  %v6289_v20 = vld [vmem:[%s6840_s8 + $0x900] ss:$16 sps:$4 sm:$0xff]   ;;  %v6292_v21 = vld [vmem:[%s6840_s8 + $0x908] ss:$16 sps:$4 sm:$0xff]  }
 0x2ea   : > { %3600 = vmatprep.subr.bf16.mxu0 %v6207_v18  ;;  %3641 = vmatprep.subr.bf16.mxu1 %v6210_v24  ;;  %v6297_v18 = vld [vmem:[%s6840_s8 + $0x924] ss:$16 sps:$4 sm:$0xff]   ;;  %v6300_v24 = vld [vmem:[%s6840_s8 + $0x92c] ss:$16 sps:$4 sm:$0xff]  }
 0x2ed   : > { %3601 = vmatpush1.bf16.msra.mxu0 %v6205_v25  ;;  %3642 = vmatpush1.bf16.msra.mxu1 %v6208_v0  ;;  %v6295_v25 = vld [vmem:[%s6840_s8 + $0x920] ss:$16 sps:$4 sm:$0xff]   ;;  %v6298_v0 = vld [vmem:[%s6840_s8 + $0x928] ss:$16 sps:$4 sm:$0xff]  }
 0x2ee   : > { %3602 = vmatprep.subr.bf16.mxu0 %v6213_v12  ;;  %3643 = vmatprep.subr.bf16.mxu1 %v6216_v28  ;;  %v6303_v12 = vld [vmem:[%s6840_s8 + $0x944] ss:$16 sps:$4 sm:$0xff]   ;;  %v6306_v28 = vld [vmem:[%s6840_s8 + $0x94c] ss:$16 sps:$4 sm:$0xff]  }
 0x2f1   : > { %3603 = vmatpush1.bf16.msra.mxu0 %v6211_v19  ;;  %3644 = vmatpush1.bf16.msra.mxu1 %v6214_v30  ;;  %v6301_v19 = vld [vmem:[%s6840_s8 + $0x940] ss:$16 sps:$4 sm:$0xff]   ;;  %v6304_v30 = vld [vmem:[%s6840_s8 + $0x948] ss:$16 sps:$4 sm:$0xff]  }
 0x2f2   : > { %3604 = vmatprep.subr.bf16.mxu0 %v6219_v34  ;;  %3645 = vmatprep.subr.bf16.mxu1 %v6222_v40  ;;  %v6309_v34 = vld [vmem:[%s6840_s8 + $0x964] ss:$16 sps:$4 sm:$0xff]   ;;  %v6312_v40 = vld [vmem:[%s6840_s8 + $0x96c] ss:$16 sps:$4 sm:$0xff]  }
 0x2f5   : > { %3605 = vmatpush1.bf16.msra.mxu0 %v6217_v50  ;;  %3646 = vmatpush1.bf16.msra.mxu1 %v6220_v3  ;;  %v6307_v50 = vld [vmem:[%s6840_s8 + $0x960] ss:$16 sps:$4 sm:$0xff]   ;;  %v6310_v3 = vld [vmem:[%s6840_s8 + $0x968] ss:$16 sps:$4 sm:$0xff]  }
 0x2f6   : > { %3606 = vmatprep.subr.bf16.mxu0 %v6225_v8  ;;  %3647 = vmatprep.subr.bf16.mxu1 %v6228_v29  ;;  %v6315_v8 = vld [vmem:[%s6840_s8 + $0x984] ss:$16 sps:$4 sm:$0xff]   ;;  %v6318_v29 = vld [vmem:[%s6840_s8 + $0x98c] ss:$16 sps:$4 sm:$0xff]  }
 0x2f9   : > { %3607 = vmatpush1.bf16.msra.mxu0 %v6223_v15  ;;  %3648 = vmatpush1.bf16.msra.mxu1 %v6226_v14  ;;  %v6313_v15 = vld [vmem:[%s6840_s8 + $0x980] ss:$16 sps:$4 sm:$0xff]   ;;  %v6316_v14 = vld [vmem:[%s6840_s8 + $0x988] ss:$16 sps:$4 sm:$0xff]  }
 0x2fa   : > { %3608 = vmatprep.subr.bf16.mxu0 %v6231_v22  ;;  %3649 = vmatprep.subr.bf16.mxu1 %v6234_v31  ;;  %v6321_v22 = vld [vmem:[%s6840_s8 + $0x9a4] ss:$16 sps:$4 sm:$0xff]   ;;  %v6324_v31 = vld [vmem:[%s6840_s8 + $0x9ac] ss:$16 sps:$4 sm:$0xff]  }
 0x2fd   : > { %3609 = vmatpush1.bf16.msra.mxu0 %v6229_v33  ;;  %3650 = vmatpush1.bf16.msra.mxu1 %v6232_v27  ;;  %v6319_v33 = vld [vmem:[%s6840_s8 + $0x9a0] ss:$16 sps:$4 sm:$0xff]   ;;  %v6322_v27 = vld [vmem:[%s6840_s8 + $0x9a8] ss:$16 sps:$4 sm:$0xff]  }
 0x2fe   : > { %3610 = vmatprep.subr.bf16.mxu0 %v6237_v35  ;;  %3651 = vmatprep.subr.bf16.mxu1 %v6240_v36  ;;  %v6327_v35 = vld [vmem:[%s6840_s8 + $0x9c4] ss:$16 sps:$4 sm:$0xff]   ;;  %v6330_v36 = vld [vmem:[%s6840_s8 + $0x9cc] ss:$16 sps:$4 sm:$0xff]  }
 0x301   : > { %3611 = vmatpush1.bf16.msra.mxu0 %v6235_v44  ;;  %3652 = vmatpush1.bf16.msra.mxu1 %v6238_v38  ;;  %v6325_v44 = vld [vmem:[%s6840_s8 + $0x9c0] ss:$16 sps:$4 sm:$0xff]   ;;  %v6328_v38 = vld [vmem:[%s6840_s8 + $0x9c8] ss:$16 sps:$4 sm:$0xff]  }
 0x302   : > { %3612 = vmatprep.subr.bf16.mxu0 %v6243_v47  ;;  %3653 = vmatprep.subr.bf16.mxu1 %v6246_v39  ;;  %v6333_v47 = vld [vmem:[%s6840_s8 + $0x9e4] ss:$16 sps:$4 sm:$0xff]   ;;  %v6336_v39 = vld [vmem:[%s6840_s8 + $0x9ec] ss:$16 sps:$4 sm:$0xff]  }
 0x305   : > { %3613 = vmatpush1.bf16.msra.mxu0 %v6241_v52  ;;  %3654 = vmatpush1.bf16.msra.mxu1 %v6244_v41  ;;  %v6331_v52 = vld [vmem:[%s6840_s8 + $0x9e0] ss:$16 sps:$4 sm:$0xff]   ;;  %v6334_v41 = vld [vmem:[%s6840_s8 + $0x9e8] ss:$16 sps:$4 sm:$0xff]  }
 0x306   : > { %3614 = vmatprep.subr.bf16.mxu0 %v6249_v43  ;;  %3655 = vmatprep.subr.bf16.mxu1 %v6252_v57  ;;  %v6339_v43 = vld [vmem:[%s6840_s8 + $0xa04] ss:$16 sps:$4 sm:$0xff]   ;;  %v6342_v57 = vld [vmem:[%s6840_s8 + $0xa0c] ss:$16 sps:$4 sm:$0xff]  }
 0x309   : > { %3615 = vmatpush1.bf16.msra.mxu0 %v6247_v23  ;;  %3656 = vmatpush1.bf16.msra.mxu1 %v6250_v45  ;;  %v6337_v23 = vld [vmem:[%s6840_s8 + $0xa00] ss:$16 sps:$4 sm:$0xff]   ;;  %v6340_v45 = vld [vmem:[%s6840_s8 + $0xa08] ss:$16 sps:$4 sm:$0xff]  }
 0x30a   : > { %3616 = vmatprep.subr.bf16.mxu0 %v6255_v49  ;;  %3657 = vmatprep.subr.bf16.mxu1 %v6258_v26  ;;  %v6345_v49 = vld [vmem:[%s6840_s8 + $0xa24] ss:$16 sps:$4 sm:$0xff]   ;;  %v6348_v26 = vld [vmem:[%s6840_s8 + $0xa2c] ss:$16 sps:$4 sm:$0xff]  }
 0x30d   : > { %3617 = vmatpush1.bf16.msra.mxu0 %v6253_v32  ;;  %3658 = vmatpush1.bf16.msra.mxu1 %v6256_v53  ;;  %v6343_v32 = vld [vmem:[%s6840_s8 + $0xa20] ss:$16 sps:$4 sm:$0xff]   ;;  %v6346_v53 = vld [vmem:[%s6840_s8 + $0xa28] ss:$16 sps:$4 sm:$0xff]  }
 0x30e   : > { %3618 = vmatprep.subr.bf16.mxu0 %v6261_v54  ;;  %3659 = vmatprep.subr.bf16.mxu1 %v6264_v37  ;;  %v6351_v54 = vld [vmem:[%s6840_s8 + $0xa44] ss:$16 sps:$4 sm:$0xff]   ;;  %v6354_v37 = vld [vmem:[%s6840_s8 + $0xa4c] ss:$16 sps:$4 sm:$0xff]  }
 0x311   : > { %3619 = vmatpush1.bf16.msra.mxu0 %v6259_v56  ;;  %3660 = vmatpush1.bf16.msra.mxu1 %v6262_v59  ;;  %v6349_v56 = vld [vmem:[%s6840_s8 + $0xa40] ss:$16 sps:$4 sm:$0xff]   ;;  %v6352_v59 = vld [vmem:[%s6840_s8 + $0xa48] ss:$16 sps:$4 sm:$0xff]  }
 0x312   : > { %3620 = vmatprep.subr.bf16.mxu0 %v6267_v42  ;;  %3661 = vmatprep.subr.bf16.mxu1 %v6270_v60  ;;  %v6357_v42 = vld [vmem:[%s6840_s8 + $0xa64] ss:$16 sps:$4 sm:$0xff]   ;;  %v6360_v60 = vld [vmem:[%s6840_s8 + $0xa6c] ss:$16 sps:$4 sm:$0xff]  }
 0x315   : > { %3621 = vmatpush1.bf16.msra.mxu0 %v6265_v61  ;;  %3662 = vmatpush1.bf16.msra.mxu1 %v6268_v46  ;;  %v6355_v61 = vld [vmem:[%s6840_s8 + $0xa60] ss:$16 sps:$4 sm:$0xff]   ;;  %v6358_v46 = vld [vmem:[%s6840_s8 + $0xa68] ss:$16 sps:$4 sm:$0xff]  }
 0x316   : > { %3622 = vmatprep.subr.bf16.mxu0 %v6273_v55  ;;  %3663 = vmatprep.subr.bf16.mxu1 %v6276_v1  ;;  %v3689_v55 = vld [vmem:[%s7694_s17] sm:$0xff] }
 0x317   : > { %v6363_v1 = vld [vmem:[%s6840_s8 + $0xa84] ss:$16 sps:$4 sm:$0xff]  }
 0x319   : > { %3623 = vmatpush1.bf16.msra.mxu0 %v6271_v2  ;;  %3664 = vmatpush1.bf16.msra.mxu1 %v6274_v62  ;;  %v6366_v2 = vld [vmem:[%s6840_s8 + $0xa8c] ss:$16 sps:$4 sm:$0xff]   ;;  %v3691_v62 = vpack.c.bf16 %v3689_v55, %v3689_v55 }
 0x31a   : > { %4032 = vmatprep.subr.bf16.mxu0 %v6279_v5  ;;  %4073 = vmatprep.subr.bf16.mxu1 %v6282_v6  ;;  %v6361_v5 = vld [vmem:[%s6840_s8 + $0xa80] ss:$16 sps:$4 sm:$0xff]   ;;  %v6364_v6 = vld [vmem:[%s6840_s8 + $0xa88] ss:$16 sps:$4 sm:$0xff]  }
 0x31b   : > { %v1498_v55 = vld [vmem:[#allocation3 + $0x8] sm:$0xff] }
 0x31c   : > { %3629 = vmatmul.mubr.bf16.vlgmr.msra.gmra.mrb[0].mxu0 %v3255_v7  ;;  %3670 = vmatmul.mubr.bf16.vlgmr.msra.gmra.mrb[0].mxu1 %v3255_v7  ;;  %v6369_v7 = vld [vmem:[%s6840_s8 + $0xaa4] ss:$16 sps:$4 sm:$0xff]  }
 0x31d   : > { %4033 = vmatpush1.bf16.msra.mxu0 %v6277_v9  ;;  %4074 = vmatpush1.bf16.msra.mxu1 %v6280_v10  ;;  %v4128_v9 = vpack.c.bf16 %v4126_v4, %v4126_v4  ;;  %v6367_v10 = vld [vmem:[%s6840_s8 + $0xaa0] ss:$16 sps:$4 sm:$0xff]  }
 0x31e   : > { %4034 = vmatprep.subr.bf16.mxu0 %v6285_v51  ;;  %4075 = vmatprep.subr.bf16.mxu1 %v6288_v58  ;;  %v6370_v51 = vld [vmem:[%s6840_s8 + $0xaa8] ss:$16 sps:$4 sm:$0xff]   ;;  %v6375_v58 = vld [vmem:[%s6840_s8 + $0xac4] ss:$16 sps:$4 sm:$0xff]  }
 0x31f   : > { %5386 = vmatprep.mubr.msk.bf16.mxu0 %vm1847_vm2, %v3692_v11  ;;  %5387 = vmatprep.mubr.msk.bf16.mxu1 %vm1847_vm2, %v3692_v11  ;;  %v6378_v11 = vld [vmem:[%s6840_s8 + $0xacc] ss:$16 sps:$4 sm:$0xff]  }
 0x321   : > { %4035 = vmatpush1.bf16.msra.mxu0 %v6283_v13  ;;  %4076 = vmatpush1.bf16.msra.mxu1 %v6286_v63  ;;  %v6373_v13 = vld [vmem:[%s6840_s8 + $0xac0] ss:$16 sps:$4 sm:$0xff]   ;;  %v6376_v63 = vld [vmem:[%s6840_s8 + $0xac8] ss:$16 sps:$4 sm:$0xff]  }
 0x322   : > { %4036 = vmatprep.subr.bf16.mxu0 %v6291_v16  ;;  %4077 = vmatprep.subr.bf16.mxu1 %v6294_v17  ;;  %v6381_v16 = vld [vmem:[%s6840_s8 + $0xae4] ss:$16 sps:$4 sm:$0xff]   ;;  %v6384_v17 = vld [vmem:[%s6840_s8 + $0xaec] ss:$16 sps:$4 sm:$0xff]  }
 0x325   : > { %4037 = vmatpush1.bf16.msra.mxu0 %v6289_v20  ;;  %4078 = vmatpush1.bf16.msra.mxu1 %v6292_v21  ;;  %v6379_v20 = vld [vmem:[%s6840_s8 + $0xae0] ss:$16 sps:$4 sm:$0xff]   ;;  %v6382_v21 = vld [vmem:[%s6840_s8 + $0xae8] ss:$16 sps:$4 sm:$0xff]  }
 0x326   : > { %4038 = vmatprep.subr.bf16.mxu0 %v6297_v18  ;;  %4079 = vmatprep.subr.bf16.mxu1 %v6300_v24  ;;  %v6387_v18 = vld [vmem:[%s6840_s8 + $0xb04] ss:$16 sps:$4 sm:$0xff]   ;;  %v6390_v24 = vld [vmem:[%s6840_s8 + $0xb0c] ss:$16 sps:$4 sm:$0xff]  }
 0x329   : > { %4039 = vmatpush1.bf16.msra.mxu0 %v6295_v25  ;;  %4080 = vmatpush1.bf16.msra.mxu1 %v6298_v0  ;;  %v6385_v25 = vld [vmem:[%s6840_s8 + $0xb00] ss:$16 sps:$4 sm:$0xff]   ;;  %v6388_v0 = vld [vmem:[%s6840_s8 + $0xb08] ss:$16 sps:$4 sm:$0xff]  }
 0x32a   : > { %4040 = vmatprep.subr.bf16.mxu0 %v6303_v12  ;;  %4081 = vmatprep.subr.bf16.mxu1 %v6306_v28  ;;  %v6393_v12 = vld [vmem:[%s6840_s8 + $0xb24] ss:$16 sps:$4 sm:$0xff]   ;;  %v6396_v28 = vld [vmem:[%s6840_s8 + $0xb2c] ss:$16 sps:$4 sm:$0xff]  }
 0x32d   : > { %4041 = vmatpush1.bf16.msra.mxu0 %v6301_v19  ;;  %4082 = vmatpush1.bf16.msra.mxu1 %v6304_v30  ;;  %v6391_v19 = vld [vmem:[%s6840_s8 + $0xb20] ss:$16 sps:$4 sm:$0xff]   ;;  %v6394_v30 = vld [vmem:[%s6840_s8 + $0xb28] ss:$16 sps:$4 sm:$0xff]  }
 0x32e   : > { %4042 = vmatprep.subr.bf16.mxu0 %v6309_v34  ;;  %4083 = vmatprep.subr.bf16.mxu1 %v6312_v40  ;;  %v6399_v34 = vld [vmem:[%s6840_s8 + $0xb44] ss:$16 sps:$4 sm:$0xff]   ;;  %v6402_v40 = vld [vmem:[%s6840_s8 + $0xb4c] ss:$16 sps:$4 sm:$0xff]  }
 0x331   : > { %4043 = vmatpush1.bf16.msra.mxu0 %v6307_v50  ;;  %4084 = vmatpush1.bf16.msra.mxu1 %v6310_v3  ;;  %v6397_v50 = vld [vmem:[%s6840_s8 + $0xb40] ss:$16 sps:$4 sm:$0xff]   ;;  %v6400_v3 = vld [vmem:[%s6840_s8 + $0xb48] ss:$16 sps:$4 sm:$0xff]  }
 0x332   : > { %4044 = vmatprep.subr.bf16.mxu0 %v6315_v8  ;;  %4085 = vmatprep.subr.bf16.mxu1 %v6318_v29  ;;  %v6405_v8 = vld [vmem:[%s6840_s8 + $0xb64] ss:$16 sps:$4 sm:$0xff]   ;;  %v6408_v29 = vld [vmem:[%s6840_s8 + $0xb6c] ss:$16 sps:$4 sm:$0xff]  }
 0x335   : > { %4045 = vmatpush1.bf16.msra.mxu0 %v6313_v15  ;;  %4086 = vmatpush1.bf16.msra.mxu1 %v6316_v14  ;;  %v6403_v15 = vld [vmem:[%s6840_s8 + $0xb60] ss:$16 sps:$4 sm:$0xff]   ;;  %v6406_v14 = vld [vmem:[%s6840_s8 + $0xb68] ss:$16 sps:$4 sm:$0xff]  }
 0x336   : > { %4046 = vmatprep.subr.bf16.mxu0 %v6321_v22  ;;  %4087 = vmatprep.subr.bf16.mxu1 %v6324_v31  ;;  %v6411_v22 = vld [vmem:[%s6840_s8 + $0xb84] ss:$16 sps:$4 sm:$0xff]   ;;  %v6414_v31 = vld [vmem:[%s6840_s8 + $0xb8c] ss:$16 sps:$4 sm:$0xff]  }
 0x339   : > { %4047 = vmatpush1.bf16.msra.mxu0 %v6319_v33  ;;  %4088 = vmatpush1.bf16.msra.mxu1 %v6322_v27  ;;  %v6409_v33 = vld [vmem:[%s6840_s8 + $0xb80] ss:$16 sps:$4 sm:$0xff]   ;;  %v6412_v27 = vld [vmem:[%s6840_s8 + $0xb88] ss:$16 sps:$4 sm:$0xff]  }
 0x33a   : > { %4048 = vmatprep.subr.bf16.mxu0 %v6327_v35  ;;  %4089 = vmatprep.subr.bf16.mxu1 %v6330_v36  ;;  %v6417_v35 = vld [vmem:[%s6840_s8 + $0xba4] ss:$16 sps:$4 sm:$0xff]   ;;  %v6420_v36 = vld [vmem:[%s6840_s8 + $0xbac] ss:$16 sps:$4 sm:$0xff]  }
 0x33d   : > { %4049 = vmatpush1.bf16.msra.mxu0 %v6325_v44  ;;  %4090 = vmatpush1.bf16.msra.mxu1 %v6328_v38  ;;  %v6415_v44 = vld [vmem:[%s6840_s8 + $0xba0] ss:$16 sps:$4 sm:$0xff]   ;;  %v6418_v38 = vld [vmem:[%s6840_s8 + $0xba8] ss:$16 sps:$4 sm:$0xff]  }
 0x33e   : > { %4050 = vmatprep.subr.bf16.mxu0 %v6333_v47  ;;  %4091 = vmatprep.subr.bf16.mxu1 %v6336_v39  ;;  %v6423_v47 = vld [vmem:[%s6840_s8 + $0xbc4] ss:$16 sps:$4 sm:$0xff]   ;;  %v6426_v39 = vld [vmem:[%s6840_s8 + $0xbcc] ss:$16 sps:$4 sm:$0xff]  }
 0x341   : > { %4051 = vmatpush1.bf16.msra.mxu0 %v6331_v52  ;;  %4092 = vmatpush1.bf16.msra.mxu1 %v6334_v41  ;;  %v6421_v52 = vld [vmem:[%s6840_s8 + $0xbc0] ss:$16 sps:$4 sm:$0xff]   ;;  %v6424_v41 = vld [vmem:[%s6840_s8 + $0xbc8] ss:$16 sps:$4 sm:$0xff]  }
 0x342   : > { %4052 = vmatprep.subr.bf16.mxu0 %v6339_v43  ;;  %4093 = vmatprep.subr.bf16.mxu1 %v6342_v57  ;;  %v6429_v43 = vld [vmem:[%s6840_s8 + $0xbe4] ss:$16 sps:$4 sm:$0xff]   ;;  %v6432_v57 = vld [vmem:[%s6840_s8 + $0xbec] ss:$16 sps:$4 sm:$0xff]  }
 0x345   : > { %4053 = vmatpush1.bf16.msra.mxu0 %v6337_v23  ;;  %4094 = vmatpush1.bf16.msra.mxu1 %v6340_v45  ;;  %v6427_v23 = vld [vmem:[%s6840_s8 + $0xbe0] ss:$16 sps:$4 sm:$0xff]   ;;  %v6430_v45 = vld [vmem:[%s6840_s8 + $0xbe8] ss:$16 sps:$4 sm:$0xff]  }
 0x346   : > { %4054 = vmatprep.subr.bf16.mxu0 %v6345_v49  ;;  %4095 = vmatprep.subr.bf16.mxu1 %v6348_v26  ;;  %v6435_v49 = vld [vmem:[%s6840_s8 + $0xc04] ss:$16 sps:$4 sm:$0xff]   ;;  %v6438_v26 = vld [vmem:[%s6840_s8 + $0xc0c] ss:$16 sps:$4 sm:$0xff]  }
 0x349   : > { %4055 = vmatpush1.bf16.msra.mxu0 %v6343_v32  ;;  %4096 = vmatpush1.bf16.msra.mxu1 %v6346_v53  ;;  %v6433_v32 = vld [vmem:[%s6840_s8 + $0xc00] ss:$16 sps:$4 sm:$0xff]   ;;  %v6436_v53 = vld [vmem:[%s6840_s8 + $0xc08] ss:$16 sps:$4 sm:$0xff]  }
 0x34a   : > { %4056 = vmatprep.subr.bf16.mxu0 %v6351_v54  ;;  %4097 = vmatprep.subr.bf16.mxu1 %v6354_v37  ;;  %v6441_v54 = vld [vmem:[%s6840_s8 + $0xc24] ss:$16 sps:$4 sm:$0xff]   ;;  %v6444_v37 = vld [vmem:[%s6840_s8 + $0xc2c] ss:$16 sps:$4 sm:$0xff]  }
 0x34d   : > { %4057 = vmatpush1.bf16.msra.mxu0 %v6349_v56  ;;  %4098 = vmatpush1.bf16.msra.mxu1 %v6352_v59  ;;  %v6439_v56 = vld [vmem:[%s6840_s8 + $0xc20] ss:$16 sps:$4 sm:$0xff]   ;;  %v6442_v59 = vld [vmem:[%s6840_s8 + $0xc28] ss:$16 sps:$4 sm:$0xff]  }
 0x34e   : > { %4058 = vmatprep.subr.bf16.mxu0 %v6357_v42  ;;  %4099 = vmatprep.subr.bf16.mxu1 %v6360_v60  ;;  %v4125_v42 = vld [vmem:[%s7757_s13] sm:$0xff] }
 0x34f   : > { %v4127_v60 = vpack.c.bf16 %v4125_v42, %v4125_v42  ;;  %v4620_v42 = vld [vmem:[%s8031_s5 + $0xc0] sm:$0xff] (!%p5449_p13) }
 0x351   : > { %4059 = vmatpush1.bf16.msra.mxu0 %v6355_v61  ;;  %4100 = vmatpush1.bf16.msra.mxu1 %v6358_v46  ;;  %v1497_v61 = vld [vmem:[#allocation3] sm:$0xff]  ;;  %v1499_v46 = vld [vmem:[#allocation3 + $0x10] sm:$0xff] }
 0x352   : > { %4468 = vmatprep.subr.bf16.mxu0 %v6363_v1  ;;  %4509 = vmatprep.subr.bf16.mxu1 %v6366_v2  ;;  %v1500_v1 = vld [vmem:[#allocation3 + $0x18] sm:$0xff] }
 0x354   : > { %4065 = vmatmul.mubr.bf16.vlgmr.msra.gmra.mrb[0].mxu0 %v3691_v62  ;;  %4106 = vmatmul.mubr.bf16.vlgmr.msra.gmra.mrb[0].mxu1 %v3691_v62 }
 0x355   : > { %4469 = vmatpush1.bf16.msra.mxu0 %v6361_v5  ;;  %4510 = vmatpush1.bf16.msra.mxu1 %v6364_v6 }
 0x356   : > { %4470 = vmatprep.subr.bf16.mxu0 %v6369_v7  ;;  %4511 = vmatprep.subr.bf16.mxu1 %v6372_v48 }
 0x357   : > { %5447 = vmatprep.mubr.msk.bf16.mxu0 %vm1847_vm2, %v4128_v9  ;;  %5448 = vmatprep.mubr.msk.bf16.mxu1 %vm1847_vm2, %v4128_v9 }
 0x359   : > { %4471 = vmatpush1.bf16.msra.mxu0 %v6367_v10  ;;  %4512 = vmatpush1.bf16.msra.mxu1 %v6370_v51 }
 0x35a   : > { %4472 = vmatprep.subr.bf16.mxu0 %v6375_v58  ;;  %4513 = vmatprep.subr.bf16.mxu1 %v6378_v11 }
 0x35d   : > { %4473 = vmatpush1.bf16.msra.mxu0 %v6373_v13  ;;  %4514 = vmatpush1.bf16.msra.mxu1 %v6376_v63  ;;  %v4612_v13 = vld [vmem:[%s8031_s5 + $0x80] sm:$0xff] (!%p5449_p13)  ;;  %v4613_v63 = vld [vmem:[%s8031_s5 + $0x88] sm:$0xff] (!%p5449_p13) }
 0x35e   : > { %4474 = vmatprep.subr.bf16.mxu0 %v6381_v16  ;;  %4515 = vmatprep.subr.bf16.mxu1 %v6384_v17  ;;  %v4596_v16 = vld [vmem:[%s8031_s5] sm:$0xff] (!%p5449_p13)  ;;  %v5550_v17 = vpack.c.bf16 (!%p5449_p13), %v4613_v63, %v4612_v13 }
 0x361   : > { %4475 = vmatpush1.bf16.msra.mxu0 %v6379_v20  ;;  %4516 = vmatpush1.bf16.msra.mxu1 %v6382_v21  ;;  %v4597_v20 = vld [vmem:[%s8031_s5 + $0x8] sm:$0xff] (!%p5449_p13)  ;;  %v4644_v21 = vld [vmem:[%s8031_s5 + $0x180] sm:$0xff] (!%p5449_p13) }
 0x362   : > { %4476 = vmatprep.subr.bf16.mxu0 %v6387_v18  ;;  %4517 = vmatprep.subr.bf16.mxu1 %v6390_v24  ;;  %v4645_v18 = vld [vmem:[%s8031_s5 + $0x188] sm:$0xff] (!%p5449_p13)  ;;  %v5552_v24 = vpack.c.bf16 (!%p5449_p13), %v4597_v20, %v4596_v16  ;;  %v4607_v20 = vld [vmem:[%s8031_s5 + $0x58] sm:$0xff] (!%p5449_p13) }
 0x365   : > { %4477 = vmatpush1.bf16.msra.mxu0 %v6385_v25  ;;  %4518 = vmatpush1.bf16.msra.mxu1 %v6388_v0  ;;  %v5582_v25 = vpack.c.bf16 (!%p5449_p13), %v4645_v18, %v4644_v21  ;;  %v4628_v0 = vld [vmem:[%s8031_s5 + $0x100] sm:$0xff] (!%p5449_p13)  ;;  %v4638_v21 = vld [vmem:[%s8031_s5 + $0x150] sm:$0xff] (!%p5449_p13) }
 0x366   : > { %4478 = vmatprep.subr.bf16.mxu0 %v6393_v12  ;;  %4519 = vmatprep.subr.bf16.mxu1 %v6396_v28  ;;  %v4629_v12 = vld [vmem:[%s8031_s5 + $0x108] sm:$0xff] (!%p5449_p13)  ;;  %v4614_v28 = vld [vmem:[%s8031_s5 + $0x90] sm:$0xff] (!%p5449_p13) }
 0x369   : > { %4479 = vmatpush1.bf16.msra.mxu0 %v6391_v19  ;;  %4520 = vmatpush1.bf16.msra.mxu1 %v6394_v30  ;;  %v5584_v19 = vpack.c.bf16 (!%p5449_p13), %v4629_v12, %v4628_v0  ;;  %v4615_v30 = vld [vmem:[%s8031_s5 + $0x98] sm:$0xff] (!%p5449_p13)  ;;  %v4625_v0 = vld [vmem:[%s8031_s5 + $0xe8] sm:$0xff] (!%p5449_p13) }
 0x36a   : > { %4480 = vmatprep.subr.bf16.mxu0 %v6399_v34  ;;  %4521 = vmatprep.subr.bf16.mxu1 %v6402_v40  ;;  %v4598_v34 = vld [vmem:[%s8031_s5 + $0x10] sm:$0xff] (!%p5449_p13)  ;;  %v4599_v40 = vld [vmem:[%s8031_s5 + $0x18] sm:$0xff] (!%p5449_p13) }
 0x36d   : > { %4481 = vmatpush1.bf16.msra.mxu0 %v6397_v50  ;;  %4522 = vmatpush1.bf16.msra.mxu1 %v6400_v3  ;;  %v5554_v50 = vpack.c.bf16 (!%p5449_p13), %v4615_v30, %v4614_v28  ;;  %v5556_v3 = vpack.c.bf16 (!%p5449_p13), %v4599_v40, %v4598_v34  ;;  %v4657_v30 = vld [vmem:[%s8031_s5 + $0x1e8] sm:$0xff] (!%p5449_p13) }
 0x36e   : > { %4482 = vmatprep.subr.bf16.mxu0 %v6405_v8  ;;  %4523 = vmatprep.subr.bf16.mxu1 %v6408_v29  ;;  %v4646_v8 = vld [vmem:[%s8031_s5 + $0x190] sm:$0xff] (!%p5449_p13)  ;;  %v4647_v29 = vld [vmem:[%s8031_s5 + $0x198] sm:$0xff] (!%p5449_p13) }
 0x371   : > { %4483 = vmatpush1.bf16.msra.mxu0 %v6403_v15  ;;  %4524 = vmatpush1.bf16.msra.mxu1 %v6406_v14  ;;  %v4630_v15 = vld [vmem:[%s8031_s5 + $0x110] sm:$0xff] (!%p5449_p13)  ;;  %v5586_v14 = vpack.c.bf16 (!%p5449_p13), %v4647_v29, %v4646_v8  ;;  %v4640_v8 = vld [vmem:[%s8031_s5 + $0x160] sm:$0xff] (!%p5449_p13) }
 0x372   : > { %4484 = vmatprep.subr.bf16.mxu0 %v6411_v22  ;;  %4525 = vmatprep.subr.bf16.mxu1 %v6414_v31  ;;  %v4631_v22 = vld [vmem:[%s8031_s5 + $0x118] sm:$0xff] (!%p5449_p13)  ;;  %v4616_v31 = vld [vmem:[%s8031_s5 + $0xa0] sm:$0xff] (!%p5449_p13) }
 0x375   : > { %4485 = vmatpush1.bf16.msra.mxu0 %v6409_v33  ;;  %4526 = vmatpush1.bf16.msra.mxu1 %v6412_v27  ;;  %v4617_v33 = vld [vmem:[%s8031_s5 + $0xa8] sm:$0xff] (!%p5449_p13)  ;;  %v5588_v27 = vpack.c.bf16 (!%p5449_p13), %v4631_v22, %v4630_v15 }
 0x376   : > { %4486 = vmatprep.subr.bf16.mxu0 %v6417_v35  ;;  %4527 = vmatprep.subr.bf16.mxu1 %v6420_v36  ;;  %v5558_v35 = vpack.c.bf16 (!%p5449_p13), %v4617_v33, %v4616_v31  ;;  %v4600_v36 = vld [vmem:[%s8031_s5 + $0x20] sm:$0xff] (!%p5449_p13)  ;;  %v4641_v22 = vld [vmem:[%s8031_s5 + $0x168] sm:$0xff] (!%p5449_p13) }
 0x377   : > { %v4566_v33 = vld [vmem:[#allocation10] sm:$0xf] (!%p5449_p13) }
 0x379   : > { %4487 = vmatpush1.bf16.msra.mxu0 %v6415_v44  ;;  %4528 = vmatpush1.bf16.msra.mxu1 %v6418_v38  ;;  %v4601_v44 = vld [vmem:[%s8031_s5 + $0x28] sm:$0xff] (!%p5449_p13)  ;;  %v4648_v38 = vld [vmem:[%s8031_s5 + $0x1a0] sm:$0xff] (!%p5449_p13) }
 0x37a   : > { %4488 = vmatprep.subr.bf16.mxu0 %v6423_v47  ;;  %4529 = vmatprep.subr.bf16.mxu1 %v6426_v39  ;;  %v4649_v47 = vld [vmem:[%s8031_s5 + $0x1a8] sm:$0xff] (!%p5449_p13)  ;;  %v4632_v39 = vld [vmem:[%s8031_s5 + $0x120] sm:$0xff] (!%p5449_p13) }
 0x37d   : > { %4489 = vmatpush1.bf16.msra.mxu0 %v6421_v52  ;;  %4530 = vmatpush1.bf16.msra.mxu1 %v6424_v41  ;;  %v4633_v52 = vld [vmem:[%s8031_s5 + $0x128] sm:$0xff] (!%p5449_p13)  ;;  %v5560_v41 = vpack.c.bf16 (!%p5449_p13), %v4601_v44, %v4600_v36  ;;  %v4627_v36 = vld [vmem:[%s8031_s5 + $0xf8] sm:$0xff] (!%p5449_p13) }
 0x37e   : > { %4490 = vmatprep.subr.bf16.mxu0 %v6429_v43  ;;  %4531 = vmatprep.subr.bf16.mxu1 %v6432_v57  ;;  %v5590_v43 = vpack.c.bf16 (!%p5449_p13), %v4649_v47, %v4648_v38  ;;  %v4618_v57 = vld [vmem:[%s8031_s5 + $0xb0] sm:$0xff] (!%p5449_p13) }
 0x381   : > { %4491 = vmatpush1.bf16.msra.mxu0 %v6427_v23  ;;  %4532 = vmatpush1.bf16.msra.mxu1 %v6430_v45  ;;  %v4619_v23 = vld [vmem:[%s8031_s5 + $0xb8] sm:$0xff] (!%p5449_p13)  ;;  %v4602_v45 = vld [vmem:[%s8031_s5 + $0x30] sm:$0xff] (!%p5449_p13) }
 0x382   : > { %4492 = vmatprep.subr.bf16.mxu0 %v6435_v49  ;;  %4533 = vmatprep.subr.bf16.mxu1 %v6438_v26  ;;  %v5592_v49 = vpack.c.bf16 (!%p5449_p13), %v4633_v52, %v4632_v39  ;;  %v5562_v26 = vpack.c.bf16 (!%p5449_p13), %v4619_v23, %v4618_v57  ;;  %v4658_v39 = vld [vmem:[%s8031_s5 + $0x1f0] sm:$0xff] (!%p5449_p13)  ;;  %v4659_v52 = vld [vmem:[%s8031_s5 + $0x1f8] sm:$0xff] (!%p5449_p13) }
 0x385   : > { %4493 = vmatpush1.bf16.msra.mxu0 %v6433_v32  ;;  %4534 = vmatpush1.bf16.msra.mxu1 %v6436_v53  ;;  %v4603_v32 = vld [vmem:[%s8031_s5 + $0x38] sm:$0xff] (!%p5449_p13)  ;;  %v4650_v53 = vld [vmem:[%s8031_s5 + $0x1b0] sm:$0xff] (!%p5449_p13) }
 0x386   : > { %4494 = vmatprep.subr.bf16.mxu0 %v6441_v54  ;;  %4535 = vmatprep.subr.bf16.mxu1 %v6444_v37  ;;  %v4651_v54 = vld [vmem:[%s8031_s5 + $0x1b8] sm:$0xff] (!%p5449_p13) }
 0x387   : > { %v5594_v37 = vpack.c.bf16 (!%p5449_p13), %v4651_v54, %v4650_v53  ;;  %v4610_v53 = vld [vmem:[%s8031_s5 + $0x70] sm:$0xff] (!%p5449_p13)  ;;  %v4611_v54 = vld [vmem:[%s8031_s5 + $0x78] sm:$0xff] (!%p5449_p13) }
 0x389   : > { %4495 = vmatpush1.bf16.msra.mxu0 %v6439_v56  ;;  %4536 = vmatpush1.bf16.msra.mxu1 %v6442_v59  ;;  %v4634_v56 = vld [vmem:[%s8031_s5 + $0x130] sm:$0xff] (!%p5449_p13)  ;;  %v4635_v59 = vld [vmem:[%s8031_s5 + $0x138] sm:$0xff] (!%p5449_p13) }
 0x38a   : > { %5551 = vmatprep.subr.bf16.mxu0 (!%p5449_p13), %v5550_v17  ;;  %5583 = vmatprep.subr.bf16.mxu1 (!%p5449_p13), %v5582_v25  ;;  %v4606_v17 = vld [vmem:[%s8031_s5 + $0x50] sm:$0xff] (!%p5449_p13)  ;;  %v4624_v25 = vld [vmem:[%s8031_s5 + $0xe0] sm:$0xff] (!%p5449_p13) }
 0x38b   : > { %v5572_v40 = vpack.c.bf16 (!%p5449_p13), %v4607_v20, %v4606_v17 }
 0x38c   : > { %4501 = vmatmul.mubr.bf16.vlgmr.msra.gmra.mrb[0].mxu0 %v4127_v60  ;;  %4542 = vmatmul.mubr.bf16.vlgmr.msra.gmra.mrb[0].mxu1 %v4127_v60  ;;  %v4568_v60 = vlaneseq (!%p5449_p13) }
 0x38d   : > { %5553 = vmatpush3.bf16.msra.mxu0 (!%p5449_p13), %v5552_v24  ;;  %5585 = vmatpush3.bf16.msra.mxu1 (!%p5449_p13), %v5584_v19  ;;  %v4639_v24 = vld [vmem:[%s8031_s5 + $0x158] sm:$0xff] (!%p5449_p13)  ;;  %v4656_v19 = vld [vmem:[%s8031_s5 + $0x1e0] sm:$0xff] (!%p5449_p13) }
 0x38e   : > { %5555 = vmatprep.subr.bf16.mxu0 (!%p5449_p13), %v5554_v50  ;;  %5587 = vmatprep.subr.bf16.mxu1 (!%p5449_p13), %v5586_v14  ;;  %v4608_v50 = vld [vmem:[%s8031_s5 + $0x60] sm:$0xff] (!%p5449_p13)  ;;  %v5604_v15 = vpack.c.bf16 (!%p5449_p13), %v4639_v24, %v4638_v21  ;;  %v5574_v14 = vpack.c.bf16 (!%p5449_p13), %v4625_v0, %v4624_v25 }
 0x391   : > { %5557 = vmatpush3.bf16.msra.mxu0 (!%p5449_p13), %v5556_v3  ;;  %5589 = vmatpush3.bf16.msra.mxu1 (!%p5449_p13), %v5588_v27  ;;  %v4609_v3 = vld [vmem:[%s8031_s5 + $0x68] sm:$0xff] (!%p5449_p13)  ;;  %v5606_v27 = vpack.c.bf16 (!%p5449_p13), %v4657_v30, %v4656_v19 }
 0x392   : > { %5559 = vmatprep.subr.bf16.mxu0 (!%p5449_p13), %v5558_v35  ;;  %5591 = vmatprep.subr.bf16.mxu1 (!%p5449_p13), %v5590_v43  ;;  %v4626_v35 = vld [vmem:[%s8031_s5 + $0xf0] sm:$0xff] (!%p5449_p13)  ;;  %v5576_v43 = vpack.c.bf16 (!%p5449_p13), %v4609_v3, %v4608_v50 }
 0x395   : > { %5561 = vmatpush3.bf16.msra.mxu0 (!%p5449_p13), %v5560_v41  ;;  %5593 = vmatpush3.bf16.msra.mxu1 (!%p5449_p13), %v5592_v49 }
 0x396   : > { %5563 = vmatprep.subr.bf16.mxu0 (!%p5449_p13), %v5562_v26  ;;  %5595 = vmatprep.subr.bf16.mxu1 (!%p5449_p13), %v5594_v37  ;;  %v5608_v26 = vpack.c.bf16 (!%p5449_p13), %v4641_v22, %v4640_v8 }
 0x45d   : > { %4561 = sbr.rel (%p5449_p13) target bundleno = 1391 (0x56f), region = 72 }
 0x45f   : > { %v4502_v2 = vpop.f32.mrb[0].mxu0  ;;  %v4543_v62 = vpop.f32.mrb[0].mxu1 }
 0x460   : > { %v5614_v4 = vadd.f32 %v4502_v2, %v1497_v61  ;;  %v5616_v5 = vadd.f32 %v4543_v62, %v1499_v46  ;;  %v4504_v6 = vpop.f32.mrb[1].mxu0  ;;  %v4545_v7 = vpop.f32.mrb[1].mxu1  ;;  %v4621_v61 = vld [vmem:[%s8031_s5 + $0xc8] sm:$0xff] (!%p5449_p13)  ;;  %v5564_v46 = vpack.c.bf16 (!%p5449_p13), %v4603_v32, %v4602_v45  ;;  %v5596_v2 = vpack.c.bf16 (!%p5449_p13), %v4635_v59, %v4634_v56  ;;  %v4642_v59 = vld [vmem:[%s8031_s5 + $0x170] sm:$0xff] (!%p5449_p13) }
 0x461   : > { %v5615_v48 = vadd.f32 %v4504_v6, %v1498_v55  ;;  %v5617_v9 = vadd.f32 %v4545_v7, %v1500_v1  ;;  %v4506_v10 = vpop.f32.mrb[2].mxu0  ;;  %v4547_v51 = vpop.f32.mrb[2].mxu1  ;;  %v4652_v55 = vld [vmem:[%s8031_s5 + $0x1c0] sm:$0xff] (!%p5449_p13)  ;;  %v4653_v1 = vld [vmem:[%s8031_s5 + $0x1c8] sm:$0xff] (!%p5449_p13)  ;;  %v5566_v62 = vpack.c.bf16 (!%p5449_p13), %v4621_v61, %v4620_v42  ;;  %v5578_v32 = vpack.c.bf16 (!%p5449_p13), %v4627_v36, %v4626_v35  ;;  %v4643_v42 = vld [vmem:[%s8031_s5 + $0x178] sm:$0xff] (!%p5449_p13) }
 0x462   : > { %4554 = vst [vmem:[#allocation3] sm:$0xff] %v5614_v4  ;;  %4556 = vst [vmem:[#allocation3 + $0x10] sm:$0xff] %v5616_v5  ;;  %v4507_v58 = vpop.f32.mrb[3].mxu0  ;;  %v4548_v11 = vpop.f32.mrb[3].mxu1  ;;  %v4604_v4 = vld [vmem:[%s8031_s5 + $0x40] sm:$0xff] (!%p5449_p13)  ;;  %v4605_v5 = vld [vmem:[%s8031_s5 + $0x48] sm:$0xff] (!%p5449_p13)  ;;  %v5598_v7 = vpack.c.bf16 (!%p5449_p13), %v4653_v1, %v4652_v55  ;;  %5565 = vmatpush3.bf16.msra.mxu0 (!%p5449_p13), %v5564_v46  ;;  %5597 = vmatpush3.bf16.msra.mxu1 (!%p5449_p13), %v5596_v2  ;;  %v5610_v56 = vpack.c.bf16 (!%p5449_p13), %v4659_v52, %v4658_v39 }
 0x463   : > { %4555 = vst [vmem:[#allocation3 + $0x8] sm:$0xff] %v5615_v48  ;;  %4557 = vst [vmem:[#allocation3 + $0x18] sm:$0xff] %v5617_v9  ;;  %v4636_v6 = vld [vmem:[%s8031_s5 + $0x140] sm:$0xff] (!%p5449_p13)  ;;  %v4637_v48 = vld [vmem:[%s8031_s5 + $0x148] sm:$0xff] (!%p5449_p13)  ;;  %v4569_v51 = vshrl.u32 (!%p5449_p13), %v4568_v60, 7  ;;  %v5568_v13 = vpack.c.bf16 (!%p5449_p13), %v4605_v5, %v4604_v4  ;;  %5567 = vmatprep.subr.bf16.mxu0 (!%p5449_p13), %v5566_v62  ;;  %v5580_v55 = vpack.c.bf16 (!%p5449_p13), %v4611_v54, %v4610_v53 }
 0x464   : > { %v4622_v9 = vld [vmem:[%s8031_s5 + $0xd0] sm:$0xff]  ;;  %v4623_v10 = vld [vmem:[%s8031_s5 + $0xd8] sm:$0xff]  ;;  %v5600_v63 = vpack.c.bf16 %v4637_v48, %v4636_v6  ;;  %5599 = vmatprep.subr.bf16.mxu1 %v5598_v7  ;;  %v5612_v2 = vpack.c.bf16 %v4643_v42, %v4642_v59  ;;  %v4661_v6 = vstv %s4660_s7 }
 0x465   : > { %v4654_v58 = vld [vmem:[%s8031_s5 + $0x1d0] sm:$0xff]  ;;  %v4655_v11 = vld [vmem:[%s8031_s5 + $0x1d8] sm:$0xff]  ;;  %v5570_v16 = vpack.c.bf16 %v4623_v10, %v4622_v9  ;;  %v4574_v12 = vsub.s32 1, %v4569_v51  ;;  %v4582_v28 = vsub.s32 3, %v4569_v51  ;;  %v4570_v34 = vsub.s32 0, %v4569_v51 }
 0x466   : > { %v5602_v18 = vpack.c.bf16 %v4655_v11, %v4654_v58  ;;  %5569 = vmatpush3.bf16.msra.mxu0 %v5568_v13  ;;  %v4578_v29 = vsub.s32 2, %v4569_v51  ;;  %5601 = vmatpush3.bf16.msra.mxu1 %v5600_v63 }
 0x467   : > { %5571 = vmatprep.subr.bf16.mxu0 %v5570_v16  ;;  %v4575_v44 = vrot.slane %v4566_v33, %v4574_v12  ;;  %v4583_v47 = vrot.slane %v4566_v33, %v4582_v28  ;;  %v4571_v41 = vrot.slane %v4566_v33, %v4570_v34 }
 0x468   : > { %5603 = vmatprep.subr.bf16.mxu1 %v5602_v18  ;;  %v4579_v49 = vrot.slane %v4566_v33, %v4578_v29 }
 0x469   : > { %v4562_v23 = vld [vmem:[#allocation3] sm:$0xff]  ;;  %v4564_v37 = vld [vmem:[#allocation3 + $0x10] sm:$0xff] }
 0x46a   : > { %v4563_v31 = vld [vmem:[#allocation3 + $0x8] sm:$0xff]  ;;  %v4565_v38 = vld [vmem:[#allocation3 + $0x18] sm:$0xff]  ;;  %5573 = vmatpush3.bf16.msra.mxu0 %v5572_v40  ;;  %5605 = vmatpush3.bf16.msra.mxu1 %v5604_v15  ;;  %v4588_v46 = vadd.f32 %v4571_v41, %v4562_v23  ;;  %v4590_v1 = vadd.f32 %v4579_v49, %v4564_v37 }
 0x46b   : > { %v4589_v57 = vadd.f32 %v4575_v44, %v4563_v31  ;;  %v4591_v45 = vadd.f32 %v4583_v47, %v4565_v38  ;;  %5575 = vmatprep.subr.bf16.mxu0 %v5574_v14  ;;  %5607 = vmatprep.subr.bf16.mxu1 %v5606_v27 }
 0x46c   : > { %v4592_v62 = vmax.f32 %v4588_v46, 0.0  ;;  %v4594_v4 = vmax.f32 %v4590_v1, 0.0 }
 0x46d   : > { %v4593_v60 = vmax.f32 %v4589_v57, 0.0  ;;  %v4595_v61 = vmax.f32 %v4591_v45, 0.0 }
 0x46e   : > { %5577 = vmatpush3.bf16.msra.mxu0 %v5576_v43  ;;  %5609 = vmatpush3.bf16.msra.mxu1 %v5608_v26 }
 0x46f   : > { %4726 = vmatprep.mubr.f32.mxu0 %v4593_v60  ;;  %5579 = vmatprep.subr.bf16.mxu0 %v5578_v32 }
 0x470   : > { %5611 = vmatprep.subr.bf16.mxu1 %v5610_v56  ;;  %4796 = vmatprep.mubr.f32.mxu1 %v4595_v61 }
 0x472   : > { %5581 = vmatpush3.bf16.msra.mxu0 %v5580_v55  ;;  %5613 = vmatpush3.bf16.msra.mxu1 %v5612_v2 }
 0x475   : > { %4727 = vmatmul.mubr.f32.vlgmr.msra.gmra.mrb[0].mxu0 %v4592_v62  ;;  %4797 = vmatmul.mubr.f32.vlgmr.msra.gmra.mrb[0].mxu1 %v4594_v4 }
 0x548   : > { %v5512_v5 = vpop.f32.mrb[0].mxu0  ;;  %v5547_v48 = vpop.f32.mrb[0].mxu1 }
 0x549   : > { %v5513_v7 = vpop.f32.mrb[1].mxu0  ;;  %v5548_v10 = vpop.f32.mrb[1].mxu1 }
 0x54a   : > { %v5514_v9 = vadd.f32 %v5513_v7, %v5512_v5  ;;  %v5549_v51 = vadd.f32 %v5548_v10, %v5547_v48 }
 0x54c   : > { %v4729_v58 = vadd.f32 %v5514_v9, %v4661_v6 }
 0x54e   : > { %v4799_v11 = vadd.f32 %v5549_v51, %v4729_v58 }
 0x550   : > { %v4802_v13 = vsub.f32 0.0, %v4799_v11 }
 0x552   : > { %v4803_v63 = vmul.f32 1.442695, %v4802_v13 }
 0x554   : > { %6445 = vpow2.f32 %v4803_v63 }
 0x55e   : > { %v6446_v16 = vpop.eup %6445 }
 0x55f   : > { %v4805_v17 = vadd.f32 1.0, %v6446_v16 }
 0x561   : > { %6447 = vrcp.f32 %v4805_v17 }
 0x56b   : > { %v6448_v20 = vpop.eup %6447 }
 0x56c   : > { %v4808_v21 = vmul.f32 %v6448_v20, %v4799_v11 }
 0x56e   : > { %4810 = vst.msk [vmem:[%s8059_s26] sm:$0xff] %vm4809_vm3, %v4808_v21 }
 0x56f PF: > { %s8060_s29 = sld [smem:[#allocation15_spill]]  ;;  %s8061_s15 = sld [smem:[#allocation16_spill]] }
 0x570   : > { %s8062_s26 = smov %s6601_s27  ;;  %s8063_s27 = smov %s6605_s28 }
 0x575   : > { %p17_p12 = scmp.ge.s32.totalorder %s8060_s29, 4   ;;  %s8064_s28 = smov %s8061_s15 }
 0x577   :  { %19 = sbr.rel (!%p17_p12) target bundleno = 6 (0x6), region = 112 }
 0x57e   :  { %4822 = vsyncpa [#allocation6], 1 }
 0x57f   :  { %4824 = vsyncpa [#allocation6 + $0x1], 1 }
 0x580   :  { %4825 = vsyncpa [#allocation8], 1 }

</bundles_post_ra>
